<compile_context>
chip_gen: v7x
topology: tpu7x:2x2x1
jax: 0.10.0
libtpu: 0.0.40
codegen_flags: <defaults>
</compile_context>

<pallas_src>
import functools

import numpy as np
import jax
import jax.numpy as jnp
from jax.experimental import pallas as pl
from jax.experimental.pallas import tpu as pltpu


# ----------------------------------------------------------------------------
# Pallas kernel: out = act(x @ w + b)   (bf16 operands, f32 accumulate)
# ----------------------------------------------------------------------------
def _matmul_bias_act_kernel(x_ref, w_ref, b_ref, o_ref, *, apply_relu):
    acc = jnp.dot(x_ref[...], w_ref[...], preferred_element_type=jnp.float32)
    acc = acc + b_ref[...]                      # (1, N) f32 bias broadcasts over M
    if apply_relu:
        acc = jnp.maximum(acc, 0.0)
    o_ref[...] = acc.astype(o_ref.dtype)


def _pick_tile_m(M):
    if M <= 1024:
        return M
    for tm in (1024, 512, 256, 128, 64, 32, 16, 8):
        if M % tm == 0:
            return tm
    return M


def matmul_bias_act(x, w, b, *, relu, out_dtype):
    """x: (M, K) bf16, w: (K, N) bf16, b: (N,) f32."""
    M, K = x.shape
    K2, N = w.shape
    assert K == K2 and b.shape == (N,)
    tm = _pick_tile_m(M)
    assert M % tm == 0
    grid = (M // tm,)

    flops = 2 * M * K * N
    bytes_accessed = (M * K * x.dtype.itemsize + K * N * w.dtype.itemsize
                      + N * 4 + M * N * np.dtype(out_dtype).itemsize)

    return pl.pallas_call(
        functools.partial(_matmul_bias_act_kernel, apply_relu=relu),
        out_shape=jax.ShapeDtypeStruct((M, N), out_dtype),
        grid=grid,
        in_specs=[
            pl.BlockSpec((tm, K), lambda i: (i, 0)),
            pl.BlockSpec((K, N), lambda i: (0, 0)),
            pl.BlockSpec((1, N), lambda i: (0, 0)),
        ],
        out_specs=pl.BlockSpec((tm, N), lambda i: (i, 0)),
        compiler_params=pltpu.CompilerParams(
            dimension_semantics=("parallel",),
            vmem_limit_bytes=32 * 1024 * 1024,
        ),
        cost_estimate=pl.CostEstimate(
            flops=flops, transcendentals=0, bytes_accessed=bytes_accessed),
    )(x, w, b.reshape(1, N))


# ----------------------------------------------------------------------------
# Fused tail kernel: conv4 (1x1 spatial => matmul) -> fc -> ReLU -> heads
# All intermediates stay on-chip; heads are a single lane-padded matmul.
# ----------------------------------------------------------------------------
def _tail_kernel(z_ref, w4_ref, b4_ref, wf_ref, bf_ref, wh_ref, bh_ref, o_ref):
    # conv4: (Mpad, 2048) @ (2048, 256) + b, ReLU
    h = jnp.dot(z_ref[...], w4_ref[...], preferred_element_type=jnp.float32)
    h = jnp.maximum(h + b4_ref[...], 0.0).astype(jnp.bfloat16)
    # fc: (Mpad, 256) @ (256, 2000) + b, ReLU   (never leaves VMEM)
    h = jnp.dot(h, wf_ref[...], preferred_element_type=jnp.float32)
    h = jnp.maximum(h + bf_ref[...], 0.0).astype(jnp.bfloat16)
    # fused mu / log_sigma2 heads: (Mpad, 2000) @ (2000, 128)
    out = jnp.dot(h, wh_ref[...], preferred_element_type=jnp.float32) + bh_ref[...]
    o_ref[...] = out.astype(o_ref.dtype)


def tail_fused(z, w4, b4, wf, bf, wh, bh):
    M, K4 = z.shape
    N4 = w4.shape[1]
    Nf = wf.shape[1]
    Nh = wh.shape[1]

    flops = 2 * M * (K4 * N4 + N4 * Nf + Nf * Nh)
    bytes_accessed = (z.size * z.dtype.itemsize
                      + (w4.size + wf.size + wh.size) * 2
                      + (N4 + Nf + Nh) * 4 + M * Nh * 4)

    def full(shape):
        return pl.BlockSpec(shape, lambda: (0,) * len(shape))

    return pl.pallas_call(
        _tail_kernel,
        out_shape=jax.ShapeDtypeStruct((M, Nh), jnp.float32),
        in_specs=[
            full((M, K4)),
            full((K4, N4)), full((1, N4)),
            full((N4, Nf)), full((1, Nf)),
            full((Nf, Nh)), full((1, Nh)),
        ],
        out_specs=full((M, Nh)),
        compiler_params=pltpu.CompilerParams(vmem_limit_bytes=32 * 1024 * 1024),
        cost_estimate=pl.CostEstimate(
            flops=flops, transcendentals=0, bytes_accessed=bytes_accessed),
    )(z, w4, b4.reshape(1, N4), wf, bf.reshape(1, Nf), wh, bh.reshape(1, Nh))


# ----------------------------------------------------------------------------
# NHWC im2col: (B, H, W, C) -> (B*Ho*Wo, kh*kw*C) in (kh, kw, C) order.
# Pure slicing + concat + reshape; NO transposes (NHWC keeps C lane-major).
# ----------------------------------------------------------------------------
def _im2col_nhwc(x, kh, kw, stride, pad):
    B, H, W, C = x.shape
    if pad:
        x = jnp.pad(x, ((0, 0), (pad, pad), (pad, pad), (0, 0)))
    Ho = (H + 2 * pad - kh) // stride + 1
    Wo = (W + 2 * pad - kw) // stride + 1
    taps = [x[:, i:i + stride * Ho:stride, j:j + stride * Wo:stride, :]
            for i in range(kh) for j in range(kw)]
    p = jnp.concatenate(taps, axis=-1)              # (B, Ho, Wo, kh*kw*C)
    return p.reshape(B * Ho * Wo, kh * kw * C), Ho, Wo


# ----------------------------------------------------------------------------
# Parameter construction (deterministic synthetic init, DCGAN-style N(0, 0.02)).
# Weights are generated in torch layout, then pre-flattened ONCE into the
# layouts the kernels consume (to load real torch weights, apply the same
# permute/reshape: conv w.permute(2,3,1,0).reshape(kh*kw*Cin, Cout), linear w.T).
# ----------------------------------------------------------------------------
def _conv_w_to_2d(w_oihw, cin_pad=None):
    Cout, Cin, kh, kw = w_oihw.shape
    w = jnp.transpose(w_oihw, (2, 3, 1, 0))          # (kh, kw, Cin, Cout) = HWIO
    if cin_pad is not None and cin_pad > Cin:
        w = jnp.pad(w, ((0, 0), (0, 0), (0, cin_pad - Cin), (0, 0)))
        Cin = cin_pad
    return w.reshape(kh * kw * Cin, Cout)


def init_params(key, latent_dim):
    assert 2 * latent_dim <= 128, "head lane padding assumes 2*latent_dim <= 128"

    def nrm(k, shape):
        return 0.02 * jax.random.normal(k, shape, dtype=jnp.float32)

    ks = jax.random.split(key, 7)
    w1 = nrm(ks[0], (32, 3, 4, 4))
    w2 = nrm(ks[1], (64, 32, 4, 4))
    w3 = nrm(ks[2], (128, 64, 4, 4))
    w4 = nrm(ks[3], (256, 128, 4, 4))
    wfc = nrm(ks[4], (2000, 256))
    wmu = nrm(ks[5], (latent_dim, 2000))
    wls = nrm(ks[6], (latent_dim, 2000))

    head_w = jnp.concatenate([wmu, wls], axis=0).T              # (2000, 2*latent)
    head_w = jnp.pad(head_w, ((0, 0), (0, 128 - 2 * latent_dim)))  # lane-pad to 128
    head_b = jnp.zeros((128,), jnp.float32)

    def bf16(a):
        return a.astype(jnp.bfloat16)

    return {
        "conv1_w": bf16(_conv_w_to_2d(w1, cin_pad=4)),   # (64, 32)   K padded 48->64
        "conv1_b": jnp.zeros((32,), jnp.float32),
        "conv2_w": bf16(_conv_w_to_2d(w2)),              # (512, 64)
        "conv2_b": jnp.zeros((64,), jnp.float32),
        "conv3_w": bf16(_conv_w_to_2d(w3)),              # (1024, 128)
        "conv3_b": jnp.zeros((128,), jnp.float32),
        "conv4_w": bf16(_conv_w_to_2d(w4)),              # (2048, 256)
        "conv4_b": jnp.zeros((256,), jnp.float32),
        "fc_w":    bf16(wfc.T),                          # (256, 2000)
        "fc_b":    jnp.zeros((2000,), jnp.float32),
        "head_w":  bf16(head_w),                         # (2000, 128)
        "head_b":  head_b,
    }


# ----------------------------------------------------------------------------
# Forward pass (== CIFAR_SEncoder_CNN.forward): returns [mu, log_sigma2]
# ----------------------------------------------------------------------------
def cifar_sencoder_forward(params, x, *, latent_dim):
    B = x.shape[0]
    # Accept torch NCHW input; single transpose to NHWC, bf16, Cin pad 3 -> 4.
    h = jnp.transpose(x.astype(jnp.bfloat16), (0, 2, 3, 1))      # (B, 32, 32, 3)
    h = jnp.pad(h, ((0, 0), (0, 0), (0, 0), (0, 1)))             # (B, 32, 32, 4)

    # conv1..conv3: 4x4 / stride 2 / pad 1, ReLU — im2col (NHWC) + Pallas matmul.
    for w_name, b_name in (("conv1_w", "conv1_b"),
                           ("conv2_w", "conv2_b"),
                           ("conv3_w", "conv3_b")):
        cols, Ho, Wo = _im2col_nhwc(h, 4, 4, 2, 1)
        out = matmul_bias_act(cols, params[w_name], params[b_name],
                              relu=True, out_dtype=jnp.bfloat16)
        h = out.reshape(B, Ho, Wo, -1)                            # free reshape

    # conv3 output (B, 4, 4, 128) flattened in (h, w, c) order is exactly
    # conv4's single 4x4 receptive field => conv4 is a plain matmul, fused
    # together with fc + mu/log_sigma2 heads into one kernel.
    z = h.reshape(B, -1)                                          # (B, 2048), free
    m_pad = max(8, -(-B // 8) * 8)                                # full sublane
    z = jnp.pad(z, ((0, m_pad - B), (0, 0)))

    out = tail_fused(z, params["conv4_w"], params["conv4_b"],
                     params["fc_w"], params["fc_b"],
                     params["head_w"], params["head_b"])          # (m_pad, 128) f32
    out = out[:B]
    mu = out[:, :latent_dim]
    log_sigma2 = out[:, latent_dim:2 * latent_dim]
    return [mu, log_sigma2]


if __name__ == "__main__":
    latent_dim = 16
    batch = 2

    key = jax.random.PRNGKey(0)
    k_params, k_x = jax.random.split(key)

    params = init_params(k_params, latent_dim)
    # CIFAR input: NCHW (B, 3, 32, 32) — spatial 32 so conv4 reduces to 1x1
    # exactly as in the torch module.
    x = jax.random.normal(k_x, (batch, 3, 32, 32), dtype=jnp.float32)

    fwd = jax.jit(functools.partial(cifar_sencoder_forward, latent_dim=latent_dim))
    mu, log_sigma2 = fwd(params, x)
    jax.block_until_ready((mu, log_sigma2))

    assert mu.shape == (batch, latent_dim) and log_sigma2.shape == (batch, latent_dim)
    assert mu.dtype == jnp.float32 and log_sigma2.dtype == jnp.float32
    print("KERNEL_OK")
</pallas_src>

<mosaic_0001>
module attributes {stable_mosaic.version = 11 : i64} {
  func.func @_matmul_bias_act_kernel(%arg0: i32, %arg1: memref<512x64xbf16, #tpu.memory_space<vmem>>, %arg2: memref<64x32xbf16, #tpu.memory_space<vmem>>, %arg3: memref<1x32xf32, #tpu.memory_space<vmem>>, %arg4: memref<512x32xbf16, #tpu.memory_space<vmem>>) attributes {dimension_semantics = [#tpu.dimension_semantics<parallel>], iteration_bounds = array<i64: 1>, scalar_prefetch = 0 : i64, scratch_operands = 0 : i64, tpu.core_type = #tpu.core_type<tc>, window_params = [{transform_indices = @transform_0, window_bounds = array<i64: 512, 64>}, {pipeline_mode = #tpu.pipeline_mode<synchronous>, transform_indices = @transform_1, window_bounds = array<i64: 64, 32>}, {pipeline_mode = #tpu.pipeline_mode<synchronous>, transform_indices = @transform_2, window_bounds = array<i64: 1, 32>}, {transform_indices = @transform_3, window_bounds = array<i64: 512, 32>}]} {
    %c0 = arith.constant 0 : index
    %c0_0 = arith.constant 0 : index
    %0 = vector.load %arg1[%c0, %c0_0] : memref<512x64xbf16, #tpu.memory_space<vmem>>, vector<512x64xbf16>
    %c0_1 = arith.constant 0 : index
    %c0_2 = arith.constant 0 : index
    %1 = vector.load %arg2[%c0_1, %c0_2] : memref<64x32xbf16, #tpu.memory_space<vmem>>, vector<64x32xbf16>
    %cst = arith.constant dense<0.000000e+00> : vector<512x32xf32>
    %2 = tpu.matmul %0, %1, %cst {dimension_numbers = #tpu.dot_dimension_numbers<[1], [0], [0], [1], [0, 0, 1, 1], [], []>} : vector<512x64xbf16>, vector<64x32xbf16>, vector<512x32xf32> -> vector<512x32xf32>
    %c0_3 = arith.constant 0 : index
    %c0_4 = arith.constant 0 : index
    %3 = vector.load %arg3[%c0_3, %c0_4] : memref<1x32xf32, #tpu.memory_space<vmem>>, vector<1x32xf32>
    %4 = vector.broadcast %3 : vector<1x32xf32> to vector<512x32xf32>
    %5 = arith.addf %2, %4 : vector<512x32xf32>
    %cst_5 = arith.constant 0.000000e+00 : f32
    %6 = vector.broadcast %cst_5 : f32 to vector<512x32xf32>
    %7 = arith.maximumf %5, %6 : vector<512x32xf32>
    %8 = arith.truncf %7 : vector<512x32xf32> to vector<512x32xbf16>
    %c0_6 = arith.constant 0 : index
    %c0_7 = arith.constant 0 : index
    %9 = vector.load %arg4[%c0_6, %c0_7] : memref<512x32xbf16, #tpu.memory_space<vmem>>, vector<512x32xbf16>
    tpu.vector_store %arg4[%c0_6, %c0_7], %8 {strides = array<i32>} : memref<512x32xbf16, #tpu.memory_space<vmem>>, vector<512x32xbf16>,
    return
  }
  func.func @transform_0(%arg0: i32) -> (i32, i32) {
    %c0_i32 = arith.constant 0 : i32
    %c0_i32_0 = arith.constant 0 : i32
    return %arg0, %c0_i32 : i32, i32
  }
  func.func @transform_1(%arg0: i32) -> (i32, i32) {
    %c0_i32 = arith.constant 0 : i32
    %c0_i32_0 = arith.constant 0 : i32
    %c0_i32_1 = arith.constant 0 : i32
    return %c0_i32, %c0_i32_0 : i32, i32
  }
  func.func @transform_2(%arg0: i32) -> (i32, i32) {
    %c0_i32 = arith.constant 0 : i32
    %c0_i32_0 = arith.constant 0 : i32
    %c0_i32_1 = arith.constant 0 : i32
    return %c0_i32, %c0_i32_0 : i32, i32
  }
  func.func @transform_3(%arg0: i32) -> (i32, i32) {
    %c0_i32 = arith.constant 0 : i32
    %c0_i32_0 = arith.constant 0 : i32
    return %arg0, %c0_i32 : i32, i32
  }
}

module attributes {stable_mosaic.version = 11 : i64} {
  func.func @_matmul_bias_act_kernel(%arg0: i32, %arg1: memref<128x512xbf16, #tpu.memory_space<vmem>>, %arg2: memref<512x64xbf16, #tpu.memory_space<vmem>>, %arg3: memref<1x64xf32, #tpu.memory_space<vmem>>, %arg4: memref<128x64xbf16, #tpu.memory_space<vmem>>) attributes {dimension_semantics = [#tpu.dimension_semantics<parallel>], iteration_bounds = array<i64: 1>, scalar_prefetch = 0 : i64, scratch_operands = 0 : i64, tpu.core_type = #tpu.core_type<tc>, window_params = [{transform_indices = @transform_0, window_bounds = array<i64: 128, 512>}, {pipeline_mode = #tpu.pipeline_mode<synchronous>, transform_indices = @transform_1, window_bounds = array<i64: 512, 64>}, {pipeline_mode = #tpu.pipeline_mode<synchronous>, transform_indices = @transform_2, window_bounds = array<i64: 1, 64>}, {transform_indices = @transform_3, window_bounds = array<i64: 128, 64>}]} {
    %c0 = arith.constant 0 : index
    %c0_0 = arith.constant 0 : index
    %0 = vector.load %arg1[%c0, %c0_0] : memref<128x512xbf16, #tpu.memory_space<vmem>>, vector<128x512xbf16>
    %c0_1 = arith.constant 0 : index
    %c0_2 = arith.constant 0 : index
    %1 = vector.load %arg2[%c0_1, %c0_2] : memref<512x64xbf16, #tpu.memory_space<vmem>>, vector<512x64xbf16>
    %cst = arith.constant dense<0.000000e+00> : vector<128x64xf32>
    %2 = tpu.matmul %0, %1, %cst {dimension_numbers = #tpu.dot_dimension_numbers<[1], [0], [0], [1], [0, 0, 1, 1], [], []>} : vector<128x512xbf16>, vector<512x64xbf16>, vector<128x64xf32> -> vector<128x64xf32>
    %c0_3 = arith.constant 0 : index
    %c0_4 = arith.constant 0 : index
    %3 = vector.load %arg3[%c0_3, %c0_4] : memref<1x64xf32, #tpu.memory_space<vmem>>, vector<1x64xf32>
    %4 = vector.broadcast %3 : vector<1x64xf32> to vector<128x64xf32>
    %5 = arith.addf %2, %4 : vector<128x64xf32>
    %cst_5 = arith.constant 0.000000e+00 : f32
    %6 = vector.broadcast %cst_5 : f32 to vector<128x64xf32>
    %7 = arith.maximumf %5, %6 : vector<128x64xf32>
    %8 = arith.truncf %7 : vector<128x64xf32> to vector<128x64xbf16>
    %c0_6 = arith.constant 0 : index
    %c0_7 = arith.constant 0 : index
    %9 = vector.load %arg4[%c0_6, %c0_7] : memref<128x64xbf16, #tpu.memory_space<vmem>>, vector<128x64xbf16>
    tpu.vector_store %arg4[%c0_6, %c0_7], %8 {strides = array<i32>} : memref<128x64xbf16, #tpu.memory_space<vmem>>, vector<128x64xbf16>,
    return
  }
  func.func @transform_0(%arg0: i32) -> (i32, i32) {
    %c0_i32 = arith.constant 0 : i32
    %c0_i32_0 = arith.constant 0 : i32
    return %arg0, %c0_i32 : i32, i32
  }
  func.func @transform_1(%arg0: i32) -> (i32, i32) {
    %c0_i32 = arith.constant 0 : i32
    %c0_i32_0 = arith.constant 0 : i32
    %c0_i32_1 = arith.constant 0 : i32
    return %c0_i32, %c0_i32_0 : i32, i32
  }
  func.func @transform_2(%arg0: i32) -> (i32, i32) {
    %c0_i32 = arith.constant 0 : i32
    %c0_i32_0 = arith.constant 0 : i32
    %c0_i32_1 = arith.constant 0 : i32
    return %c0_i32, %c0_i32_0 : i32, i32
  }
  func.func @transform_3(%arg0: i32) -> (i32, i32) {
    %c0_i32 = arith.constant 0 : i32
    %c0_i32_0 = arith.constant 0 : i32
    return %arg0, %c0_i32 : i32, i32
  }
}

module attributes {stable_mosaic.version = 11 : i64} {
  func.func @_matmul_bias_act_kernel(%arg0: i32, %arg1: memref<32x1024xbf16, #tpu.memory_space<vmem>>, %arg2: memref<1024x128xbf16, #tpu.memory_space<vmem>>, %arg3: memref<1x128xf32, #tpu.memory_space<vmem>>, %arg4: memref<32x128xbf16, #tpu.memory_space<vmem>>) attributes {dimension_semantics = [#tpu.dimension_semantics<parallel>], iteration_bounds = array<i64: 1>, scalar_prefetch = 0 : i64, scratch_operands = 0 : i64, tpu.core_type = #tpu.core_type<tc>, window_params = [{transform_indices = @transform_0, window_bounds = array<i64: 32, 1024>}, {pipeline_mode = #tpu.pipeline_mode<synchronous>, transform_indices = @transform_1, window_bounds = array<i64: 1024, 128>}, {pipeline_mode = #tpu.pipeline_mode<synchronous>, transform_indices = @transform_2, window_bounds = array<i64: 1, 128>}, {transform_indices = @transform_3, window_bounds = array<i64: 32, 128>}]} {
    %c0 = arith.constant 0 : index
    %c0_0 = arith.constant 0 : index
    %0 = vector.load %arg1[%c0, %c0_0] : memref<32x1024xbf16, #tpu.memory_space<vmem>>, vector<32x1024xbf16>
    %c0_1 = arith.constant 0 : index
    %c0_2 = arith.constant 0 : index
    %1 = vector.load %arg2[%c0_1, %c0_2] : memref<1024x128xbf16, #tpu.memory_space<vmem>>, vector<1024x128xbf16>
    %cst = arith.constant dense<0.000000e+00> : vector<32x128xf32>
    %2 = tpu.matmul %0, %1, %cst {dimension_numbers = #tpu.dot_dimension_numbers<[1], [0], [0], [1], [0, 0, 1, 1], [], []>} : vector<32x1024xbf16>, vector<1024x128xbf16>, vector<32x128xf32> -> vector<32x128xf32>
    %c0_3 = arith.constant 0 : index
    %c0_4 = arith.constant 0 : index
    %3 = vector.load %arg3[%c0_3, %c0_4] : memref<1x128xf32, #tpu.memory_space<vmem>>, vector<1x128xf32>
    %4 = vector.broadcast %3 : vector<1x128xf32> to vector<32x128xf32>
    %5 = arith.addf %2, %4 : vector<32x128xf32>
    %cst_5 = arith.constant 0.000000e+00 : f32
    %6 = vector.broadcast %cst_5 : f32 to vector<32x128xf32>
    %7 = arith.maximumf %5, %6 : vector<32x128xf32>
    %8 = arith.truncf %7 : vector<32x128xf32> to vector<32x128xbf16>
    %c0_6 = arith.constant 0 : index
    %c0_7 = arith.constant 0 : index
    %9 = vector.load %arg4[%c0_6, %c0_7] : memref<32x128xbf16, #tpu.memory_space<vmem>>, vector<32x128xbf16>
    tpu.vector_store %arg4[%c0_6, %c0_7], %8 {strides = array<i32>} : memref<32x128xbf16, #tpu.memory_space<vmem>>, vector<32x128xbf16>,
    return
  }
  func.func @transform_0(%arg0: i32) -> (i32, i32) {
    %c0_i32 = arith.constant 0 : i32
    %c0_i32_0 = arith.constant 0 : i32
    return %arg0, %c0_i32 : i32, i32
  }
  func.func @transform_1(%arg0: i32) -> (i32, i32) {
    %c0_i32 = arith.constant 0 : i32
    %c0_i32_0 = arith.constant 0 : i32
    %c0_i32_1 = arith.constant 0 : i32
    return %c0_i32, %c0_i32_0 : i32, i32
  }
  func.func @transform_2(%arg0: i32) -> (i32, i32) {
    %c0_i32 = arith.constant 0 : i32
    %c0_i32_0 = arith.constant 0 : i32
    %c0_i32_1 = arith.constant 0 : i32
    return %c0_i32, %c0_i32_0 : i32, i32
  }
  func.func @transform_3(%arg0: i32) -> (i32, i32) {
    %c0_i32 = arith.constant 0 : i32
    %c0_i32_0 = arith.constant 0 : i32
    return %arg0, %c0_i32 : i32, i32
  }
}

module attributes {stable_mosaic.version = 11 : i64} {
  func.func @_tail_kernel(%arg0: memref<8x2048xbf16, #tpu.memory_space<vmem>>, %arg1: memref<2048x256xbf16, #tpu.memory_space<vmem>>, %arg2: memref<1x256xf32, #tpu.memory_space<vmem>>, %arg3: memref<256x2000xbf16, #tpu.memory_space<vmem>>, %arg4: memref<1x2000xf32, #tpu.memory_space<vmem>>, %arg5: memref<2000x128xbf16, #tpu.memory_space<vmem>>, %arg6: memref<1x128xf32, #tpu.memory_space<vmem>>, %arg7: memref<8x128xf32, #tpu.memory_space<vmem>>) attributes {dimension_semantics = [], scalar_prefetch = 0 : i64, scratch_operands = 0 : i64, tpu.core_type = #tpu.core_type<tc>} {
    %c0 = arith.constant 0 : index
    %c0_0 = arith.constant 0 : index
    %0 = vector.load %arg0[%c0, %c0_0] : memref<8x2048xbf16, #tpu.memory_space<vmem>>, vector<8x2048xbf16>
    %c0_1 = arith.constant 0 : index
    %c0_2 = arith.constant 0 : index
    %1 = vector.load %arg1[%c0_1, %c0_2] : memref<2048x256xbf16, #tpu.memory_space<vmem>>, vector<2048x256xbf16>
    %cst = arith.constant dense<0.000000e+00> : vector<8x256xf32>
    %2 = tpu.matmul %0, %1, %cst {dimension_numbers = #tpu.dot_dimension_numbers<[1], [0], [0], [1], [0, 0, 1, 1], [], []>} : vector<8x2048xbf16>, vector<2048x256xbf16>, vector<8x256xf32> -> vector<8x256xf32>
    %c0_3 = arith.constant 0 : index
    %c0_4 = arith.constant 0 : index
    %3 = vector.load %arg2[%c0_3, %c0_4] : memref<1x256xf32, #tpu.memory_space<vmem>>, vector<1x256xf32>
    %4 = vector.broadcast %3 : vector<1x256xf32> to vector<8x256xf32>
    %5 = arith.addf %2, %4 : vector<8x256xf32>
    %cst_5 = arith.constant 0.000000e+00 : f32
    %6 = vector.broadcast %cst_5 : f32 to vector<8x256xf32>
    %7 = arith.maximumf %5, %6 : vector<8x256xf32>
    %8 = arith.truncf %7 : vector<8x256xf32> to vector<8x256xbf16>
    %c0_6 = arith.constant 0 : index
    %c0_7 = arith.constant 0 : index
    %9 = vector.load %arg3[%c0_6, %c0_7] : memref<256x2000xbf16, #tpu.memory_space<vmem>>, vector<256x2000xbf16>
    %cst_8 = arith.constant dense<0.000000e+00> : vector<8x2000xf32>
    %10 = tpu.matmul %8, %9, %cst_8 {dimension_numbers = #tpu.dot_dimension_numbers<[1], [0], [0], [1], [0, 0, 1, 1], [], []>} : vector<8x256xbf16>, vector<256x2000xbf16>, vector<8x2000xf32> -> vector<8x2000xf32>
    %c0_9 = arith.constant 0 : index
    %c0_10 = arith.constant 0 : index
    %11 = vector.load %arg4[%c0_9, %c0_10] : memref<1x2000xf32, #tpu.memory_space<vmem>>, vector<1x2000xf32>
    %12 = vector.broadcast %11 : vector<1x2000xf32> to vector<8x2000xf32>
    %13 = arith.addf %10, %12 : vector<8x2000xf32>
    %cst_11 = arith.constant 0.000000e+00 : f32
    %14 = vector.broadcast %cst_11 : f32 to vector<8x2000xf32>
    %15 = arith.maximumf %13, %14 : vector<8x2000xf32>
    %16 = arith.truncf %15 : vector<8x2000xf32> to vector<8x2000xbf16>
    %c0_12 = arith.constant 0 : index
    %c0_13 = arith.constant 0 : index
    %17 = vector.load %arg5[%c0_12, %c0_13] : memref<2000x128xbf16, #tpu.memory_space<vmem>>, vector<2000x128xbf16>
    %cst_14 = arith.constant dense<0.000000e+00> : vector<8x128xf32>
    %18 = tpu.matmul %16, %17, %cst_14 {dimension_numbers = #tpu.dot_dimension_numbers<[1], [0], [0], [1], [0, 0, 1, 1], [], []>} : vector<8x2000xbf16>, vector<2000x128xbf16>, vector<8x128xf32> -> vector<8x128xf32>
    %c0_15 = arith.constant 0 : index
    %c0_16 = arith.constant 0 : index
    %19 = vector.load %arg6[%c0_15, %c0_16] : memref<1x128xf32, #tpu.memory_space<vmem>>, vector<1x128xf32>
    %20 = vector.broadcast %19 : vector<1x128xf32> to vector<8x128xf32>
    %21 = arith.addf %18, %20 : vector<8x128xf32>
    %c0_17 = arith.constant 0 : index
    %c0_18 = arith.constant 0 : index
    %22 = vector.load %arg7[%c0_17, %c0_18] : memref<8x128xf32, #tpu.memory_space<vmem>>, vector<8x128xf32>
    tpu.vector_store %arg7[%c0_17, %c0_18], %21 {strides = array<i32>} : memref<8x128xf32, #tpu.memory_space<vmem>>, vector<8x128xf32>,
    return
  }
}

</mosaic_0001>

<bundles_post_ra>
// kernel: cifar_sencoder_forward.4
= control target key start
LH: loop header
LB: loop body
LE: loop exit
PB: predicated region body
PF: predicated region fallthrough
CT: control target
= control target key end

     0   :  { %vm278_vm0 = vcmask 523264   ;;  %vm984_vm1 = vcmask 257024   ;;  %s1887_s1 = inlined_call_operand.vmem [shape: bf16[64,32], index: 1, kind: input, shape index: {}]   ;;  %s1888_s0 = inlined_call_operand.vmem [shape: bf16[512,64], index: 0, kind: input, shape index: {}]   ;;  %s1889_s2 = inlined_call_operand.vmem [shape: f32[1,32], index: 2, kind: input, shape index: {}]   ;;  %s1890_s3 = inlined_call_operand.vmem [shape: bf16[512,32], index: 3, kind: output, shape index: {}]  }
   0x1   :  { %v1366_v0 = vld [vmem:[%s1887_s1] sm:$0xff]   ;;  %v1367_v1 = vld [vmem:[%s1887_s1 + $0x8] sm:$0xff]   ;;  %v1368_v2 = vld [vmem:[%s1887_s1 + $0x10] sm:$0xff]  }
   0x2   :  { %1286 = vmatprep.subr.bf16.mxu0 %v1366_v0  ;;  %1358 = vmatprep.subr.bf16.mxu1 %v1366_v0  ;;  %v1370_v3 = vld [vmem:[%s1888_s0] sm:$0xff]   ;;  %v1369_v5 = vld [vmem:[%s1887_s1 + $0x18] sm:$0xff]   ;;  %v1372_v6 = vld [vmem:[%s1888_s0 + $0x8] sm:$0xff]  }
   0x3   :  { %1287 = vmatpush3.bf16.msra.mxu0 %v1366_v0  ;;  %1362 = vmatpush3.bf16.msra.mxu1 %v1366_v0  ;;  %v1371_v4 = vld [vmem:[%s1888_s0 + $0x80] sm:$0xff]   ;;  %v1373_v7 = vld [vmem:[%s1888_s0 + $0x88] sm:$0xff]   ;;  %v1374_v8 = vld [vmem:[%s1888_s0 + $0x10] sm:$0xff]  }
   0x4   :  { %1288 = vmatprep.subr.bf16.mxu0 %v1367_v1  ;;  %1359 = vmatprep.subr.bf16.mxu1 %v1367_v1  ;;  %v1375_v9 = vld [vmem:[%s1888_s0 + $0x90] sm:$0xff]   ;;  %v1376_v10 = vld [vmem:[%s1888_s0 + $0x18] sm:$0xff]   ;;  %v1378_v12 = vld [vmem:[%s1888_s0 + $0x20] sm:$0xff]  }
   0x5   :  { %1294 = vmatprep.mubr.msk.bf16.mxu0 %vm278_vm0, %v1370_v3  ;;  %1326 = vmatprep.mubr.msk.bf16.mxu1 %vm278_vm0, %v1371_v4  ;;  %v1377_v11 = vld [vmem:[%s1888_s0 + $0x98] sm:$0xff]   ;;  %v1379_v13 = vld [vmem:[%s1888_s0 + $0xa0] sm:$0xff]   ;;  %v1380_v14 = vld [vmem:[%s1888_s0 + $0x28] sm:$0xff]  }
   0x6   :  { %v1381_v15 = vld [vmem:[%s1888_s0 + $0xa8] sm:$0xff]   ;;  %v1382_v16 = vld [vmem:[%s1888_s0 + $0x30] sm:$0xff]   ;;  %v1384_v18 = vld [vmem:[%s1888_s0 + $0x38] sm:$0xff]  }
   0x7   :  { %1289 = vmatpush3.bf16.msra.mxu0 %v1367_v1  ;;  %1363 = vmatpush3.bf16.msra.mxu1 %v1367_v1  ;;  %v1383_v17 = vld [vmem:[%s1888_s0 + $0xb0] sm:$0xff]   ;;  %v1385_v19 = vld [vmem:[%s1888_s0 + $0xb8] sm:$0xff]   ;;  %v1386_v20 = vld [vmem:[%s1888_s0 + $0x40] sm:$0xff]  }
   0x8   :  { %1290 = vmatprep.subr.bf16.mxu0 %v1368_v2  ;;  %1360 = vmatprep.subr.bf16.mxu1 %v1368_v2  ;;  %v1387_v21 = vld [vmem:[%s1888_s0 + $0xc0] sm:$0xff]   ;;  %v1388_v22 = vld [vmem:[%s1888_s0 + $0x48] sm:$0xff]   ;;  %v1390_v24 = vld [vmem:[%s1888_s0 + $0x50] sm:$0xff]  }
   0x9   :  { %v1389_v23 = vld [vmem:[%s1888_s0 + $0xc8] sm:$0xff]   ;;  %v1391_v25 = vld [vmem:[%s1888_s0 + $0xd0] sm:$0xff]   ;;  %v1392_v26 = vld [vmem:[%s1888_s0 + $0x58] sm:$0xff]  }
   0xa   :  { %v1393_v27 = vld [vmem:[%s1888_s0 + $0xd8] sm:$0xff]   ;;  %v1394_v28 = vld [vmem:[%s1888_s0 + $0x60] sm:$0xff]   ;;  %v1396_v30 = vld [vmem:[%s1888_s0 + $0x68] sm:$0xff]  }
   0xb   :  { %1291 = vmatpush3.bf16.msra.mxu0 %v1368_v2  ;;  %1364 = vmatpush3.bf16.msra.mxu1 %v1368_v2  ;;  %v1395_v29 = vld [vmem:[%s1888_s0 + $0xe0] sm:$0xff]   ;;  %v1397_v31 = vld [vmem:[%s1888_s0 + $0xe8] sm:$0xff]   ;;  %v1398_v32 = vld [vmem:[%s1888_s0 + $0x70] sm:$0xff]  }
   0xc   :  { %1292 = vmatprep.subr.bf16.mxu0 %v1369_v5  ;;  %1361 = vmatprep.subr.bf16.mxu1 %v1369_v5  ;;  %v1399_v33 = vld [vmem:[%s1888_s0 + $0xf0] sm:$0xff]   ;;  %v1400_v34 = vld [vmem:[%s1888_s0 + $0x78] sm:$0xff]   ;;  %v1565_v36 = vld [vmem:[%s1889_s2] ss:$0 sm:$0xff] }
   0xd   :  { %v1401_v35 = vld [vmem:[%s1888_s0 + $0xf8] sm:$0xff]  }
   0xf   :  { %1293 = vmatpush3.bf16.msra.mxu0 %v1369_v5  ;;  %1365 = vmatpush3.bf16.msra.mxu1 %v1369_v5 }
  0x12   :  { %1295 = vmatmul.mubr.msk.bf16.vlgmr.msra.gmra.mrb[0].mxu0 %vm278_vm0, %v1372_v6  ;;  %1327 = vmatmul.mubr.msk.bf16.vlgmr.msra.gmra.mrb[0].mxu1 %vm278_vm0, %v1373_v7 }
  0x13   :  { %1298 = vmatprep.mubr.msk.bf16.mxu0 %vm278_vm0, %v1374_v8  ;;  %1330 = vmatprep.mubr.msk.bf16.mxu1 %vm278_vm0, %v1375_v9 }
  0x1a   :  { %1299 = vmatmul.mubr.msk.bf16.gmra.mrb[4].mxu0 %vm278_vm0, %v1376_v10  ;;  %1331 = vmatmul.mubr.msk.bf16.gmra.mrb[4].mxu1 %vm278_vm0, %v1377_v11 }
  0x1b   :  { %1302 = vmatprep.mubr.msk.bf16.mxu0 %vm278_vm0, %v1378_v12  ;;  %1334 = vmatprep.mubr.msk.bf16.mxu1 %vm278_vm0, %v1379_v13 }
  0x22   :  { %1303 = vmatmul.mubr.msk.bf16.gmra.mrb[8].mxu0 %vm278_vm0, %v1380_v14  ;;  %1335 = vmatmul.mubr.msk.bf16.gmra.mrb[8].mxu1 %vm278_vm0, %v1381_v15 }
  0x23   :  { %1306 = vmatprep.mubr.msk.bf16.mxu0 %vm278_vm0, %v1382_v16  ;;  %1338 = vmatprep.mubr.msk.bf16.mxu1 %vm278_vm0, %v1383_v17 }
  0x2a   :  { %1307 = vmatmul.mubr.msk.bf16.gmra.mrb[12].mxu0 %vm278_vm0, %v1384_v18  ;;  %1339 = vmatmul.mubr.msk.bf16.gmra.mrb[12].mxu1 %vm278_vm0, %v1385_v19 }
  0x2b   :  { %1310 = vmatprep.mubr.msk.bf16.mxu0 %vm278_vm0, %v1386_v20  ;;  %1342 = vmatprep.mubr.msk.bf16.mxu1 %vm278_vm0, %v1387_v21 }
  0x32   :  { %1311 = vmatmul.mubr.msk.bf16.gmra.mrb[16].mxu0 %vm278_vm0, %v1388_v22  ;;  %1343 = vmatmul.mubr.msk.bf16.gmra.mrb[16].mxu1 %vm278_vm0, %v1389_v23 }
  0x33   :  { %1314 = vmatprep.mubr.msk.bf16.mxu0 %vm278_vm0, %v1390_v24  ;;  %1346 = vmatprep.mubr.msk.bf16.mxu1 %vm278_vm0, %v1391_v25 }
  0x3a   :  { %1315 = vmatmul.mubr.msk.bf16.gmra.mrb[20].mxu0 %vm278_vm0, %v1392_v26  ;;  %1347 = vmatmul.mubr.msk.bf16.gmra.mrb[20].mxu1 %vm278_vm0, %v1393_v27 }
  0x3b   :  { %1318 = vmatprep.mubr.msk.bf16.mxu0 %vm278_vm0, %v1394_v28  ;;  %1350 = vmatprep.mubr.msk.bf16.mxu1 %vm278_vm0, %v1395_v29 }
  0x42   :  { %1319 = vmatmul.mubr.msk.bf16.gmra.mrb[24].mxu0 %vm278_vm0, %v1396_v30  ;;  %1351 = vmatmul.mubr.msk.bf16.gmra.mrb[24].mxu1 %vm278_vm0, %v1397_v31 }
  0x43   :  { %1322 = vmatprep.mubr.msk.bf16.mxu0 %vm278_vm0, %v1398_v32  ;;  %1354 = vmatprep.mubr.msk.bf16.mxu1 %vm278_vm0, %v1399_v33 }
  0x4a   :  { %1323 = vmatmul.mubr.msk.bf16.gmra.mrb[28].mxu0 %vm278_vm0, %v1400_v34  ;;  %1355 = vmatmul.mubr.msk.bf16.gmra.mrb[28].mxu1 %vm278_vm0, %v1401_v35 }
  0xe5   :  { %v1296_v37 = vpop.f32.mrb[0].mxu0  ;;  %v1328_v38 = vpop.f32.mrb[0].mxu1 }
  0xe6   :  { %v418_v39 = vadd.f32 %v1296_v37, %v1565_v36  ;;  %v546_v40 = vadd.f32 %v1328_v38, %v1565_v36  ;;  %v409_v41 = vpop.f32.mrb[1].mxu0  ;;  %v537_v42 = vpop.f32.mrb[1].mxu1 }
  0xe7   :  { %v410_v43 = vadd.f32 %v1565_v36, %v409_v41  ;;  %v538_v44 = vadd.f32 %v1565_v36, %v537_v42  ;;  %v1297_v45 = vpop.f32.mrb[2].mxu0  ;;  %v1329_v46 = vpop.f32.mrb[2].mxu1 }
  0xe8   :  { %v666_v47 = vmax.f32 %v418_v39, 0.0  ;;  %v698_v48 = vmax.f32 %v546_v40, 0.0  ;;  %v421_v49 = vadd.f32 %v1297_v45, %v1565_v36  ;;  %v549_v50 = vadd.f32 %v1329_v46, %v1565_v36  ;;  %v412_v51 = vpop.f32.mrb[3].mxu0  ;;  %v540_v52 = vpop.f32.mrb[3].mxu1 }
  0xe9   :  { %v664_v53 = vmax.f32 %v410_v43, 0.0  ;;  %v696_v54 = vmax.f32 %v538_v44, 0.0  ;;  %v413_v55 = vadd.f32 %v1565_v36, %v412_v51  ;;  %v541_v56 = vadd.f32 %v1565_v36, %v540_v52 }
  0xea   :  { %v1188_v57 = vpack.c.bf16 %v666_v47, %v666_v47  ;;  %v1220_v58 = vpack.c.bf16 %v698_v48, %v698_v48  ;;  %v667_v59 = vmax.f32 %v421_v49, 0.0  ;;  %v699_v60 = vmax.f32 %v549_v50, 0.0 }
  0xeb   :  { %v1186_v61 = vpack.c.bf16 %v664_v53, %v664_v53  ;;  %v1218_v62 = vpack.c.bf16 %v696_v54, %v696_v54  ;;  %v665_v63 = vmax.f32 %v413_v55, 0.0  ;;  %v697_v0 = vmax.f32 %v541_v56, 0.0 }
  0xec   :  { %987 = vst.msk [vmem:[%s1890_s3 + $0x8] sm:$0xf] %vm984_vm1, %v1188_v57  ;;  %1019 = vst.msk [vmem:[%s1890_s3 + $0x88] sm:$0xf] %vm984_vm1, %v1220_v58  ;;  %v1189_v1 = vpack.c.bf16 %v667_v59, %v667_v59  ;;  %v1221_v2 = vpack.c.bf16 %v699_v60, %v699_v60 }
  0xed   :  { %985 = vst.msk [vmem:[%s1890_s3] sm:$0xf] %vm984_vm1, %v1186_v61  ;;  %1017 = vst.msk [vmem:[%s1890_s3 + $0x80] sm:$0xf] %vm984_vm1, %v1218_v62  ;;  %v1187_v3 = vpack.c.bf16 %v665_v63, %v665_v63  ;;  %v1219_v4 = vpack.c.bf16 %v697_v0, %v697_v0  ;;  %v1300_v5 = vpop.f32.mrb[4].mxu0  ;;  %v1332_v6 = vpop.f32.mrb[4].mxu1 }
  0xee   :  { %988 = vst.msk [vmem:[%s1890_s3 + $0xc] sm:$0xf] %vm984_vm1, %v1189_v1  ;;  %1020 = vst.msk [vmem:[%s1890_s3 + $0x8c] sm:$0xf] %vm984_vm1, %v1221_v2  ;;  %v434_v7 = vadd.f32 %v1300_v5, %v1565_v36  ;;  %v562_v8 = vadd.f32 %v1332_v6, %v1565_v36  ;;  %v425_v9 = vpop.f32.mrb[5].mxu0  ;;  %v553_v10 = vpop.f32.mrb[5].mxu1 }
  0xef   :  { %986 = vst.msk [vmem:[%s1890_s3 + $0x4] sm:$0xf] %vm984_vm1, %v1187_v3  ;;  %1018 = vst.msk [vmem:[%s1890_s3 + $0x84] sm:$0xf] %vm984_vm1, %v1219_v4  ;;  %v426_v11 = vadd.f32 %v1565_v36, %v425_v9  ;;  %v554_v12 = vadd.f32 %v1565_v36, %v553_v10  ;;  %v1301_v13 = vpop.f32.mrb[6].mxu0  ;;  %v1333_v14 = vpop.f32.mrb[6].mxu1 }
  0xf0   :  { %v670_v15 = vmax.f32 %v434_v7, 0.0  ;;  %v702_v16 = vmax.f32 %v562_v8, 0.0  ;;  %v437_v17 = vadd.f32 %v1301_v13, %v1565_v36  ;;  %v565_v18 = vadd.f32 %v1333_v14, %v1565_v36  ;;  %v428_v19 = vpop.f32.mrb[7].mxu0  ;;  %v556_v20 = vpop.f32.mrb[7].mxu1 }
  0xf1   :  { %v668_v21 = vmax.f32 %v426_v11, 0.0  ;;  %v700_v22 = vmax.f32 %v554_v12, 0.0  ;;  %v429_v23 = vadd.f32 %v1565_v36, %v428_v19  ;;  %v557_v24 = vadd.f32 %v1565_v36, %v556_v20 }
  0xf2   :  { %v1192_v25 = vpack.c.bf16 %v670_v15, %v670_v15  ;;  %v1224_v26 = vpack.c.bf16 %v702_v16, %v702_v16  ;;  %v671_v27 = vmax.f32 %v437_v17, 0.0  ;;  %v703_v28 = vmax.f32 %v565_v18, 0.0 }
  0xf3   :  { %v1190_v29 = vpack.c.bf16 %v668_v21, %v668_v21  ;;  %v1222_v30 = vpack.c.bf16 %v700_v22, %v700_v22  ;;  %v669_v31 = vmax.f32 %v429_v23, 0.0  ;;  %v701_v32 = vmax.f32 %v557_v24, 0.0 }
  0xf4   :  { %991 = vst.msk [vmem:[%s1890_s3 + $0x18] sm:$0xf] %vm984_vm1, %v1192_v25  ;;  %1023 = vst.msk [vmem:[%s1890_s3 + $0x98] sm:$0xf] %vm984_vm1, %v1224_v26  ;;  %v1193_v33 = vpack.c.bf16 %v671_v27, %v671_v27  ;;  %v1225_v34 = vpack.c.bf16 %v703_v28, %v703_v28 }
  0xf5   :  { %989 = vst.msk [vmem:[%s1890_s3 + $0x10] sm:$0xf] %vm984_vm1, %v1190_v29  ;;  %1021 = vst.msk [vmem:[%s1890_s3 + $0x90] sm:$0xf] %vm984_vm1, %v1222_v30  ;;  %v1191_v35 = vpack.c.bf16 %v669_v31, %v669_v31  ;;  %v1223_v37 = vpack.c.bf16 %v701_v32, %v701_v32  ;;  %v1304_v38 = vpop.f32.mrb[8].mxu0  ;;  %v1336_v39 = vpop.f32.mrb[8].mxu1 }
  0xf6   :  { %992 = vst.msk [vmem:[%s1890_s3 + $0x1c] sm:$0xf] %vm984_vm1, %v1193_v33  ;;  %1024 = vst.msk [vmem:[%s1890_s3 + $0x9c] sm:$0xf] %vm984_vm1, %v1225_v34  ;;  %v450_v40 = vadd.f32 %v1304_v38, %v1565_v36  ;;  %v578_v41 = vadd.f32 %v1336_v39, %v1565_v36  ;;  %v441_v42 = vpop.f32.mrb[9].mxu0  ;;  %v569_v43 = vpop.f32.mrb[9].mxu1 }
  0xf7   :  { %990 = vst.msk [vmem:[%s1890_s3 + $0x14] sm:$0xf] %vm984_vm1, %v1191_v35  ;;  %1022 = vst.msk [vmem:[%s1890_s3 + $0x94] sm:$0xf] %vm984_vm1, %v1223_v37  ;;  %v442_v44 = vadd.f32 %v1565_v36, %v441_v42  ;;  %v570_v45 = vadd.f32 %v1565_v36, %v569_v43  ;;  %v1305_v46 = vpop.f32.mrb[10].mxu0  ;;  %v1337_v47 = vpop.f32.mrb[10].mxu1 }
  0xf8   :  { %v674_v48 = vmax.f32 %v450_v40, 0.0  ;;  %v706_v49 = vmax.f32 %v578_v41, 0.0  ;;  %v453_v50 = vadd.f32 %v1305_v46, %v1565_v36  ;;  %v581_v51 = vadd.f32 %v1337_v47, %v1565_v36  ;;  %v444_v52 = vpop.f32.mrb[11].mxu0  ;;  %v572_v53 = vpop.f32.mrb[11].mxu1 }
  0xf9   :  { %v672_v54 = vmax.f32 %v442_v44, 0.0  ;;  %v704_v55 = vmax.f32 %v570_v45, 0.0  ;;  %v445_v56 = vadd.f32 %v1565_v36, %v444_v52  ;;  %v573_v57 = vadd.f32 %v1565_v36, %v572_v53 }
  0xfa   :  { %v1196_v58 = vpack.c.bf16 %v674_v48, %v674_v48  ;;  %v1228_v59 = vpack.c.bf16 %v706_v49, %v706_v49  ;;  %v675_v60 = vmax.f32 %v453_v50, 0.0  ;;  %v707_v61 = vmax.f32 %v581_v51, 0.0 }
  0xfb   :  { %v1194_v62 = vpack.c.bf16 %v672_v54, %v672_v54  ;;  %v1226_v63 = vpack.c.bf16 %v704_v55, %v704_v55  ;;  %v673_v0 = vmax.f32 %v445_v56, 0.0  ;;  %v705_v1 = vmax.f32 %v573_v57, 0.0 }
  0xfc   :  { %995 = vst.msk [vmem:[%s1890_s3 + $0x28] sm:$0xf] %vm984_vm1, %v1196_v58  ;;  %1027 = vst.msk [vmem:[%s1890_s3 + $0xa8] sm:$0xf] %vm984_vm1, %v1228_v59  ;;  %v1197_v2 = vpack.c.bf16 %v675_v60, %v675_v60  ;;  %v1229_v3 = vpack.c.bf16 %v707_v61, %v707_v61 }
  0xfd   :  { %993 = vst.msk [vmem:[%s1890_s3 + $0x20] sm:$0xf] %vm984_vm1, %v1194_v62  ;;  %1025 = vst.msk [vmem:[%s1890_s3 + $0xa0] sm:$0xf] %vm984_vm1, %v1226_v63  ;;  %v1195_v4 = vpack.c.bf16 %v673_v0, %v673_v0  ;;  %v1227_v5 = vpack.c.bf16 %v705_v1, %v705_v1  ;;  %v1308_v6 = vpop.f32.mrb[12].mxu0  ;;  %v1340_v7 = vpop.f32.mrb[12].mxu1 }
  0xfe   :  { %996 = vst.msk [vmem:[%s1890_s3 + $0x2c] sm:$0xf] %vm984_vm1, %v1197_v2  ;;  %1028 = vst.msk [vmem:[%s1890_s3 + $0xac] sm:$0xf] %vm984_vm1, %v1229_v3  ;;  %v466_v8 = vadd.f32 %v1308_v6, %v1565_v36  ;;  %v594_v9 = vadd.f32 %v1340_v7, %v1565_v36  ;;  %v457_v10 = vpop.f32.mrb[13].mxu0  ;;  %v585_v11 = vpop.f32.mrb[13].mxu1 }
  0xff   :  { %994 = vst.msk [vmem:[%s1890_s3 + $0x24] sm:$0xf] %vm984_vm1, %v1195_v4  ;;  %1026 = vst.msk [vmem:[%s1890_s3 + $0xa4] sm:$0xf] %vm984_vm1, %v1227_v5  ;;  %v458_v12 = vadd.f32 %v1565_v36, %v457_v10  ;;  %v586_v13 = vadd.f32 %v1565_v36, %v585_v11  ;;  %v1309_v14 = vpop.f32.mrb[14].mxu0  ;;  %v1341_v15 = vpop.f32.mrb[14].mxu1 }
 0x100   :  { %v678_v16 = vmax.f32 %v466_v8, 0.0  ;;  %v710_v17 = vmax.f32 %v594_v9, 0.0  ;;  %v469_v18 = vadd.f32 %v1309_v14, %v1565_v36  ;;  %v597_v19 = vadd.f32 %v1341_v15, %v1565_v36  ;;  %v460_v20 = vpop.f32.mrb[15].mxu0  ;;  %v588_v21 = vpop.f32.mrb[15].mxu1 }
 0x101   :  { %v676_v22 = vmax.f32 %v458_v12, 0.0  ;;  %v708_v23 = vmax.f32 %v586_v13, 0.0  ;;  %v461_v24 = vadd.f32 %v1565_v36, %v460_v20  ;;  %v589_v25 = vadd.f32 %v1565_v36, %v588_v21 }
 0x102   :  { %v1200_v26 = vpack.c.bf16 %v678_v16, %v678_v16  ;;  %v1232_v27 = vpack.c.bf16 %v710_v17, %v710_v17  ;;  %v679_v28 = vmax.f32 %v469_v18, 0.0  ;;  %v711_v29 = vmax.f32 %v597_v19, 0.0 }
 0x103   :  { %v1198_v30 = vpack.c.bf16 %v676_v22, %v676_v22  ;;  %v1230_v31 = vpack.c.bf16 %v708_v23, %v708_v23  ;;  %v677_v32 = vmax.f32 %v461_v24, 0.0  ;;  %v709_v33 = vmax.f32 %v589_v25, 0.0 }
 0x104   :  { %999 = vst.msk [vmem:[%s1890_s3 + $0x38] sm:$0xf] %vm984_vm1, %v1200_v26  ;;  %1031 = vst.msk [vmem:[%s1890_s3 + $0xb8] sm:$0xf] %vm984_vm1, %v1232_v27  ;;  %v1201_v34 = vpack.c.bf16 %v679_v28, %v679_v28  ;;  %v1233_v35 = vpack.c.bf16 %v711_v29, %v711_v29 }
 0x105   :  { %997 = vst.msk [vmem:[%s1890_s3 + $0x30] sm:$0xf] %vm984_vm1, %v1198_v30  ;;  %1029 = vst.msk [vmem:[%s1890_s3 + $0xb0] sm:$0xf] %vm984_vm1, %v1230_v31  ;;  %v1199_v37 = vpack.c.bf16 %v677_v32, %v677_v32  ;;  %v1231_v38 = vpack.c.bf16 %v709_v33, %v709_v33  ;;  %v1312_v39 = vpop.f32.mrb[16].mxu0  ;;  %v1344_v40 = vpop.f32.mrb[16].mxu1 }
 0x106   :  { %1000 = vst.msk [vmem:[%s1890_s3 + $0x3c] sm:$0xf] %vm984_vm1, %v1201_v34  ;;  %1032 = vst.msk [vmem:[%s1890_s3 + $0xbc] sm:$0xf] %vm984_vm1, %v1233_v35  ;;  %v482_v41 = vadd.f32 %v1312_v39, %v1565_v36  ;;  %v610_v42 = vadd.f32 %v1344_v40, %v1565_v36  ;;  %v473_v43 = vpop.f32.mrb[17].mxu0  ;;  %v601_v44 = vpop.f32.mrb[17].mxu1 }
 0x107   :  { %998 = vst.msk [vmem:[%s1890_s3 + $0x34] sm:$0xf] %vm984_vm1, %v1199_v37  ;;  %1030 = vst.msk [vmem:[%s1890_s3 + $0xb4] sm:$0xf] %vm984_vm1, %v1231_v38  ;;  %v474_v45 = vadd.f32 %v1565_v36, %v473_v43  ;;  %v602_v46 = vadd.f32 %v1565_v36, %v601_v44  ;;  %v1313_v47 = vpop.f32.mrb[18].mxu0  ;;  %v1345_v48 = vpop.f32.mrb[18].mxu1 }
 0x108   :  { %v682_v49 = vmax.f32 %v482_v41, 0.0  ;;  %v714_v50 = vmax.f32 %v610_v42, 0.0  ;;  %v485_v51 = vadd.f32 %v1313_v47, %v1565_v36  ;;  %v613_v52 = vadd.f32 %v1345_v48, %v1565_v36  ;;  %v476_v53 = vpop.f32.mrb[19].mxu0  ;;  %v604_v54 = vpop.f32.mrb[19].mxu1 }
 0x109   :  { %v680_v55 = vmax.f32 %v474_v45, 0.0  ;;  %v712_v56 = vmax.f32 %v602_v46, 0.0  ;;  %v477_v57 = vadd.f32 %v1565_v36, %v476_v53  ;;  %v605_v58 = vadd.f32 %v1565_v36, %v604_v54 }
 0x10a   :  { %v1204_v59 = vpack.c.bf16 %v682_v49, %v682_v49  ;;  %v1236_v60 = vpack.c.bf16 %v714_v50, %v714_v50  ;;  %v683_v61 = vmax.f32 %v485_v51, 0.0  ;;  %v715_v62 = vmax.f32 %v613_v52, 0.0 }
 0x10b   :  { %v1202_v63 = vpack.c.bf16 %v680_v55, %v680_v55  ;;  %v1234_v0 = vpack.c.bf16 %v712_v56, %v712_v56  ;;  %v681_v1 = vmax.f32 %v477_v57, 0.0  ;;  %v713_v2 = vmax.f32 %v605_v58, 0.0 }
 0x10c   :  { %1003 = vst.msk [vmem:[%s1890_s3 + $0x48] sm:$0xf] %vm984_vm1, %v1204_v59  ;;  %1035 = vst.msk [vmem:[%s1890_s3 + $0xc8] sm:$0xf] %vm984_vm1, %v1236_v60  ;;  %v1205_v3 = vpack.c.bf16 %v683_v61, %v683_v61  ;;  %v1237_v4 = vpack.c.bf16 %v715_v62, %v715_v62 }
 0x10d   :  { %1001 = vst.msk [vmem:[%s1890_s3 + $0x40] sm:$0xf] %vm984_vm1, %v1202_v63  ;;  %1033 = vst.msk [vmem:[%s1890_s3 + $0xc0] sm:$0xf] %vm984_vm1, %v1234_v0  ;;  %v1203_v5 = vpack.c.bf16 %v681_v1, %v681_v1  ;;  %v1235_v6 = vpack.c.bf16 %v713_v2, %v713_v2  ;;  %v1316_v7 = vpop.f32.mrb[20].mxu0  ;;  %v1348_v8 = vpop.f32.mrb[20].mxu1 }
 0x10e   :  { %1004 = vst.msk [vmem:[%s1890_s3 + $0x4c] sm:$0xf] %vm984_vm1, %v1205_v3  ;;  %1036 = vst.msk [vmem:[%s1890_s3 + $0xcc] sm:$0xf] %vm984_vm1, %v1237_v4  ;;  %v498_v9 = vadd.f32 %v1316_v7, %v1565_v36  ;;  %v626_v10 = vadd.f32 %v1348_v8, %v1565_v36  ;;  %v489_v11 = vpop.f32.mrb[21].mxu0  ;;  %v617_v12 = vpop.f32.mrb[21].mxu1 }
 0x10f   :  { %1002 = vst.msk [vmem:[%s1890_s3 + $0x44] sm:$0xf] %vm984_vm1, %v1203_v5  ;;  %1034 = vst.msk [vmem:[%s1890_s3 + $0xc4] sm:$0xf] %vm984_vm1, %v1235_v6  ;;  %v490_v13 = vadd.f32 %v1565_v36, %v489_v11  ;;  %v618_v14 = vadd.f32 %v1565_v36, %v617_v12  ;;  %v1317_v15 = vpop.f32.mrb[22].mxu0  ;;  %v1349_v16 = vpop.f32.mrb[22].mxu1 }
 0x110   :  { %v686_v17 = vmax.f32 %v498_v9, 0.0  ;;  %v718_v18 = vmax.f32 %v626_v10, 0.0  ;;  %v501_v19 = vadd.f32 %v1317_v15, %v1565_v36  ;;  %v629_v20 = vadd.f32 %v1349_v16, %v1565_v36  ;;  %v492_v21 = vpop.f32.mrb[23].mxu0  ;;  %v620_v22 = vpop.f32.mrb[23].mxu1 }
 0x111   :  { %v684_v23 = vmax.f32 %v490_v13, 0.0  ;;  %v716_v24 = vmax.f32 %v618_v14, 0.0  ;;  %v493_v25 = vadd.f32 %v1565_v36, %v492_v21  ;;  %v621_v26 = vadd.f32 %v1565_v36, %v620_v22 }
 0x112   :  { %v1208_v27 = vpack.c.bf16 %v686_v17, %v686_v17  ;;  %v1240_v28 = vpack.c.bf16 %v718_v18, %v718_v18  ;;  %v687_v29 = vmax.f32 %v501_v19, 0.0  ;;  %v719_v30 = vmax.f32 %v629_v20, 0.0 }
 0x113   :  { %v1206_v31 = vpack.c.bf16 %v684_v23, %v684_v23  ;;  %v1238_v32 = vpack.c.bf16 %v716_v24, %v716_v24  ;;  %v685_v33 = vmax.f32 %v493_v25, 0.0  ;;  %v717_v34 = vmax.f32 %v621_v26, 0.0 }
 0x114   :  { %1007 = vst.msk [vmem:[%s1890_s3 + $0x58] sm:$0xf] %vm984_vm1, %v1208_v27  ;;  %1039 = vst.msk [vmem:[%s1890_s3 + $0xd8] sm:$0xf] %vm984_vm1, %v1240_v28  ;;  %v1209_v35 = vpack.c.bf16 %v687_v29, %v687_v29  ;;  %v1241_v37 = vpack.c.bf16 %v719_v30, %v719_v30 }
 0x115   :  { %1005 = vst.msk [vmem:[%s1890_s3 + $0x50] sm:$0xf] %vm984_vm1, %v1206_v31  ;;  %1037 = vst.msk [vmem:[%s1890_s3 + $0xd0] sm:$0xf] %vm984_vm1, %v1238_v32  ;;  %v1207_v38 = vpack.c.bf16 %v685_v33, %v685_v33  ;;  %v1239_v39 = vpack.c.bf16 %v717_v34, %v717_v34  ;;  %v1320_v40 = vpop.f32.mrb[24].mxu0  ;;  %v1352_v41 = vpop.f32.mrb[24].mxu1 }
 0x116   :  { %1008 = vst.msk [vmem:[%s1890_s3 + $0x5c] sm:$0xf] %vm984_vm1, %v1209_v35  ;;  %1040 = vst.msk [vmem:[%s1890_s3 + $0xdc] sm:$0xf] %vm984_vm1, %v1241_v37  ;;  %v514_v42 = vadd.f32 %v1320_v40, %v1565_v36  ;;  %v642_v43 = vadd.f32 %v1352_v41, %v1565_v36  ;;  %v505_v44 = vpop.f32.mrb[25].mxu0  ;;  %v633_v45 = vpop.f32.mrb[25].mxu1 }
 0x117   :  { %1006 = vst.msk [vmem:[%s1890_s3 + $0x54] sm:$0xf] %vm984_vm1, %v1207_v38  ;;  %1038 = vst.msk [vmem:[%s1890_s3 + $0xd4] sm:$0xf] %vm984_vm1, %v1239_v39  ;;  %v506_v46 = vadd.f32 %v1565_v36, %v505_v44  ;;  %v634_v47 = vadd.f32 %v1565_v36, %v633_v45  ;;  %v1321_v48 = vpop.f32.mrb[26].mxu0  ;;  %v1353_v49 = vpop.f32.mrb[26].mxu1 }
 0x118   :  { %v690_v50 = vmax.f32 %v514_v42, 0.0  ;;  %v722_v51 = vmax.f32 %v642_v43, 0.0  ;;  %v517_v52 = vadd.f32 %v1321_v48, %v1565_v36  ;;  %v645_v53 = vadd.f32 %v1353_v49, %v1565_v36  ;;  %v508_v54 = vpop.f32.mrb[27].mxu0  ;;  %v636_v55 = vpop.f32.mrb[27].mxu1 }
 0x119   :  { %v688_v56 = vmax.f32 %v506_v46, 0.0  ;;  %v720_v57 = vmax.f32 %v634_v47, 0.0  ;;  %v509_v58 = vadd.f32 %v1565_v36, %v508_v54  ;;  %v637_v59 = vadd.f32 %v1565_v36, %v636_v55 }
 0x11a   :  { %v1212_v60 = vpack.c.bf16 %v690_v50, %v690_v50  ;;  %v1244_v61 = vpack.c.bf16 %v722_v51, %v722_v51  ;;  %v691_v62 = vmax.f32 %v517_v52, 0.0  ;;  %v723_v63 = vmax.f32 %v645_v53, 0.0 }
 0x11b   :  { %v1210_v0 = vpack.c.bf16 %v688_v56, %v688_v56  ;;  %v1242_v1 = vpack.c.bf16 %v720_v57, %v720_v57  ;;  %v689_v2 = vmax.f32 %v509_v58, 0.0  ;;  %v721_v3 = vmax.f32 %v637_v59, 0.0 }
 0x11c   :  { %1011 = vst.msk [vmem:[%s1890_s3 + $0x68] sm:$0xf] %vm984_vm1, %v1212_v60  ;;  %1043 = vst.msk [vmem:[%s1890_s3 + $0xe8] sm:$0xf] %vm984_vm1, %v1244_v61  ;;  %v1213_v4 = vpack.c.bf16 %v691_v62, %v691_v62  ;;  %v1245_v5 = vpack.c.bf16 %v723_v63, %v723_v63 }
 0x11d   :  { %1009 = vst.msk [vmem:[%s1890_s3 + $0x60] sm:$0xf] %vm984_vm1, %v1210_v0  ;;  %1041 = vst.msk [vmem:[%s1890_s3 + $0xe0] sm:$0xf] %vm984_vm1, %v1242_v1  ;;  %v1211_v6 = vpack.c.bf16 %v689_v2, %v689_v2  ;;  %v1243_v7 = vpack.c.bf16 %v721_v3, %v721_v3  ;;  %v1324_v8 = vpop.f32.mrb[28].mxu0  ;;  %v1356_v9 = vpop.f32.mrb[28].mxu1 }
 0x11e   :  { %1012 = vst.msk [vmem:[%s1890_s3 + $0x6c] sm:$0xf] %vm984_vm1, %v1213_v4  ;;  %1044 = vst.msk [vmem:[%s1890_s3 + $0xec] sm:$0xf] %vm984_vm1, %v1245_v5  ;;  %v530_v10 = vadd.f32 %v1324_v8, %v1565_v36  ;;  %v658_v11 = vadd.f32 %v1356_v9, %v1565_v36  ;;  %v521_v12 = vpop.f32.mrb[29].mxu0  ;;  %v649_v13 = vpop.f32.mrb[29].mxu1 }
 0x11f   :  { %1010 = vst.msk [vmem:[%s1890_s3 + $0x64] sm:$0xf] %vm984_vm1, %v1211_v6  ;;  %1042 = vst.msk [vmem:[%s1890_s3 + $0xe4] sm:$0xf] %vm984_vm1, %v1243_v7  ;;  %v522_v14 = vadd.f32 %v1565_v36, %v521_v12  ;;  %v650_v15 = vadd.f32 %v1565_v36, %v649_v13  ;;  %v1325_v16 = vpop.f32.mrb[30].mxu0  ;;  %v1357_v17 = vpop.f32.mrb[30].mxu1 }
 0x120   :  { %v694_v18 = vmax.f32 %v530_v10, 0.0  ;;  %v726_v19 = vmax.f32 %v658_v11, 0.0  ;;  %v533_v20 = vadd.f32 %v1325_v16, %v1565_v36  ;;  %v661_v21 = vadd.f32 %v1357_v17, %v1565_v36  ;;  %v524_v22 = vpop.f32.mrb[31].mxu0  ;;  %v652_v23 = vpop.f32.mrb[31].mxu1 }
 0x121   :  { %v692_v24 = vmax.f32 %v522_v14, 0.0  ;;  %v724_v25 = vmax.f32 %v650_v15, 0.0  ;;  %v525_v26 = vadd.f32 %v1565_v36, %v524_v22  ;;  %v653_v27 = vadd.f32 %v1565_v36, %v652_v23 }
 0x122   :  { %v1216_v28 = vpack.c.bf16 %v694_v18, %v694_v18  ;;  %v1248_v29 = vpack.c.bf16 %v726_v19, %v726_v19  ;;  %v695_v30 = vmax.f32 %v533_v20, 0.0  ;;  %v727_v31 = vmax.f32 %v661_v21, 0.0 }
 0x123   :  { %v1214_v32 = vpack.c.bf16 %v692_v24, %v692_v24  ;;  %v1246_v33 = vpack.c.bf16 %v724_v25, %v724_v25  ;;  %v693_v34 = vmax.f32 %v525_v26, 0.0  ;;  %v725_v35 = vmax.f32 %v653_v27, 0.0 }
 0x124   :  { %1015 = vst.msk [vmem:[%s1890_s3 + $0x78] sm:$0xf] %vm984_vm1, %v1216_v28  ;;  %1047 = vst.msk [vmem:[%s1890_s3 + $0xf8] sm:$0xf] %vm984_vm1, %v1248_v29  ;;  %v1217_v37 = vpack.c.bf16 %v695_v30, %v695_v30  ;;  %v1249_v36 = vpack.c.bf16 %v727_v31, %v727_v31 }
 0x125   :  { %1013 = vst.msk [vmem:[%s1890_s3 + $0x70] sm:$0xf] %vm984_vm1, %v1214_v32  ;;  %1045 = vst.msk [vmem:[%s1890_s3 + $0xf0] sm:$0xf] %vm984_vm1, %v1246_v33  ;;  %v1215_v38 = vpack.c.bf16 %v693_v34, %v693_v34  ;;  %v1247_v39 = vpack.c.bf16 %v725_v35, %v725_v35 }
 0x126   :  { %1016 = vst.msk [vmem:[%s1890_s3 + $0x7c] sm:$0xf] %vm984_vm1, %v1217_v37  ;;  %1048 = vst.msk [vmem:[%s1890_s3 + $0xfc] sm:$0xf] %vm984_vm1, %v1249_v36 }
 0x127   :  { %1014 = vst.msk [vmem:[%s1890_s3 + $0x74] sm:$0xf] %vm984_vm1, %v1215_v38  ;;  %1046 = vst.msk [vmem:[%s1890_s3 + $0xf4] sm:$0xf] %vm984_vm1, %v1247_v39 }

// kernel: cifar_sencoder_forward.5
= control target key start
LH: loop header
LB: loop body
LE: loop exit
PB: predicated region body
PF: predicated region fallthrough
CT: control target
= control target key end

     0   :  { %vm744_vm0 = vcmask 519168   ;;  %s1367_s1 = inlined_call_operand.vmem [shape: bf16[512,64], index: 1, kind: input, shape index: {}]   ;;  %s1368_s0 = inlined_call_operand.vmem [shape: bf16[128,512], index: 0, kind: input, shape index: {}]   ;;  %s1369_s2 = inlined_call_operand.vmem [shape: f32[1,64], index: 2, kind: input, shape index: {}]   ;;  %s1370_s3 = inlined_call_operand.vmem [shape: bf16[128,64], index: 3, kind: output, shape index: {}]  }
   0x1   :  { %v990_v0 = vld [vmem:[%s1367_s1 + $0x40] sm:$0xff]   ;;  %v994_v4 = vld [vmem:[%s1367_s1 + $0x48] sm:$0xff]   ;;  %v998_v8 = vld [vmem:[%s1367_s1 + $0x50] sm:$0xff]  }
   0x2   :  { %v991_v1 = vld [vmem:[%s1367_s1 + $0xc0] sm:$0xff]   ;;  %862 = vmatprep.subr.bf16.mxu0 %v990_v0  ;;  %v995_v5 = vld [vmem:[%s1367_s1 + $0xc8] sm:$0xff]   ;;  %v999_v9 = vld [vmem:[%s1367_s1 + $0xd0] sm:$0xff]  }
   0x3   :  { %v992_v2 = vld [vmem:[%s1367_s1] sm:$0xff]   ;;  %926 = vmatprep.subr.bf16.mxu1 %v991_v1  ;;  %v996_v6 = vld [vmem:[%s1367_s1 + $0x8] sm:$0xff]   ;;  %v1000_v10 = vld [vmem:[%s1367_s1 + $0x10] sm:$0xff]  }
   0x4   :  { %v993_v3 = vld [vmem:[%s1367_s1 + $0x80] sm:$0xff]   ;;  %863 = vmatpush3.bf16.msra.mxu0 %v992_v2  ;;  %v997_v7 = vld [vmem:[%s1367_s1 + $0x88] sm:$0xff]   ;;  %v1001_v11 = vld [vmem:[%s1367_s1 + $0x90] sm:$0xff]  }
   0x5   :  { %927 = vmatpush3.bf16.msra.mxu1 %v993_v3  ;;  %864 = vmatprep.subr.bf16.mxu0 %v994_v4  ;;  %v1002_v12 = vld [vmem:[%s1367_s1 + $0x58] sm:$0xff]   ;;  %v1006_v16 = vld [vmem:[%s1367_s1 + $0x60] sm:$0xff]   ;;  %v1010_v20 = vld [vmem:[%s1367_s1 + $0x68] sm:$0xff]  }
   0x6   :  { %928 = vmatprep.subr.bf16.mxu1 %v995_v5  ;;  %v1003_v13 = vld [vmem:[%s1367_s1 + $0xd8] sm:$0xff]   ;;  %v1007_v17 = vld [vmem:[%s1367_s1 + $0xe0] sm:$0xff]   ;;  %v1011_v21 = vld [vmem:[%s1367_s1 + $0xe8] sm:$0xff]  }
   0x7   :  { %v1004_v14 = vld [vmem:[%s1367_s1 + $0x18] sm:$0xff]   ;;  %v1008_v18 = vld [vmem:[%s1367_s1 + $0x20] sm:$0xff]   ;;  %v1012_v22 = vld [vmem:[%s1367_s1 + $0x28] sm:$0xff]  }
   0x8   :  { %865 = vmatpush3.bf16.msra.mxu0 %v996_v6  ;;  %v1005_v15 = vld [vmem:[%s1367_s1 + $0x98] sm:$0xff]   ;;  %v1009_v19 = vld [vmem:[%s1367_s1 + $0xa0] sm:$0xff]   ;;  %v1013_v23 = vld [vmem:[%s1367_s1 + $0xa8] sm:$0xff]  }
   0x9   :  { %929 = vmatpush3.bf16.msra.mxu1 %v997_v7  ;;  %866 = vmatprep.subr.bf16.mxu0 %v998_v8  ;;  %v1014_v24 = vld [vmem:[%s1367_s1 + $0x70] sm:$0xff]   ;;  %v1018_v28 = vld [vmem:[%s1367_s1 + $0x78] sm:$0xff]   ;;  %v1285_v2 = vld [vmem:[%s1369_s2] ss:$0 sm:$0xff] }
   0xa   :  { %930 = vmatprep.subr.bf16.mxu1 %v999_v9  ;;  %v1015_v25 = vld [vmem:[%s1367_s1 + $0xf0] sm:$0xff]   ;;  %v1019_v29 = vld [vmem:[%s1367_s1 + $0xf8] sm:$0xff]  }
   0xb   :  { %v1016_v26 = vld [vmem:[%s1367_s1 + $0x30] sm:$0xff]   ;;  %v1020_v30 = vld [vmem:[%s1367_s1 + $0x38] sm:$0xff]  }
   0xc   :  { %867 = vmatpush3.bf16.msra.mxu0 %v1000_v10  ;;  %v1017_v27 = vld [vmem:[%s1367_s1 + $0xb0] sm:$0xff]   ;;  %v1021_v31 = vld [vmem:[%s1367_s1 + $0xb8] sm:$0xff]  }
   0xd   :  { %931 = vmatpush3.bf16.msra.mxu1 %v1001_v11  ;;  %868 = vmatprep.subr.bf16.mxu0 %v1002_v12  ;;  %v1022_v32 = vld [vmem:[%s1368_s0] ss:$16 sps:$4 sm:$0xff]   ;;  %v1024_v33 = vld [vmem:[%s1368_s0 + $0x4] ss:$16 sps:$4 sm:$0xff]   ;;  %v1025_v34 = vld [vmem:[%s1368_s0 + $0x8] ss:$16 sps:$4 sm:$0xff]  }
   0xe   :  { %932 = vmatprep.subr.bf16.mxu1 %v1003_v13  ;;  %v1027_v35 = vld [vmem:[%s1368_s0 + $0xc] ss:$16 sps:$4 sm:$0xff]   ;;  %502 = vmatprep.mubr.bf16.mxu0 %v1024_v33  ;;  %v1028_v36 = vld [vmem:[%s1368_s0 + $0x24] ss:$16 sps:$4 sm:$0xff]   ;;  %v1032_v38 = vld [vmem:[%s1368_s0 + $0x20] ss:$16 sps:$4 sm:$0xff]  }
   0xf   :  { %599 = vmatprep.mubr.bf16.mxu1 %v1027_v35  ;;  %v1030_v37 = vld [vmem:[%s1368_s0 + $0x2c] ss:$16 sps:$4 sm:$0xff]   ;;  %v1033_v39 = vld [vmem:[%s1368_s0 + $0x28] ss:$16 sps:$4 sm:$0xff]   ;;  %v1034_v40 = vld [vmem:[%s1368_s0 + $0x44] ss:$16 sps:$4 sm:$0xff]  }
  0x10   :  { %869 = vmatpush3.bf16.msra.mxu0 %v1004_v14  ;;  %v1036_v41 = vld [vmem:[%s1368_s0 + $0x4c] ss:$16 sps:$4 sm:$0xff]   ;;  %v1038_v42 = vld [vmem:[%s1368_s0 + $0x40] ss:$16 sps:$4 sm:$0xff]   ;;  %v1039_v43 = vld [vmem:[%s1368_s0 + $0x48] ss:$16 sps:$4 sm:$0xff]  }
  0x11   :  { %933 = vmatpush3.bf16.msra.mxu1 %v1005_v15  ;;  %870 = vmatprep.subr.bf16.mxu0 %v1006_v16  ;;  %v1040_v44 = vld [vmem:[%s1368_s0 + $0x64] ss:$16 sps:$4 sm:$0xff]   ;;  %v1042_v45 = vld [vmem:[%s1368_s0 + $0x6c] ss:$16 sps:$4 sm:$0xff]   ;;  %v1044_v46 = vld [vmem:[%s1368_s0 + $0x60] ss:$16 sps:$4 sm:$0xff]  }
  0x12   :  { %934 = vmatprep.subr.bf16.mxu1 %v1007_v17  ;;  %v1045_v47 = vld [vmem:[%s1368_s0 + $0x68] ss:$16 sps:$4 sm:$0xff]   ;;  %v1046_v48 = vld [vmem:[%s1368_s0 + $0x84] ss:$16 sps:$4 sm:$0xff]   ;;  %v1048_v49 = vld [vmem:[%s1368_s0 + $0x8c] ss:$16 sps:$4 sm:$0xff]  }
  0x13   :  { %v1050_v50 = vld [vmem:[%s1368_s0 + $0x80] ss:$16 sps:$4 sm:$0xff]   ;;  %v1051_v51 = vld [vmem:[%s1368_s0 + $0x88] ss:$16 sps:$4 sm:$0xff]   ;;  %v1052_v52 = vld [vmem:[%s1368_s0 + $0xa4] ss:$16 sps:$4 sm:$0xff]  }
  0x14   :  { %871 = vmatpush3.bf16.msra.mxu0 %v1008_v18  ;;  %v1054_v53 = vld [vmem:[%s1368_s0 + $0xac] ss:$16 sps:$4 sm:$0xff]   ;;  %v1056_v54 = vld [vmem:[%s1368_s0 + $0xa0] ss:$16 sps:$4 sm:$0xff]   ;;  %v1057_v55 = vld [vmem:[%s1368_s0 + $0xa8] ss:$16 sps:$4 sm:$0xff]  }
  0x15   :  { %935 = vmatpush3.bf16.msra.mxu1 %v1009_v19  ;;  %872 = vmatprep.subr.bf16.mxu0 %v1010_v20  ;;  %v1058_v56 = vld [vmem:[%s1368_s0 + $0xc4] ss:$16 sps:$4 sm:$0xff]   ;;  %v1060_v57 = vld [vmem:[%s1368_s0 + $0xcc] ss:$16 sps:$4 sm:$0xff]   ;;  %v1062_v58 = vld [vmem:[%s1368_s0 + $0xc0] ss:$16 sps:$4 sm:$0xff]  }
  0x16   :  { %936 = vmatprep.subr.bf16.mxu1 %v1011_v21  ;;  %v1063_v59 = vld [vmem:[%s1368_s0 + $0xc8] ss:$16 sps:$4 sm:$0xff]   ;;  %v1064_v60 = vld [vmem:[%s1368_s0 + $0xe4] ss:$16 sps:$4 sm:$0xff]   ;;  %v1066_v61 = vld [vmem:[%s1368_s0 + $0xec] ss:$16 sps:$4 sm:$0xff]  }
  0x17   :  { %v1068_v62 = vld [vmem:[%s1368_s0 + $0xe0] ss:$16 sps:$4 sm:$0xff]   ;;  %v1069_v63 = vld [vmem:[%s1368_s0 + $0xe8] ss:$16 sps:$4 sm:$0xff]  }
  0x18   :  { %873 = vmatpush3.bf16.msra.mxu0 %v1012_v22 }
  0x19   :  { %937 = vmatpush3.bf16.msra.mxu1 %v1013_v23  ;;  %874 = vmatprep.subr.bf16.mxu0 %v1014_v24 }
  0x1a   :  { %938 = vmatprep.subr.bf16.mxu1 %v1015_v25 }
  0x1c   :  { %875 = vmatpush3.bf16.msra.mxu0 %v1016_v26 }
  0x1d   :  { %939 = vmatpush3.bf16.msra.mxu1 %v1017_v27  ;;  %876 = vmatprep.subr.bf16.mxu0 %v1018_v28 }
  0x1e   :  { %940 = vmatprep.subr.bf16.mxu1 %v1019_v29 }
  0x20   :  { %877 = vmatpush3.bf16.msra.mxu0 %v1020_v30 }
  0x21   :  { %941 = vmatpush3.bf16.msra.mxu1 %v1021_v31 }
  0x23   :  { %503 = vmatmul.mubr.bf16.vlgmr.msra.gmra.mrb[0].mxu0 %v1022_v32 }
  0x24   :  { %600 = vmatmul.mubr.bf16.vlgmr.msra.gmra.mrb[0].mxu1 %v1025_v34  ;;  %510 = vmatprep.mubr.bf16.mxu0 %v1028_v36 }
  0x25   :  { %607 = vmatprep.mubr.bf16.mxu1 %v1030_v37 }
  0x2b   :  { %511 = vmatmul.mubr.bf16.gmra.mrb[4].mxu0 %v1032_v38 }
  0x2c   :  { %608 = vmatmul.mubr.bf16.gmra.mrb[4].mxu1 %v1033_v39  ;;  %518 = vmatprep.mubr.bf16.mxu0 %v1034_v40 }
  0x2d   :  { %615 = vmatprep.mubr.bf16.mxu1 %v1036_v41 }
  0x33   :  { %519 = vmatmul.mubr.bf16.gmra.mrb[8].mxu0 %v1038_v42 }
  0x34   :  { %616 = vmatmul.mubr.bf16.gmra.mrb[8].mxu1 %v1039_v43  ;;  %526 = vmatprep.mubr.bf16.mxu0 %v1040_v44 }
  0x35   :  { %623 = vmatprep.mubr.bf16.mxu1 %v1042_v45 }
  0x3b   :  { %527 = vmatmul.mubr.bf16.gmra.mrb[12].mxu0 %v1044_v46 }
  0x3c   :  { %624 = vmatmul.mubr.bf16.gmra.mrb[12].mxu1 %v1045_v47  ;;  %534 = vmatprep.mubr.bf16.mxu0 %v1046_v48 }
  0x3d   :  { %631 = vmatprep.mubr.bf16.mxu1 %v1048_v49 }
  0x43   :  { %535 = vmatmul.mubr.bf16.gmra.mrb[16].mxu0 %v1050_v50 }
  0x44   :  { %632 = vmatmul.mubr.bf16.gmra.mrb[16].mxu1 %v1051_v51  ;;  %542 = vmatprep.mubr.bf16.mxu0 %v1052_v52 }
  0x45   :  { %639 = vmatprep.mubr.bf16.mxu1 %v1054_v53 }
  0x4b   :  { %543 = vmatmul.mubr.bf16.gmra.mrb[20].mxu0 %v1056_v54 }
  0x4c   :  { %640 = vmatmul.mubr.bf16.gmra.mrb[20].mxu1 %v1057_v55  ;;  %550 = vmatprep.mubr.bf16.mxu0 %v1058_v56 }
  0x4d   :  { %647 = vmatprep.mubr.bf16.mxu1 %v1060_v57 }
  0x53   :  { %551 = vmatmul.mubr.bf16.gmra.mrb[24].mxu0 %v1062_v58 }
  0x54   :  { %648 = vmatmul.mubr.bf16.gmra.mrb[24].mxu1 %v1063_v59  ;;  %558 = vmatprep.mubr.bf16.mxu0 %v1064_v60 }
  0x55   :  { %655 = vmatprep.mubr.bf16.mxu1 %v1066_v61 }
  0x5b   :  { %559 = vmatmul.mubr.bf16.gmra.mrb[28].mxu0 %v1068_v62 }
  0x5c   :  { %656 = vmatmul.mubr.bf16.gmra.mrb[28].mxu1 %v1069_v63 }
  0xf6   :  { %v878_v0 = vpop.f32.mrb[0].mxu0 }
  0xf7   :  { %v942_v1 = vpop.f32.mrb[0].mxu1  ;;  %v879_v3 = vpop.f32.mrb[1].mxu0 }
  0xf8   :  { %v880_v4 = vadd.f32 %v879_v3, %v878_v0  ;;  %v943_v5 = vpop.f32.mrb[1].mxu1  ;;  %v881_v6 = vpop.f32.mrb[2].mxu0 }
  0xf9   :  { %v944_v7 = vadd.f32 %v943_v5, %v942_v1  ;;  %v945_v8 = vpop.f32.mrb[2].mxu1  ;;  %v882_v9 = vpop.f32.mrb[3].mxu0 }
  0xfa   :  { %v505_v10 = vadd.f32 %v880_v4, %v1285_v2  ;;  %v883_v11 = vadd.f32 %v882_v9, %v881_v6  ;;  %v946_v12 = vpop.f32.mrb[3].mxu1 }
  0xfb   :  { %v947_v13 = vadd.f32 %v946_v12, %v945_v8 }
  0xfc   :  { %v602_v14 = vadd.f32 %v944_v7, %v505_v10  ;;  %v508_v15 = vadd.f32 %v883_v11, %v1285_v2 }
  0xfe   :  { %v664_v16 = vmax.f32 %v602_v14, 0.0  ;;  %v605_v17 = vadd.f32 %v947_v13, %v508_v15  ;;  %v884_v18 = vpop.f32.mrb[4].mxu0 }
  0xff   :  { %v948_v19 = vpop.f32.mrb[4].mxu1  ;;  %v885_v20 = vpop.f32.mrb[5].mxu0 }
 0x100   :  { %v846_v21 = vpack.c.bf16 %v664_v16, %v664_v16  ;;  %v665_v22 = vmax.f32 %v605_v17, 0.0  ;;  %v886_v23 = vadd.f32 %v885_v20, %v884_v18  ;;  %v949_v24 = vpop.f32.mrb[5].mxu1  ;;  %v887_v25 = vpop.f32.mrb[6].mxu0 }
 0x101   :  { %v950_v26 = vadd.f32 %v949_v24, %v948_v19  ;;  %v951_v27 = vpop.f32.mrb[6].mxu1  ;;  %v888_v28 = vpop.f32.mrb[7].mxu0 }
 0x102   :  { %745 = vst.msk [vmem:[%s1370_s3] sm:$0xf] %vm744_vm0, %v846_v21  ;;  %v847_v29 = vpack.c.bf16 %v665_v22, %v665_v22  ;;  %v513_v30 = vadd.f32 %v886_v23, %v1285_v2  ;;  %v889_v31 = vadd.f32 %v888_v28, %v887_v25  ;;  %v952_v32 = vpop.f32.mrb[7].mxu1 }
 0x103   :  { %v953_v33 = vadd.f32 %v952_v32, %v951_v27 }
 0x104   :  { %746 = vst.msk [vmem:[%s1370_s3 + $0x4] sm:$0xf] %vm744_vm0, %v847_v29  ;;  %v610_v34 = vadd.f32 %v950_v26, %v513_v30  ;;  %v516_v35 = vadd.f32 %v889_v31, %v1285_v2 }
 0x106   :  { %v666_v36 = vmax.f32 %v610_v34, 0.0  ;;  %v613_v37 = vadd.f32 %v953_v33, %v516_v35  ;;  %v890_v38 = vpop.f32.mrb[8].mxu0 }
 0x107   :  { %v954_v39 = vpop.f32.mrb[8].mxu1  ;;  %v891_v40 = vpop.f32.mrb[9].mxu0 }
 0x108   :  { %v848_v41 = vpack.c.bf16 %v666_v36, %v666_v36  ;;  %v667_v42 = vmax.f32 %v613_v37, 0.0  ;;  %v892_v43 = vadd.f32 %v891_v40, %v890_v38  ;;  %v955_v44 = vpop.f32.mrb[9].mxu1  ;;  %v893_v45 = vpop.f32.mrb[10].mxu0 }
 0x109   :  { %v956_v46 = vadd.f32 %v955_v44, %v954_v39  ;;  %v957_v47 = vpop.f32.mrb[10].mxu1  ;;  %v894_v48 = vpop.f32.mrb[11].mxu0 }
 0x10a   :  { %747 = vst.msk [vmem:[%s1370_s3 + $0x8] sm:$0xf] %vm744_vm0, %v848_v41  ;;  %v849_v49 = vpack.c.bf16 %v667_v42, %v667_v42  ;;  %v521_v50 = vadd.f32 %v892_v43, %v1285_v2  ;;  %v895_v51 = vadd.f32 %v894_v48, %v893_v45  ;;  %v958_v52 = vpop.f32.mrb[11].mxu1 }
 0x10b   :  { %v959_v53 = vadd.f32 %v958_v52, %v957_v47 }
 0x10c   :  { %748 = vst.msk [vmem:[%s1370_s3 + $0xc] sm:$0xf] %vm744_vm0, %v849_v49  ;;  %v618_v54 = vadd.f32 %v956_v46, %v521_v50  ;;  %v524_v55 = vadd.f32 %v895_v51, %v1285_v2 }
 0x10e   :  { %v668_v56 = vmax.f32 %v618_v54, 0.0  ;;  %v621_v57 = vadd.f32 %v959_v53, %v524_v55  ;;  %v896_v58 = vpop.f32.mrb[12].mxu0 }
 0x10f   :  { %v960_v59 = vpop.f32.mrb[12].mxu1  ;;  %v897_v60 = vpop.f32.mrb[13].mxu0 }
 0x110   :  { %v850_v61 = vpack.c.bf16 %v668_v56, %v668_v56  ;;  %v669_v62 = vmax.f32 %v621_v57, 0.0  ;;  %v898_v63 = vadd.f32 %v897_v60, %v896_v58  ;;  %v961_v0 = vpop.f32.mrb[13].mxu1  ;;  %v899_v1 = vpop.f32.mrb[14].mxu0 }
 0x111   :  { %v962_v3 = vadd.f32 %v961_v0, %v960_v59  ;;  %v963_v4 = vpop.f32.mrb[14].mxu1  ;;  %v900_v5 = vpop.f32.mrb[15].mxu0 }
 0x112   :  { %749 = vst.msk [vmem:[%s1370_s3 + $0x10] sm:$0xf] %vm744_vm0, %v850_v61  ;;  %v851_v6 = vpack.c.bf16 %v669_v62, %v669_v62  ;;  %v529_v7 = vadd.f32 %v898_v63, %v1285_v2  ;;  %v901_v8 = vadd.f32 %v900_v5, %v899_v1  ;;  %v964_v9 = vpop.f32.mrb[15].mxu1 }
 0x113   :  { %v965_v10 = vadd.f32 %v964_v9, %v963_v4 }
 0x114   :  { %750 = vst.msk [vmem:[%s1370_s3 + $0x14] sm:$0xf] %vm744_vm0, %v851_v6  ;;  %v626_v11 = vadd.f32 %v962_v3, %v529_v7  ;;  %v532_v12 = vadd.f32 %v901_v8, %v1285_v2 }
 0x116   :  { %v670_v13 = vmax.f32 %v626_v11, 0.0  ;;  %v629_v14 = vadd.f32 %v965_v10, %v532_v12  ;;  %v902_v15 = vpop.f32.mrb[16].mxu0 }
 0x117   :  { %v966_v16 = vpop.f32.mrb[16].mxu1  ;;  %v903_v17 = vpop.f32.mrb[17].mxu0 }
 0x118   :  { %v852_v18 = vpack.c.bf16 %v670_v13, %v670_v13  ;;  %v671_v19 = vmax.f32 %v629_v14, 0.0  ;;  %v904_v20 = vadd.f32 %v903_v17, %v902_v15  ;;  %v967_v21 = vpop.f32.mrb[17].mxu1  ;;  %v905_v22 = vpop.f32.mrb[18].mxu0 }
 0x119   :  { %v968_v23 = vadd.f32 %v967_v21, %v966_v16  ;;  %v969_v24 = vpop.f32.mrb[18].mxu1  ;;  %v906_v25 = vpop.f32.mrb[19].mxu0 }
 0x11a   :  { %751 = vst.msk [vmem:[%s1370_s3 + $0x18] sm:$0xf] %vm744_vm0, %v852_v18  ;;  %v853_v26 = vpack.c.bf16 %v671_v19, %v671_v19  ;;  %v537_v27 = vadd.f32 %v904_v20, %v1285_v2  ;;  %v907_v28 = vadd.f32 %v906_v25, %v905_v22  ;;  %v970_v29 = vpop.f32.mrb[19].mxu1 }
 0x11b   :  { %v971_v30 = vadd.f32 %v970_v29, %v969_v24 }
 0x11c   :  { %752 = vst.msk [vmem:[%s1370_s3 + $0x1c] sm:$0xf] %vm744_vm0, %v853_v26  ;;  %v634_v31 = vadd.f32 %v968_v23, %v537_v27  ;;  %v540_v32 = vadd.f32 %v907_v28, %v1285_v2 }
 0x11e   :  { %v672_v33 = vmax.f32 %v634_v31, 0.0  ;;  %v637_v34 = vadd.f32 %v971_v30, %v540_v32  ;;  %v908_v35 = vpop.f32.mrb[20].mxu0 }
 0x11f   :  { %v972_v36 = vpop.f32.mrb[20].mxu1  ;;  %v909_v37 = vpop.f32.mrb[21].mxu0 }
 0x120   :  { %v854_v38 = vpack.c.bf16 %v672_v33, %v672_v33  ;;  %v673_v39 = vmax.f32 %v637_v34, 0.0  ;;  %v910_v40 = vadd.f32 %v909_v37, %v908_v35  ;;  %v973_v41 = vpop.f32.mrb[21].mxu1  ;;  %v911_v42 = vpop.f32.mrb[22].mxu0 }
 0x121   :  { %v974_v43 = vadd.f32 %v973_v41, %v972_v36  ;;  %v975_v44 = vpop.f32.mrb[22].mxu1  ;;  %v912_v45 = vpop.f32.mrb[23].mxu0 }
 0x122   :  { %753 = vst.msk [vmem:[%s1370_s3 + $0x20] sm:$0xf] %vm744_vm0, %v854_v38  ;;  %v855_v46 = vpack.c.bf16 %v673_v39, %v673_v39  ;;  %v545_v47 = vadd.f32 %v910_v40, %v1285_v2  ;;  %v913_v48 = vadd.f32 %v912_v45, %v911_v42  ;;  %v976_v49 = vpop.f32.mrb[23].mxu1 }
 0x123   :  { %v977_v50 = vadd.f32 %v976_v49, %v975_v44 }
 0x124   :  { %754 = vst.msk [vmem:[%s1370_s3 + $0x24] sm:$0xf] %vm744_vm0, %v855_v46  ;;  %v642_v51 = vadd.f32 %v974_v43, %v545_v47  ;;  %v548_v52 = vadd.f32 %v913_v48, %v1285_v2 }
 0x126   :  { %v674_v53 = vmax.f32 %v642_v51, 0.0  ;;  %v645_v54 = vadd.f32 %v977_v50, %v548_v52  ;;  %v914_v55 = vpop.f32.mrb[24].mxu0 }
 0x127   :  { %v978_v56 = vpop.f32.mrb[24].mxu1  ;;  %v915_v57 = vpop.f32.mrb[25].mxu0 }
 0x128   :  { %v856_v58 = vpack.c.bf16 %v674_v53, %v674_v53  ;;  %v675_v59 = vmax.f32 %v645_v54, 0.0  ;;  %v916_v60 = vadd.f32 %v915_v57, %v914_v55  ;;  %v979_v61 = vpop.f32.mrb[25].mxu1  ;;  %v917_v62 = vpop.f32.mrb[26].mxu0 }
 0x129   :  { %v980_v63 = vadd.f32 %v979_v61, %v978_v56  ;;  %v981_v0 = vpop.f32.mrb[26].mxu1  ;;  %v918_v1 = vpop.f32.mrb[27].mxu0 }
 0x12a   :  { %755 = vst.msk [vmem:[%s1370_s3 + $0x28] sm:$0xf] %vm744_vm0, %v856_v58  ;;  %v857_v3 = vpack.c.bf16 %v675_v59, %v675_v59  ;;  %v553_v4 = vadd.f32 %v916_v60, %v1285_v2  ;;  %v919_v5 = vadd.f32 %v918_v1, %v917_v62  ;;  %v982_v6 = vpop.f32.mrb[27].mxu1 }
 0x12b   :  { %v983_v7 = vadd.f32 %v982_v6, %v981_v0 }
 0x12c   :  { %756 = vst.msk [vmem:[%s1370_s3 + $0x2c] sm:$0xf] %vm744_vm0, %v857_v3  ;;  %v650_v8 = vadd.f32 %v980_v63, %v553_v4  ;;  %v556_v9 = vadd.f32 %v919_v5, %v1285_v2 }
 0x12e   :  { %v676_v10 = vmax.f32 %v650_v8, 0.0  ;;  %v653_v11 = vadd.f32 %v983_v7, %v556_v9  ;;  %v920_v12 = vpop.f32.mrb[28].mxu0 }
 0x12f   :  { %v984_v13 = vpop.f32.mrb[28].mxu1  ;;  %v921_v14 = vpop.f32.mrb[29].mxu0 }
 0x130   :  { %v858_v15 = vpack.c.bf16 %v676_v10, %v676_v10  ;;  %v677_v16 = vmax.f32 %v653_v11, 0.0  ;;  %v922_v17 = vadd.f32 %v921_v14, %v920_v12  ;;  %v985_v18 = vpop.f32.mrb[29].mxu1  ;;  %v923_v19 = vpop.f32.mrb[30].mxu0 }
 0x131   :  { %v986_v20 = vadd.f32 %v985_v18, %v984_v13  ;;  %v987_v21 = vpop.f32.mrb[30].mxu1  ;;  %v924_v22 = vpop.f32.mrb[31].mxu0 }
 0x132   :  { %757 = vst.msk [vmem:[%s1370_s3 + $0x30] sm:$0xf] %vm744_vm0, %v858_v15  ;;  %v859_v23 = vpack.c.bf16 %v677_v16, %v677_v16  ;;  %v561_v24 = vadd.f32 %v922_v17, %v1285_v2  ;;  %v925_v25 = vadd.f32 %v924_v22, %v923_v19  ;;  %v988_v26 = vpop.f32.mrb[31].mxu1 }
 0x133   :  { %v989_v27 = vadd.f32 %v988_v26, %v987_v21 }
 0x134   :  { %758 = vst.msk [vmem:[%s1370_s3 + $0x34] sm:$0xf] %vm744_vm0, %v859_v23  ;;  %v658_v28 = vadd.f32 %v986_v20, %v561_v24  ;;  %v564_v29 = vadd.f32 %v925_v25, %v1285_v2 }
 0x136   :  { %v678_v30 = vmax.f32 %v658_v28, 0.0  ;;  %v661_v31 = vadd.f32 %v989_v27, %v564_v29 }
 0x138   :  { %v860_v32 = vpack.c.bf16 %v678_v30, %v678_v30  ;;  %v679_v33 = vmax.f32 %v661_v31, 0.0 }
 0x13a   :  { %759 = vst.msk [vmem:[%s1370_s3 + $0x38] sm:$0xf] %vm744_vm0, %v860_v32  ;;  %v861_v34 = vpack.c.bf16 %v679_v33, %v679_v33 }
 0x13c   :  { %760 = vst.msk [vmem:[%s1370_s3 + $0x3c] sm:$0xf] %vm744_vm0, %v861_v34 }

// kernel: cifar_sencoder_forward.6
= control target key start
LH: loop header
LB: loop body
LE: loop exit
PB: predicated region body
PF: predicated region fallthrough
CT: control target
= control target key end

     0   :  { %s1399_s1 = inlined_call_operand.vmem [shape: bf16[1024,128], index: 1, kind: input, shape index: {}]   ;;  %s1400_s0 = inlined_call_operand.vmem [shape: bf16[32,1024], index: 0, kind: input, shape index: {}]   ;;  %s1401_s2 = inlined_call_operand.vmem [shape: f32[1,128], index: 2, kind: input, shape index: {}]   ;;  %s1402_s3 = inlined_call_operand.vmem [shape: bf16[32,128], index: 3, kind: output, shape index: {}]  }
   0x1   :  { %v1066_v0 = vld [vmem:[%s1399_s1 + $0x40] sm:$0xff]   ;;  %v1070_v4 = vld [vmem:[%s1399_s1 + $0x48] sm:$0xff]   ;;  %v1074_v8 = vld [vmem:[%s1399_s1 + $0x50] sm:$0xff]  }
   0x2   :  { %v1067_v1 = vld [vmem:[%s1399_s1 + $0xc0] sm:$0xff]   ;;  %954 = vmatprep.subr.bf16.mxu0 %v1066_v0  ;;  %v1071_v5 = vld [vmem:[%s1399_s1 + $0xc8] sm:$0xff]   ;;  %v1075_v9 = vld [vmem:[%s1399_s1 + $0xd0] sm:$0xff]  }
   0x3   :  { %v1068_v2 = vld [vmem:[%s1399_s1] sm:$0xff]   ;;  %982 = vmatprep.subr.bf16.mxu1 %v1067_v1  ;;  %v1072_v6 = vld [vmem:[%s1399_s1 + $0x8] sm:$0xff]   ;;  %v1076_v10 = vld [vmem:[%s1399_s1 + $0x10] sm:$0xff]  }
   0x4   :  { %v1069_v3 = vld [vmem:[%s1399_s1 + $0x80] sm:$0xff]   ;;  %955 = vmatpush3.bf16.msra.mxu0 %v1068_v2  ;;  %v1073_v7 = vld [vmem:[%s1399_s1 + $0x88] sm:$0xff]   ;;  %v1077_v11 = vld [vmem:[%s1399_s1 + $0x90] sm:$0xff]  }
   0x5   :  { %983 = vmatpush3.bf16.msra.mxu1 %v1069_v3  ;;  %956 = vmatprep.subr.bf16.mxu0 %v1070_v4  ;;  %v1078_v12 = vld [vmem:[%s1399_s1 + $0x58] sm:$0xff]   ;;  %v1082_v16 = vld [vmem:[%s1399_s1 + $0x60] sm:$0xff]   ;;  %v1086_v20 = vld [vmem:[%s1399_s1 + $0x68] sm:$0xff]  }
   0x6   :  { %984 = vmatprep.subr.bf16.mxu1 %v1071_v5  ;;  %v1079_v13 = vld [vmem:[%s1399_s1 + $0xd8] sm:$0xff]   ;;  %v1083_v17 = vld [vmem:[%s1399_s1 + $0xe0] sm:$0xff]   ;;  %v1087_v21 = vld [vmem:[%s1399_s1 + $0xe8] sm:$0xff]  }
   0x7   :  { %v1080_v14 = vld [vmem:[%s1399_s1 + $0x18] sm:$0xff]   ;;  %v1084_v18 = vld [vmem:[%s1399_s1 + $0x20] sm:$0xff]   ;;  %v1088_v22 = vld [vmem:[%s1399_s1 + $0x28] sm:$0xff]  }
   0x8   :  { %957 = vmatpush3.bf16.msra.mxu0 %v1072_v6  ;;  %v1081_v15 = vld [vmem:[%s1399_s1 + $0x98] sm:$0xff]   ;;  %v1085_v19 = vld [vmem:[%s1399_s1 + $0xa0] sm:$0xff]   ;;  %v1089_v23 = vld [vmem:[%s1399_s1 + $0xa8] sm:$0xff]  }
   0x9   :  { %985 = vmatpush3.bf16.msra.mxu1 %v1073_v7  ;;  %958 = vmatprep.subr.bf16.mxu0 %v1074_v8  ;;  %v1090_v24 = vld [vmem:[%s1399_s1 + $0x70] sm:$0xff]   ;;  %v1094_v28 = vld [vmem:[%s1399_s1 + $0x78] sm:$0xff]   ;;  %v15_v32 = vld [vmem:[%s1400_s0] sm:$0xff] }
   0xa   :  { %986 = vmatprep.subr.bf16.mxu1 %v1075_v9  ;;  %v1091_v25 = vld [vmem:[%s1399_s1 + $0xf0] sm:$0xff]   ;;  %v1095_v29 = vld [vmem:[%s1399_s1 + $0xf8] sm:$0xff]   ;;  %v19_v33 = vld [vmem:[%s1400_s0 + $0x20] sm:$0xff] }
   0xb   :  { %v1092_v26 = vld [vmem:[%s1399_s1 + $0x30] sm:$0xff]   ;;  %v1096_v30 = vld [vmem:[%s1399_s1 + $0x38] sm:$0xff]   ;;  %v16_v34 = vld [vmem:[%s1400_s0 + $0x8] sm:$0xff]  ;;  %v855_v35 = vcombine.low %v15_v32, %v19_v33  ;;  %v856_v36 = vcombine.high %v15_v32, %v19_v33 }
   0xc   :  { %959 = vmatpush3.bf16.msra.mxu0 %v1076_v10  ;;  %v1093_v27 = vld [vmem:[%s1399_s1 + $0xb0] sm:$0xff]   ;;  %v1097_v31 = vld [vmem:[%s1399_s1 + $0xb8] sm:$0xff]   ;;  %v20_v37 = vld [vmem:[%s1400_s0 + $0x28] sm:$0xff] }
   0xd   :  { %987 = vmatpush3.bf16.msra.mxu1 %v1077_v11  ;;  %960 = vmatprep.subr.bf16.mxu0 %v1078_v12  ;;  %v857_v38 = vcombine.low %v16_v34, %v20_v37  ;;  %v858_v39 = vcombine.high %v16_v34, %v20_v37  ;;  %v1098_v40 = vld [vmem:[%s1399_s1 + $0x140] sm:$0xff]   ;;  %v1102_v44 = vld [vmem:[%s1399_s1 + $0x148] sm:$0xff]   ;;  %v1106_v48 = vld [vmem:[%s1399_s1 + $0x150] sm:$0xff]  }
   0xe   :  { %988 = vmatprep.subr.bf16.mxu1 %v1079_v13  ;;  %662 = vmatprep.mubr.bf16.mxu0 %v856_v36  ;;  %v1099_v41 = vld [vmem:[%s1399_s1 + $0x1c0] sm:$0xff]   ;;  %v1103_v45 = vld [vmem:[%s1399_s1 + $0x1c8] sm:$0xff]   ;;  %v1107_v49 = vld [vmem:[%s1399_s1 + $0x1d0] sm:$0xff]  }
   0xf   :  { %711 = vmatprep.mubr.bf16.mxu1 %v858_v39  ;;  %v1100_v42 = vld [vmem:[%s1399_s1 + $0x100] sm:$0xff]   ;;  %v1104_v46 = vld [vmem:[%s1399_s1 + $0x108] sm:$0xff]   ;;  %v1108_v50 = vld [vmem:[%s1399_s1 + $0x110] sm:$0xff]  }
  0x10   :  { %961 = vmatpush3.bf16.msra.mxu0 %v1080_v14  ;;  %v1101_v43 = vld [vmem:[%s1399_s1 + $0x180] sm:$0xff]   ;;  %v1105_v47 = vld [vmem:[%s1399_s1 + $0x188] sm:$0xff]   ;;  %v1109_v51 = vld [vmem:[%s1399_s1 + $0x190] sm:$0xff]  }
  0x11   :  { %989 = vmatpush3.bf16.msra.mxu1 %v1081_v15  ;;  %962 = vmatprep.subr.bf16.mxu0 %v1082_v16  ;;  %v1110_v52 = vld [vmem:[%s1399_s1 + $0x158] sm:$0xff]   ;;  %v1114_v56 = vld [vmem:[%s1399_s1 + $0x160] sm:$0xff]   ;;  %v1118_v63 = vld [vmem:[%s1399_s1 + $0x168] sm:$0xff]  }
  0x12   :  { %990 = vmatprep.subr.bf16.mxu1 %v1083_v17  ;;  %v1111_v53 = vld [vmem:[%s1399_s1 + $0x1d8] sm:$0xff]   ;;  %v1115_v57 = vld [vmem:[%s1399_s1 + $0x1e0] sm:$0xff]   ;;  %v1119_v1 = vld [vmem:[%s1399_s1 + $0x1e8] sm:$0xff]  }
  0x13   :  { %v1112_v54 = vld [vmem:[%s1399_s1 + $0x118] sm:$0xff]   ;;  %v1116_v58 = vld [vmem:[%s1399_s1 + $0x120] sm:$0xff]   ;;  %v1120_v2 = vld [vmem:[%s1399_s1 + $0x128] sm:$0xff]  }
  0x14   :  { %963 = vmatpush3.bf16.msra.mxu0 %v1084_v18  ;;  %v1113_v55 = vld [vmem:[%s1399_s1 + $0x198] sm:$0xff]   ;;  %v1117_v59 = vld [vmem:[%s1399_s1 + $0x1a0] sm:$0xff]   ;;  %v1121_v3 = vld [vmem:[%s1399_s1 + $0x1a8] sm:$0xff]  }
  0x15   :  { %991 = vmatpush3.bf16.msra.mxu1 %v1085_v19  ;;  %964 = vmatprep.subr.bf16.mxu0 %v1086_v20  ;;  %v23_v60 = vld [vmem:[%s1400_s0 + $0x40] sm:$0xff]  ;;  %v24_v4 = vld [vmem:[%s1400_s0 + $0x48] sm:$0xff]  ;;  %v1122_v8 = vld [vmem:[%s1399_s1 + $0x170] sm:$0xff]  }
  0x16   :  { %992 = vmatprep.subr.bf16.mxu1 %v1087_v21  ;;  %v27_v61 = vld [vmem:[%s1400_s0 + $0x60] sm:$0xff]  ;;  %v28_v5 = vld [vmem:[%s1400_s0 + $0x68] sm:$0xff]  ;;  %v1123_v9 = vld [vmem:[%s1399_s1 + $0x1f0] sm:$0xff]  }
  0x17   :  { %v864_v62 = vcombine.high %v23_v60, %v27_v61  ;;  %v863_v0 = vcombine.low %v23_v60, %v27_v61  ;;  %v866_v6 = vcombine.high %v24_v4, %v28_v5  ;;  %v865_v7 = vcombine.low %v24_v4, %v28_v5  ;;  %v1124_v10 = vld [vmem:[%s1399_s1 + $0x130] sm:$0xff]   ;;  %v1126_v12 = vld [vmem:[%s1399_s1 + $0x178] sm:$0xff]   ;;  %v854_v34 = vld [vmem:[%s1401_s2] ss:$0 sm:$0xff] }
  0x18   :  { %965 = vmatpush3.bf16.msra.mxu0 %v1088_v22  ;;  %v1125_v11 = vld [vmem:[%s1399_s1 + $0x1b0] sm:$0xff]   ;;  %v1127_v13 = vld [vmem:[%s1399_s1 + $0x1f8] sm:$0xff]  }
  0x19   :  { %993 = vmatpush3.bf16.msra.mxu1 %v1089_v23  ;;  %966 = vmatprep.subr.bf16.mxu0 %v1090_v24  ;;  %v1128_v14 = vld [vmem:[%s1399_s1 + $0x138] sm:$0xff]   ;;  %v17_v16 = vld [vmem:[%s1400_s0 + $0x10] sm:$0xff] }
  0x1a   :  { %994 = vmatprep.subr.bf16.mxu1 %v1091_v25  ;;  %v1129_v15 = vld [vmem:[%s1399_s1 + $0x1b8] sm:$0xff]   ;;  %v21_v17 = vld [vmem:[%s1400_s0 + $0x30] sm:$0xff] }
  0x1b   :  { %v18_v18 = vld [vmem:[%s1400_s0 + $0x18] sm:$0xff]  ;;  %v859_v20 = vcombine.low %v17_v16, %v21_v17  ;;  %v860_v21 = vcombine.high %v17_v16, %v21_v17  ;;  %v25_v24 = vld [vmem:[%s1400_s0 + $0x50] sm:$0xff] }
  0x1c   :  { %967 = vmatpush3.bf16.msra.mxu0 %v1092_v26  ;;  %v22_v19 = vld [vmem:[%s1400_s0 + $0x38] sm:$0xff]  ;;  %v29_v25 = vld [vmem:[%s1400_s0 + $0x70] sm:$0xff] }
  0x1d   :  { %995 = vmatpush3.bf16.msra.mxu1 %v1093_v27  ;;  %968 = vmatprep.subr.bf16.mxu0 %v1094_v28  ;;  %v861_v22 = vcombine.low %v18_v18, %v22_v19  ;;  %v862_v23 = vcombine.high %v18_v18, %v22_v19  ;;  %v26_v26 = vld [vmem:[%s1400_s0 + $0x58] sm:$0xff]  ;;  %v868_v27 = vcombine.high %v25_v24, %v29_v25 }
  0x1e   :  { %996 = vmatprep.subr.bf16.mxu1 %v1095_v29  ;;  %v30_v28 = vld [vmem:[%s1400_s0 + $0x78] sm:$0xff] }
  0x1f   :  { %v870_v29 = vcombine.high %v26_v26, %v30_v28 }
  0x20   :  { %969 = vmatpush3.bf16.msra.mxu0 %v1096_v30  ;;  %v867_v30 = vcombine.low %v25_v24, %v29_v25 }
  0x21   :  { %997 = vmatpush3.bf16.msra.mxu1 %v1097_v31  ;;  %1010 = vmatprep.subr.bf16.mxu0 %v1098_v40  ;;  %v869_v31 = vcombine.low %v26_v26, %v30_v28 }
  0x22   :  { %1038 = vmatprep.subr.bf16.mxu1 %v1099_v41 }
  0x23   :  { %663 = vmatmul.mubr.bf16.vlgmr.msra.gmra.mrb[0].mxu0 %v855_v35 }
  0x24   :  { %712 = vmatmul.mubr.bf16.vlgmr.msra.gmra.mrb[0].mxu1 %v857_v38  ;;  %1011 = vmatpush3.bf16.msra.mxu0 %v1100_v42 }
  0x25   :  { %1039 = vmatpush3.bf16.msra.mxu1 %v1101_v43  ;;  %1012 = vmatprep.subr.bf16.mxu0 %v1102_v44 }
  0x26   :  { %1040 = vmatprep.subr.bf16.mxu1 %v1103_v45  ;;  %670 = vmatprep.mubr.bf16.mxu0 %v864_v62 }
  0x27   :  { %719 = vmatprep.mubr.bf16.mxu1 %v866_v6 }
  0x28   :  { %1013 = vmatpush3.bf16.msra.mxu0 %v1104_v46 }
  0x29   :  { %1041 = vmatpush3.bf16.msra.mxu1 %v1105_v47  ;;  %1014 = vmatprep.subr.bf16.mxu0 %v1106_v48 }
  0x2a   :  { %1042 = vmatprep.subr.bf16.mxu1 %v1107_v49 }
  0x2b   :  { %671 = vmatmul.mubr.bf16.gmra.mrb[4].mxu0 %v863_v0 }
  0x2c   :  { %1015 = vmatpush3.bf16.msra.mxu0 %v1108_v50  ;;  %720 = vmatmul.mubr.bf16.gmra.mrb[4].mxu1 %v865_v7 }
  0x2d   :  { %1043 = vmatpush3.bf16.msra.mxu1 %v1109_v51  ;;  %1016 = vmatprep.subr.bf16.mxu0 %v1110_v52 }
  0x2e   :  { %1044 = vmatprep.subr.bf16.mxu1 %v1111_v53  ;;  %760 = vmatprep.mubr.bf16.mxu0 %v860_v21 }
  0x2f   :  { %809 = vmatprep.mubr.bf16.mxu1 %v862_v23 }
  0x30   :  { %1017 = vmatpush3.bf16.msra.mxu0 %v1112_v54 }
  0x31   :  { %1045 = vmatpush3.bf16.msra.mxu1 %v1113_v55  ;;  %1018 = vmatprep.subr.bf16.mxu0 %v1114_v56 }
  0x32   :  { %1046 = vmatprep.subr.bf16.mxu1 %v1115_v57 }
  0x34   :  { %1019 = vmatpush3.bf16.msra.mxu0 %v1116_v58 }
  0x35   :  { %1047 = vmatpush3.bf16.msra.mxu1 %v1117_v59  ;;  %1020 = vmatprep.subr.bf16.mxu0 %v1118_v63 }
  0x36   :  { %1048 = vmatprep.subr.bf16.mxu1 %v1119_v1 }
  0x38   :  { %1021 = vmatpush3.bf16.msra.mxu0 %v1120_v2 }
  0x39   :  { %1049 = vmatpush3.bf16.msra.mxu1 %v1121_v3  ;;  %1022 = vmatprep.subr.bf16.mxu0 %v1122_v8 }
  0x3a   :  { %1050 = vmatprep.subr.bf16.mxu1 %v1123_v9 }
  0x3c   :  { %1023 = vmatpush3.bf16.msra.mxu0 %v1124_v10 }
  0x3d   :  { %1051 = vmatpush3.bf16.msra.mxu1 %v1125_v11  ;;  %1024 = vmatprep.subr.bf16.mxu0 %v1126_v12 }
  0x3e   :  { %1052 = vmatprep.subr.bf16.mxu1 %v1127_v13 }
  0x40   :  { %1025 = vmatpush3.bf16.msra.mxu0 %v1128_v14 }
  0x41   :  { %1053 = vmatpush3.bf16.msra.mxu1 %v1129_v15 }
  0x43   :  { %761 = vmatmul.mubr.bf16.vlgmr.msra.gmra.mrb[8].mxu0 %v859_v20 }
  0x44   :  { %810 = vmatmul.mubr.bf16.vlgmr.msra.gmra.mrb[8].mxu1 %v861_v22  ;;  %768 = vmatprep.mubr.bf16.mxu0 %v868_v27 }
  0x45   :  { %817 = vmatprep.mubr.bf16.mxu1 %v870_v29 }
  0x4b   :  { %769 = vmatmul.mubr.bf16.gmra.mrb[12].mxu0 %v867_v30 }
  0x4c   :  { %818 = vmatmul.mubr.bf16.gmra.mrb[12].mxu1 %v869_v31 }
  0xf6   :  { %v970_v32 = vpop.f32.mrb[0].mxu0 }
  0xf7   :  { %v998_v33 = vpop.f32.mrb[0].mxu1  ;;  %v971_v35 = vpop.f32.mrb[1].mxu0 }
  0xf8   :  { %v972_v36 = vadd.f32 %v971_v35, %v970_v32  ;;  %v999_v37 = vpop.f32.mrb[1].mxu1  ;;  %v973_v38 = vpop.f32.mrb[2].mxu0 }
  0xf9   :  { %v1000_v39 = vadd.f32 %v999_v37, %v998_v33  ;;  %v1001_v40 = vpop.f32.mrb[2].mxu1  ;;  %v974_v41 = vpop.f32.mrb[3].mxu0 }
  0xfa   :  { %v665_v42 = vadd.f32 %v972_v36, %v854_v34  ;;  %v975_v43 = vadd.f32 %v974_v41, %v973_v38  ;;  %v1002_v44 = vpop.f32.mrb[3].mxu1 }
  0xfb   :  { %v1003_v45 = vadd.f32 %v1002_v44, %v1001_v40 }
  0xfc   :  { %v714_v46 = vadd.f32 %v1000_v39, %v665_v42  ;;  %v668_v47 = vadd.f32 %v975_v43, %v854_v34 }
  0xfe   :  { %v717_v48 = vadd.f32 %v1003_v45, %v668_v47  ;;  %v976_v49 = vpop.f32.mrb[4].mxu0 }
  0xff   :  { %v977_v50 = vpop.f32.mrb[5].mxu0  ;;  %v1004_v56 = vpop.f32.mrb[4].mxu1 }
 0x100   :  { %v978_v51 = vadd.f32 %v977_v50, %v976_v49  ;;  %v979_v52 = vpop.f32.mrb[6].mxu0  ;;  %v1005_v57 = vpop.f32.mrb[5].mxu1 }
 0x101   :  { %v980_v53 = vpop.f32.mrb[7].mxu0  ;;  %v1006_v59 = vadd.f32 %v1005_v57, %v1004_v56  ;;  %v1007_v60 = vpop.f32.mrb[6].mxu1 }
 0x102   :  { %v981_v54 = vadd.f32 %v980_v53, %v979_v52  ;;  %v673_v55 = vadd.f32 %v978_v51, %v854_v34  ;;  %v1008_v61 = vpop.f32.mrb[7].mxu1 }
 0x103   :  { %v1009_v63 = vadd.f32 %v1008_v61, %v1007_v60 }
 0x104   :  { %v676_v58 = vadd.f32 %v981_v54, %v854_v34  ;;  %v722_v62 = vadd.f32 %v1006_v59, %v673_v55 }
 0x106   :  { %v725_v0 = vadd.f32 %v1009_v63, %v676_v58 }
 0x116   :  { %v1026_v1 = vpop.f32.mrb[8].mxu0 }
 0x117   :  { %v1054_v2 = vpop.f32.mrb[8].mxu1  ;;  %v1027_v3 = vpop.f32.mrb[9].mxu0 }
 0x118   :  { %v1055_v4 = vpop.f32.mrb[9].mxu1  ;;  %v1028_v5 = vadd.f32 %v1027_v3, %v1026_v1  ;;  %v1029_v7 = vpop.f32.mrb[10].mxu0 }
 0x119   :  { %v1056_v6 = vadd.f32 %v1055_v4, %v1054_v2  ;;  %v1057_v8 = vpop.f32.mrb[10].mxu1  ;;  %v1030_v9 = vpop.f32.mrb[11].mxu0 }
 0x11a   :  { %v1058_v10 = vpop.f32.mrb[11].mxu1  ;;  %v763_v11 = vadd.f32 %v1028_v5, %v714_v46  ;;  %v1031_v12 = vadd.f32 %v1030_v9, %v1029_v7 }
 0x11b   :  { %v1059_v13 = vadd.f32 %v1058_v10, %v1057_v8 }
 0x11c   :  { %v812_v14 = vadd.f32 %v1056_v6, %v763_v11  ;;  %v766_v15 = vadd.f32 %v1031_v12, %v717_v48 }
 0x11e   :  { %v815_v16 = vadd.f32 %v1059_v13, %v766_v15  ;;  %v1032_v17 = vpop.f32.mrb[12].mxu0  ;;  %v826_v21 = vmax.f32 %v812_v14, 0.0 }
 0x11f   :  { %v1060_v18 = vpop.f32.mrb[12].mxu1  ;;  %v1033_v19 = vpop.f32.mrb[13].mxu0 }
 0x120   :  { %v1061_v20 = vpop.f32.mrb[13].mxu1  ;;  %v827_v22 = vmax.f32 %v815_v16, 0.0  ;;  %v1034_v23 = vadd.f32 %v1033_v19, %v1032_v17  ;;  %v1035_v25 = vpop.f32.mrb[14].mxu0 }
 0x121   :  { %v1062_v24 = vadd.f32 %v1061_v20, %v1060_v18  ;;  %v1063_v26 = vpop.f32.mrb[14].mxu1  ;;  %v1036_v27 = vpop.f32.mrb[15].mxu0 }
 0x122   :  { %v1064_v28 = vpop.f32.mrb[15].mxu1  ;;  %v946_v29 = vpack.c.bf16 %v827_v22, %v826_v21  ;;  %v771_v30 = vadd.f32 %v1034_v23, %v722_v62  ;;  %v1037_v31 = vadd.f32 %v1036_v27, %v1035_v25 }
 0x123   :  { %v1065_v32 = vadd.f32 %v1064_v28, %v1063_v26 }
 0x124   :  { %947 = vst [vmem:[%s1402_s3] sm:$0xff] %v946_v29   ;;  %v820_v33 = vadd.f32 %v1062_v24, %v771_v30  ;;  %v774_v34 = vadd.f32 %v1037_v31, %v725_v0 }
 0x126   :  { %v823_v35 = vadd.f32 %v1065_v32, %v774_v34  ;;  %v828_v36 = vmax.f32 %v820_v33, 0.0 }
 0x128   :  { %v829_v37 = vmax.f32 %v823_v35, 0.0 }
 0x12a   :  { %v951_v38 = vpack.c.bf16 %v829_v37, %v828_v36 }
 0x12c   :  { %953 = vst [vmem:[%s1402_s3 + $0x8] sm:$0xff] %v951_v38  }

// kernel: cifar_sencoder_forward.7
= control target key start
LH: loop header
LB: loop body
LE: loop exit
PB: predicated region body
PF: predicated region fallthrough
CT: control target
= control target key end

     0   :  { %vm4958_vm0 = vcmask 654336   ;;  %s8790_s1 = inlined_call_operand.vmem [shape: bf16[2048,256], index: 1, kind: input, shape index: {}]   ;;  %s8791_s0 = inlined_call_operand.vmem [shape: bf16[8,2048], index: 0, kind: input, shape index: {}]   ;;  %s8792_s3 = inlined_call_operand.vmem [shape: bf16[256,2000], index: 3, kind: input, shape index: {}]   ;;  %s8793_s2 = inlined_call_operand.vmem [shape: f32[1,256], index: 2, kind: input, shape index: {}]   ;;  %s8794_s5 = inlined_call_operand.vmem [shape: bf16[2000,128], index: 5, kind: input, shape index: {}]   ;;  %s8795_s4 = inlined_call_operand.vmem [shape: f32[1,2000], index: 4, kind: input, shape index: {}]   ;;  %s8796_s6 = inlined_call_operand.vmem [shape: f32[1,128], index: 6, kind: input, shape index: {}]   ;;  %s8797_s7 = inlined_call_operand.vmem [shape: f32[8,128], index: 7, kind: output, shape index: {}]  }
   0x1   :  { %v6127_v0 = vld [vmem:[%s8790_s1 + $0x4] ss:$8 sps:$4 sm:$0xff]   ;;  %v6129_v1 = vld [vmem:[%s8790_s1] ss:$8 sps:$4 sm:$0xff]   ;;  %v6130_v2 = vld [vmem:[%s8790_s1 + $0x14] ss:$8 sps:$4 sm:$0xff]  }
   0x2   :  { %1639 = vmatprep.subr.bf16.mxu0 %v6127_v0  ;;  %v6132_v3 = vld [vmem:[%s8790_s1 + $0x10] ss:$8 sps:$4 sm:$0xff]   ;;  %v6133_v4 = vld [vmem:[%s8790_s1 + $0x24] ss:$8 sps:$4 sm:$0xff]   ;;  %v6135_v5 = vld [vmem:[%s8790_s1 + $0x20] ss:$8 sps:$4 sm:$0xff]  }
   0x3   :  { %1640 = vmatpush1.bf16.msra.mxu0 %v6129_v1  ;;  %v6136_v6 = vld [vmem:[%s8790_s1 + $0x34] ss:$8 sps:$4 sm:$0xff]   ;;  %v6138_v7 = vld [vmem:[%s8790_s1 + $0x30] ss:$8 sps:$4 sm:$0xff]   ;;  %v6139_v8 = vld [vmem:[%s8790_s1 + $0x44] ss:$8 sps:$4 sm:$0xff]  }
   0x4   :  { %1641 = vmatprep.subr.bf16.mxu0 %v6130_v2  ;;  %v6141_v9 = vld [vmem:[%s8790_s1 + $0x40] ss:$8 sps:$4 sm:$0xff]   ;;  %v6142_v10 = vld [vmem:[%s8790_s1 + $0x54] ss:$8 sps:$4 sm:$0xff]   ;;  %v6144_v11 = vld [vmem:[%s8790_s1 + $0x50] ss:$8 sps:$4 sm:$0xff]  }
   0x5   :  { %v6145_v12 = vld [vmem:[%s8790_s1 + $0x64] ss:$8 sps:$4 sm:$0xff]   ;;  %v6147_v15 = vld [vmem:[%s8790_s1 + $0x60] ss:$8 sps:$4 sm:$0xff]   ;;  %v6148_v16 = vld [vmem:[%s8790_s1 + $0x74] ss:$8 sps:$4 sm:$0xff]  }
   0x6   :  { %v27_v13 = vld [vmem:[%s8791_s0] sm:$0xff]  ;;  %v6150_v17 = vld [vmem:[%s8790_s1 + $0x70] ss:$8 sps:$4 sm:$0xff]   ;;  %v6154_v20 = vld [vmem:[%s8790_s1 + $0x94] ss:$8 sps:$4 sm:$0xff]  }
   0x7   :  { %1642 = vmatpush1.bf16.msra.mxu0 %v6132_v3  ;;  %v5288_v14 = vcombine.high %v27_v13, %v27_v13  ;;  %v6151_v18 = vld [vmem:[%s8790_s1 + $0x84] ss:$8 sps:$4 sm:$0xff]   ;;  %v6153_v19 = vld [vmem:[%s8790_s1 + $0x80] ss:$8 sps:$4 sm:$0xff]   ;;  %v6156_v21 = vld [vmem:[%s8790_s1 + $0x90] ss:$8 sps:$4 sm:$0xff]   ;;  %v5287_v36 = vcombine.low %v27_v13, %v27_v13 }
   0x8   :  { %1643 = vmatprep.subr.bf16.mxu0 %v6133_v4  ;;  %v6157_v22 = vld [vmem:[%s8790_s1 + $0xa4] ss:$8 sps:$4 sm:$0xff]   ;;  %v6159_v23 = vld [vmem:[%s8790_s1 + $0xa0] ss:$8 sps:$4 sm:$0xff]   ;;  %v6160_v24 = vld [vmem:[%s8790_s1 + $0xb4] ss:$8 sps:$4 sm:$0xff]  }
   0x9   :  { %1671 = vmatprep.mubr.bf16.mxu0 %v5288_v14  ;;  %v6162_v25 = vld [vmem:[%s8790_s1 + $0xb0] ss:$8 sps:$4 sm:$0xff]   ;;  %v6163_v26 = vld [vmem:[%s8790_s1 + $0xc4] ss:$8 sps:$4 sm:$0xff]   ;;  %v6165_v27 = vld [vmem:[%s8790_s1 + $0xc0] ss:$8 sps:$4 sm:$0xff]  }
   0xa   :  { %v6166_v28 = vld [vmem:[%s8790_s1 + $0xd4] ss:$8 sps:$4 sm:$0xff]   ;;  %v6168_v29 = vld [vmem:[%s8790_s1 + $0xd0] ss:$8 sps:$4 sm:$0xff]   ;;  %v6169_v30 = vld [vmem:[%s8790_s1 + $0xe4] ss:$8 sps:$4 sm:$0xff]  }
   0xb   :  { %1644 = vmatpush1.bf16.msra.mxu0 %v6135_v5  ;;  %v6171_v31 = vld [vmem:[%s8790_s1 + $0xe0] ss:$8 sps:$4 sm:$0xff]   ;;  %v6172_v32 = vld [vmem:[%s8790_s1 + $0xf4] ss:$8 sps:$4 sm:$0xff]   ;;  %v6174_v33 = vld [vmem:[%s8790_s1 + $0xf0] ss:$8 sps:$4 sm:$0xff]  }
   0xc   :  { %1645 = vmatprep.subr.bf16.mxu0 %v6136_v6  ;;  %v6179_v34 = vld [vmem:[%s8790_s1 + $0x104] ss:$8 sps:$4 sm:$0xff]   ;;  %v6177_v37 = vld [vmem:[%s8790_s1 + $0x100] ss:$8 sps:$4 sm:$0xff]   ;;  %v6182_v39 = vld [vmem:[%s8790_s1 + $0x114] ss:$8 sps:$4 sm:$0xff]  }
   0xd   :  { %v6799_v35 = vld [vmem:[%s8791_s0 + $0x8] sm:$0xff]  ;;  %v6180_v40 = vld [vmem:[%s8790_s1 + $0x110] ss:$8 sps:$4 sm:$0xff]   ;;  %v6188_v43 = vld [vmem:[%s8790_s1 + $0x134] ss:$8 sps:$4 sm:$0xff]  }
   0xe   :  { %v5290_v38 = vcombine.high %v6799_v35, %v6799_v35  ;;  %v6185_v41 = vld [vmem:[%s8790_s1 + $0x124] ss:$8 sps:$4 sm:$0xff]   ;;  %v6183_v42 = vld [vmem:[%s8790_s1 + $0x120] ss:$8 sps:$4 sm:$0xff]   ;;  %v6186_v44 = vld [vmem:[%s8790_s1 + $0x130] ss:$8 sps:$4 sm:$0xff]  }
   0xf   :  { %1646 = vmatpush1.bf16.msra.mxu0 %v6138_v7  ;;  %v6191_v45 = vld [vmem:[%s8790_s1 + $0x144] ss:$8 sps:$4 sm:$0xff]   ;;  %v6189_v46 = vld [vmem:[%s8790_s1 + $0x140] ss:$8 sps:$4 sm:$0xff]   ;;  %v6194_v47 = vld [vmem:[%s8790_s1 + $0x154] ss:$8 sps:$4 sm:$0xff]   ;;  %v5289_v7 = vcombine.low %v6799_v35, %v6799_v35 }
  0x10   :  { %1647 = vmatprep.subr.bf16.mxu0 %v6139_v8  ;;  %v6192_v48 = vld [vmem:[%s8790_s1 + $0x150] ss:$8 sps:$4 sm:$0xff]   ;;  %v6197_v49 = vld [vmem:[%s8790_s1 + $0x164] ss:$8 sps:$4 sm:$0xff]   ;;  %v6195_v50 = vld [vmem:[%s8790_s1 + $0x160] ss:$8 sps:$4 sm:$0xff]  }
  0x11   :  { %v6200_v51 = vld [vmem:[%s8790_s1 + $0x174] ss:$8 sps:$4 sm:$0xff]   ;;  %v6198_v52 = vld [vmem:[%s8790_s1 + $0x170] ss:$8 sps:$4 sm:$0xff]   ;;  %v6203_v53 = vld [vmem:[%s8790_s1 + $0x184] ss:$8 sps:$4 sm:$0xff]  }
  0x12   :  { %v6201_v54 = vld [vmem:[%s8790_s1 + $0x180] ss:$8 sps:$4 sm:$0xff]   ;;  %v6206_v55 = vld [vmem:[%s8790_s1 + $0x194] ss:$8 sps:$4 sm:$0xff]   ;;  %v6204_v56 = vld [vmem:[%s8790_s1 + $0x190] ss:$8 sps:$4 sm:$0xff]  }
  0x13   :  { %1648 = vmatpush1.bf16.msra.mxu0 %v6141_v9  ;;  %v6209_v57 = vld [vmem:[%s8790_s1 + $0x1a4] ss:$8 sps:$4 sm:$0xff]   ;;  %v6207_v58 = vld [vmem:[%s8790_s1 + $0x1a0] ss:$8 sps:$4 sm:$0xff]   ;;  %v6212_v59 = vld [vmem:[%s8790_s1 + $0x1b4] ss:$8 sps:$4 sm:$0xff]  }
  0x14   :  { %1649 = vmatprep.subr.bf16.mxu0 %v6142_v10  ;;  %v6210_v60 = vld [vmem:[%s8790_s1 + $0x1b0] ss:$8 sps:$4 sm:$0xff]   ;;  %v6215_v61 = vld [vmem:[%s8790_s1 + $0x1c4] ss:$8 sps:$4 sm:$0xff]   ;;  %v6213_v62 = vld [vmem:[%s8790_s1 + $0x1c0] ss:$8 sps:$4 sm:$0xff]  }
  0x15   :  { %v6218_v63 = vld [vmem:[%s8790_s1 + $0x1d4] ss:$8 sps:$4 sm:$0xff]   ;;  %v6216_v0 = vld [vmem:[%s8790_s1 + $0x1d0] ss:$8 sps:$4 sm:$0xff]   ;;  %v6221_v1 = vld [vmem:[%s8790_s1 + $0x1e4] ss:$8 sps:$4 sm:$0xff]  }
  0x16   :  { %v6219_v2 = vld [vmem:[%s8790_s1 + $0x1e0] ss:$8 sps:$4 sm:$0xff]   ;;  %v6224_v3 = vld [vmem:[%s8790_s1 + $0x1f4] ss:$8 sps:$4 sm:$0xff]   ;;  %v6222_v4 = vld [vmem:[%s8790_s1 + $0x1f0] ss:$8 sps:$4 sm:$0xff]  }
  0x17   :  { %1650 = vmatpush1.bf16.msra.mxu0 %v6144_v11  ;;  %v6229_v5 = vld [vmem:[%s8790_s1 + $0x204] ss:$8 sps:$4 sm:$0xff]   ;;  %v6902_v6 = vld [vmem:[%s8791_s0 + $0x10] sm:$0xff]  ;;  %v6227_v8 = vld [vmem:[%s8790_s1 + $0x200] ss:$8 sps:$4 sm:$0xff]  }
  0x18   :  { %1651 = vmatprep.subr.bf16.mxu0 %v6145_v12  ;;  %v6232_v9 = vld [vmem:[%s8790_s1 + $0x214] ss:$8 sps:$4 sm:$0xff]   ;;  %v5292_v10 = vcombine.high %v6902_v6, %v6902_v6  ;;  %v6230_v11 = vld [vmem:[%s8790_s1 + $0x210] ss:$8 sps:$4 sm:$0xff]   ;;  %v6235_v12 = vld [vmem:[%s8790_s1 + $0x224] ss:$8 sps:$4 sm:$0xff]  }
  0x19   :  { %v6233_v13 = vld [vmem:[%s8790_s1 + $0x220] ss:$8 sps:$4 sm:$0xff]   ;;  %v6238_v14 = vld [vmem:[%s8790_s1 + $0x234] ss:$8 sps:$4 sm:$0xff]   ;;  %v6266_v35 = vld [vmem:[%s8790_s1 + $0x2d0] ss:$8 sps:$4 sm:$0xff]  }
  0x1b   :  { %1652 = vmatpush1.bf16.msra.mxu0 %v6147_v15  ;;  %v6236_v15 = vld [vmem:[%s8790_s1 + $0x230] ss:$8 sps:$4 sm:$0xff]  }
  0x1c   :  { %1653 = vmatprep.subr.bf16.mxu0 %v6148_v16  ;;  %v6241_v16 = vld [vmem:[%s8790_s1 + $0x244] ss:$8 sps:$4 sm:$0xff]  }
  0x1f   :  { %1654 = vmatpush1.bf16.msra.mxu0 %v6150_v17  ;;  %v6239_v17 = vld [vmem:[%s8790_s1 + $0x240] ss:$8 sps:$4 sm:$0xff]  }
  0x20   :  { %1655 = vmatprep.subr.bf16.mxu0 %v6151_v18  ;;  %v6244_v18 = vld [vmem:[%s8790_s1 + $0x254] ss:$8 sps:$4 sm:$0xff]  }
  0x23   :  { %1656 = vmatpush1.bf16.msra.mxu0 %v6153_v19  ;;  %v6242_v19 = vld [vmem:[%s8790_s1 + $0x250] ss:$8 sps:$4 sm:$0xff]  }
  0x24   :  { %1657 = vmatprep.subr.bf16.mxu0 %v6154_v20  ;;  %v6247_v20 = vld [vmem:[%s8790_s1 + $0x264] ss:$8 sps:$4 sm:$0xff]  }
  0x27   :  { %1658 = vmatpush1.bf16.msra.mxu0 %v6156_v21  ;;  %v6245_v21 = vld [vmem:[%s8790_s1 + $0x260] ss:$8 sps:$4 sm:$0xff]  }
  0x28   :  { %1659 = vmatprep.subr.bf16.mxu0 %v6157_v22  ;;  %v6250_v22 = vld [vmem:[%s8790_s1 + $0x274] ss:$8 sps:$4 sm:$0xff]  }
  0x2b   :  { %1660 = vmatpush1.bf16.msra.mxu0 %v6159_v23  ;;  %v6248_v23 = vld [vmem:[%s8790_s1 + $0x270] ss:$8 sps:$4 sm:$0xff]  }
  0x2c   :  { %1661 = vmatprep.subr.bf16.mxu0 %v6160_v24  ;;  %v6253_v24 = vld [vmem:[%s8790_s1 + $0x284] ss:$8 sps:$4 sm:$0xff]  }
  0x2f   :  { %1662 = vmatpush1.bf16.msra.mxu0 %v6162_v25  ;;  %v6251_v25 = vld [vmem:[%s8790_s1 + $0x280] ss:$8 sps:$4 sm:$0xff]  }
  0x30   :  { %1663 = vmatprep.subr.bf16.mxu0 %v6163_v26  ;;  %v6256_v26 = vld [vmem:[%s8790_s1 + $0x294] ss:$8 sps:$4 sm:$0xff]  }
  0x33   :  { %1664 = vmatpush1.bf16.msra.mxu0 %v6165_v27  ;;  %v6254_v27 = vld [vmem:[%s8790_s1 + $0x290] ss:$8 sps:$4 sm:$0xff]  }
  0x34   :  { %1665 = vmatprep.subr.bf16.mxu0 %v6166_v28  ;;  %v6259_v28 = vld [vmem:[%s8790_s1 + $0x2a4] ss:$8 sps:$4 sm:$0xff]  }
  0x37   :  { %1666 = vmatpush1.bf16.msra.mxu0 %v6168_v29  ;;  %v6257_v29 = vld [vmem:[%s8790_s1 + $0x2a0] ss:$8 sps:$4 sm:$0xff]  }
  0x38   :  { %1667 = vmatprep.subr.bf16.mxu0 %v6169_v30  ;;  %v6262_v30 = vld [vmem:[%s8790_s1 + $0x2b4] ss:$8 sps:$4 sm:$0xff]  }
  0x3b   :  { %1668 = vmatpush1.bf16.msra.mxu0 %v6171_v31  ;;  %v6260_v31 = vld [vmem:[%s8790_s1 + $0x2b0] ss:$8 sps:$4 sm:$0xff]  }
  0x3c   :  { %1669 = vmatprep.subr.bf16.mxu0 %v6172_v32  ;;  %v6265_v32 = vld [vmem:[%s8790_s1 + $0x2c4] ss:$8 sps:$4 sm:$0xff]  }
  0x3f   :  { %1670 = vmatpush1.bf16.msra.mxu0 %v6174_v33  ;;  %v6263_v33 = vld [vmem:[%s8790_s1 + $0x2c0] ss:$8 sps:$4 sm:$0xff]  }
  0x40   :  { %1680 = vmatprep.subr.bf16.mxu0 %v6179_v34  ;;  %v6268_v34 = vld [vmem:[%s8790_s1 + $0x2d4] ss:$8 sps:$4 sm:$0xff]  }
  0x42   :  { %1672 = vmatmul.mubr.bf16.vlgmr.msra.gmra.mrb[0].mxu0 %v5287_v36  ;;  %v6271_v36 = vld [vmem:[%s8790_s1 + $0x2e4] ss:$8 sps:$4 sm:$0xff]  }
  0x43   :  { %1681 = vmatpush1.bf16.msra.mxu0 %v6177_v37  ;;  %1712 = vmatprep.mubr.bf16.mxu0 %v5290_v38  ;;  %v6269_v37 = vld [vmem:[%s8790_s1 + $0x2e0] ss:$8 sps:$4 sm:$0xff]   ;;  %v6274_v38 = vld [vmem:[%s8790_s1 + $0x2f4] ss:$8 sps:$4 sm:$0xff]  }
  0x44   :  { %1682 = vmatprep.subr.bf16.mxu0 %v6182_v39  ;;  %v6272_v39 = vld [vmem:[%s8790_s1 + $0x2f0] ss:$8 sps:$4 sm:$0xff]  }
  0x47   :  { %1683 = vmatpush1.bf16.msra.mxu0 %v6180_v40  ;;  %v6279_v40 = vld [vmem:[%s8790_s1 + $0x304] ss:$8 sps:$4 sm:$0xff]  }
  0x48   :  { %1684 = vmatprep.subr.bf16.mxu0 %v6185_v41  ;;  %v7007_v41 = vld [vmem:[%s8791_s0 + $0x18] sm:$0xff] }
  0x4b   :  { %1685 = vmatpush1.bf16.msra.mxu0 %v6183_v42  ;;  %v5291_v42 = vcombine.low %v6902_v6, %v6902_v6  ;;  %v6316_v6 = vld [vmem:[%s8790_s1 + $0x3d0] ss:$8 sps:$4 sm:$0xff]  }
  0x4c   :  { %1686 = vmatprep.subr.bf16.mxu0 %v6188_v43  ;;  %v6277_v43 = vld [vmem:[%s8790_s1 + $0x300] ss:$8 sps:$4 sm:$0xff]  }
  0x4f   :  { %1687 = vmatpush1.bf16.msra.mxu0 %v6186_v44  ;;  %v5294_v44 = vcombine.high %v7007_v41, %v7007_v41 }
  0x50   :  { %1688 = vmatprep.subr.bf16.mxu0 %v6191_v45  ;;  %v6282_v45 = vld [vmem:[%s8790_s1 + $0x314] ss:$8 sps:$4 sm:$0xff]  }
  0x53   :  { %1689 = vmatpush1.bf16.msra.mxu0 %v6189_v46  ;;  %v6280_v46 = vld [vmem:[%s8790_s1 + $0x310] ss:$8 sps:$4 sm:$0xff]  }
  0x54   :  { %1690 = vmatprep.subr.bf16.mxu0 %v6194_v47  ;;  %v6285_v47 = vld [vmem:[%s8790_s1 + $0x324] ss:$8 sps:$4 sm:$0xff]  }
  0x57   :  { %1691 = vmatpush1.bf16.msra.mxu0 %v6192_v48  ;;  %v6283_v48 = vld [vmem:[%s8790_s1 + $0x320] ss:$8 sps:$4 sm:$0xff]  }
  0x58   :  { %1692 = vmatprep.subr.bf16.mxu0 %v6197_v49  ;;  %v6288_v49 = vld [vmem:[%s8790_s1 + $0x334] ss:$8 sps:$4 sm:$0xff]  }
  0x5b   :  { %1693 = vmatpush1.bf16.msra.mxu0 %v6195_v50  ;;  %v6286_v50 = vld [vmem:[%s8790_s1 + $0x330] ss:$8 sps:$4 sm:$0xff]  }
  0x5c   :  { %1694 = vmatprep.subr.bf16.mxu0 %v6200_v51  ;;  %v6291_v51 = vld [vmem:[%s8790_s1 + $0x344] ss:$8 sps:$4 sm:$0xff]  }
  0x5f   :  { %1695 = vmatpush1.bf16.msra.mxu0 %v6198_v52  ;;  %v6289_v52 = vld [vmem:[%s8790_s1 + $0x340] ss:$8 sps:$4 sm:$0xff]  }
  0x60   :  { %1696 = vmatprep.subr.bf16.mxu0 %v6203_v53  ;;  %v6294_v53 = vld [vmem:[%s8790_s1 + $0x354] ss:$8 sps:$4 sm:$0xff]  }
  0x63   :  { %1697 = vmatpush1.bf16.msra.mxu0 %v6201_v54  ;;  %v6292_v54 = vld [vmem:[%s8790_s1 + $0x350] ss:$8 sps:$4 sm:$0xff]  }
  0x64   :  { %1698 = vmatprep.subr.bf16.mxu0 %v6206_v55  ;;  %v6297_v55 = vld [vmem:[%s8790_s1 + $0x364] ss:$8 sps:$4 sm:$0xff]  }
  0x67   :  { %1699 = vmatpush1.bf16.msra.mxu0 %v6204_v56  ;;  %v6295_v56 = vld [vmem:[%s8790_s1 + $0x360] ss:$8 sps:$4 sm:$0xff]  }
  0x68   :  { %1700 = vmatprep.subr.bf16.mxu0 %v6209_v57  ;;  %v6300_v57 = vld [vmem:[%s8790_s1 + $0x374] ss:$8 sps:$4 sm:$0xff]  }
  0x6b   :  { %1701 = vmatpush1.bf16.msra.mxu0 %v6207_v58  ;;  %v6298_v58 = vld [vmem:[%s8790_s1 + $0x370] ss:$8 sps:$4 sm:$0xff]  }
  0x6c   :  { %1702 = vmatprep.subr.bf16.mxu0 %v6212_v59  ;;  %v6303_v59 = vld [vmem:[%s8790_s1 + $0x384] ss:$8 sps:$4 sm:$0xff]  }
  0x6f   :  { %1703 = vmatpush1.bf16.msra.mxu0 %v6210_v60  ;;  %v6301_v60 = vld [vmem:[%s8790_s1 + $0x380] ss:$8 sps:$4 sm:$0xff]  }
  0x70   :  { %1704 = vmatprep.subr.bf16.mxu0 %v6215_v61  ;;  %v6306_v61 = vld [vmem:[%s8790_s1 + $0x394] ss:$8 sps:$4 sm:$0xff]  }
  0x73   :  { %1705 = vmatpush1.bf16.msra.mxu0 %v6213_v62  ;;  %v6304_v62 = vld [vmem:[%s8790_s1 + $0x390] ss:$8 sps:$4 sm:$0xff]  }
  0x74   :  { %1706 = vmatprep.subr.bf16.mxu0 %v6218_v63  ;;  %v6309_v63 = vld [vmem:[%s8790_s1 + $0x3a4] ss:$8 sps:$4 sm:$0xff]  }
  0x77   :  { %1707 = vmatpush1.bf16.msra.mxu0 %v6216_v0  ;;  %v6307_v0 = vld [vmem:[%s8790_s1 + $0x3a0] ss:$8 sps:$4 sm:$0xff]  }
  0x78   :  { %1708 = vmatprep.subr.bf16.mxu0 %v6221_v1  ;;  %v6312_v1 = vld [vmem:[%s8790_s1 + $0x3b4] ss:$8 sps:$4 sm:$0xff]  }
  0x7b   :  { %1709 = vmatpush1.bf16.msra.mxu0 %v6219_v2  ;;  %v6310_v2 = vld [vmem:[%s8790_s1 + $0x3b0] ss:$8 sps:$4 sm:$0xff]  }
  0x7c   :  { %1710 = vmatprep.subr.bf16.mxu0 %v6224_v3  ;;  %v6315_v3 = vld [vmem:[%s8790_s1 + $0x3c4] ss:$8 sps:$4 sm:$0xff]  }
  0x7f   :  { %1711 = vmatpush1.bf16.msra.mxu0 %v6222_v4  ;;  %v6313_v4 = vld [vmem:[%s8790_s1 + $0x3c0] ss:$8 sps:$4 sm:$0xff]  }
  0x80   :  { %1721 = vmatprep.subr.bf16.mxu0 %v6229_v5  ;;  %v6318_v5 = vld [vmem:[%s8790_s1 + $0x3d4] ss:$8 sps:$4 sm:$0xff]  }
  0x82   :  { %1713 = vmatmul.mubr.bf16.vlgmr.msra.gmra.mrb[0].mxu0 %v5289_v7  ;;  %v6321_v7 = vld [vmem:[%s8790_s1 + $0x3e4] ss:$8 sps:$4 sm:$0xff]  }
  0x83   :  { %1722 = vmatpush1.bf16.msra.mxu0 %v6227_v8  ;;  %1753 = vmatprep.mubr.bf16.mxu0 %v5292_v10  ;;  %v6319_v8 = vld [vmem:[%s8790_s1 + $0x3e0] ss:$8 sps:$4 sm:$0xff]   ;;  %v6322_v10 = vld [vmem:[%s8790_s1 + $0x3f0] ss:$8 sps:$4 sm:$0xff]  }
  0x84   :  { %1723 = vmatprep.subr.bf16.mxu0 %v6232_v9  ;;  %v6324_v9 = vld [vmem:[%s8790_s1 + $0x3f4] ss:$8 sps:$4 sm:$0xff]  }
  0x87   :  { %1724 = vmatpush1.bf16.msra.mxu0 %v6230_v11  ;;  %v6329_v11 = vld [vmem:[%s8790_s1 + $0x404] ss:$8 sps:$4 sm:$0xff]  }
  0x88   :  { %1725 = vmatprep.subr.bf16.mxu0 %v6235_v12  ;;  %v7112_v12 = vld [vmem:[%s8791_s0 + $0x20] sm:$0xff] }
  0x8b   :  { %1726 = vmatpush1.bf16.msra.mxu0 %v6233_v13  ;;  %v5293_v13 = vcombine.low %v7007_v41, %v7007_v41  ;;  %v6366_v41 = vld [vmem:[%s8790_s1 + $0x4d0] ss:$8 sps:$4 sm:$0xff]  }
  0x8c   :  { %1727 = vmatprep.subr.bf16.mxu0 %v6238_v14  ;;  %v6327_v14 = vld [vmem:[%s8790_s1 + $0x400] ss:$8 sps:$4 sm:$0xff]  }
  0x8f   :  { %1728 = vmatpush1.bf16.msra.mxu0 %v6236_v15  ;;  %v5296_v15 = vcombine.high %v7112_v12, %v7112_v12 }
  0x90   :  { %1729 = vmatprep.subr.bf16.mxu0 %v6241_v16  ;;  %v6332_v16 = vld [vmem:[%s8790_s1 + $0x414] ss:$8 sps:$4 sm:$0xff]  }
  0x93   :  { %1730 = vmatpush1.bf16.msra.mxu0 %v6239_v17  ;;  %v6330_v17 = vld [vmem:[%s8790_s1 + $0x410] ss:$8 sps:$4 sm:$0xff]  }
  0x94   :  { %1731 = vmatprep.subr.bf16.mxu0 %v6244_v18  ;;  %v6335_v18 = vld [vmem:[%s8790_s1 + $0x424] ss:$8 sps:$4 sm:$0xff]  }
  0x97   :  { %1732 = vmatpush1.bf16.msra.mxu0 %v6242_v19  ;;  %v6333_v19 = vld [vmem:[%s8790_s1 + $0x420] ss:$8 sps:$4 sm:$0xff]  }
  0x98   :  { %1733 = vmatprep.subr.bf16.mxu0 %v6247_v20  ;;  %v6338_v20 = vld [vmem:[%s8790_s1 + $0x434] ss:$8 sps:$4 sm:$0xff]  }
  0x9b   :  { %1734 = vmatpush1.bf16.msra.mxu0 %v6245_v21  ;;  %v6336_v21 = vld [vmem:[%s8790_s1 + $0x430] ss:$8 sps:$4 sm:$0xff]  }
  0x9c   :  { %1735 = vmatprep.subr.bf16.mxu0 %v6250_v22  ;;  %v6341_v22 = vld [vmem:[%s8790_s1 + $0x444] ss:$8 sps:$4 sm:$0xff]  }
  0x9f   :  { %1736 = vmatpush1.bf16.msra.mxu0 %v6248_v23  ;;  %v6339_v23 = vld [vmem:[%s8790_s1 + $0x440] ss:$8 sps:$4 sm:$0xff]  }
  0xa0   :  { %1737 = vmatprep.subr.bf16.mxu0 %v6253_v24  ;;  %v6344_v24 = vld [vmem:[%s8790_s1 + $0x454] ss:$8 sps:$4 sm:$0xff]  }
  0xa3   :  { %1738 = vmatpush1.bf16.msra.mxu0 %v6251_v25  ;;  %v6342_v25 = vld [vmem:[%s8790_s1 + $0x450] ss:$8 sps:$4 sm:$0xff]  }
  0xa4   :  { %1739 = vmatprep.subr.bf16.mxu0 %v6256_v26  ;;  %v6347_v26 = vld [vmem:[%s8790_s1 + $0x464] ss:$8 sps:$4 sm:$0xff]  }
  0xa7   :  { %1740 = vmatpush1.bf16.msra.mxu0 %v6254_v27  ;;  %v6345_v27 = vld [vmem:[%s8790_s1 + $0x460] ss:$8 sps:$4 sm:$0xff]  }
  0xa8   :  { %1741 = vmatprep.subr.bf16.mxu0 %v6259_v28  ;;  %v6350_v28 = vld [vmem:[%s8790_s1 + $0x474] ss:$8 sps:$4 sm:$0xff]  }
  0xab   :  { %1742 = vmatpush1.bf16.msra.mxu0 %v6257_v29  ;;  %v6348_v29 = vld [vmem:[%s8790_s1 + $0x470] ss:$8 sps:$4 sm:$0xff]  }
  0xac   :  { %1743 = vmatprep.subr.bf16.mxu0 %v6262_v30  ;;  %v6353_v30 = vld [vmem:[%s8790_s1 + $0x484] ss:$8 sps:$4 sm:$0xff]  }
  0xaf   :  { %1744 = vmatpush1.bf16.msra.mxu0 %v6260_v31  ;;  %v6351_v31 = vld [vmem:[%s8790_s1 + $0x480] ss:$8 sps:$4 sm:$0xff]  }
  0xb0   :  { %1745 = vmatprep.subr.bf16.mxu0 %v6265_v32  ;;  %v6356_v32 = vld [vmem:[%s8790_s1 + $0x494] ss:$8 sps:$4 sm:$0xff]  }
  0xb3   :  { %1746 = vmatpush1.bf16.msra.mxu0 %v6263_v33  ;;  %v6354_v33 = vld [vmem:[%s8790_s1 + $0x490] ss:$8 sps:$4 sm:$0xff]  }
  0xb4   :  { %1747 = vmatprep.subr.bf16.mxu0 %v6268_v34  ;;  %v6359_v34 = vld [vmem:[%s8790_s1 + $0x4a4] ss:$8 sps:$4 sm:$0xff]  }
  0xb7   :  { %1748 = vmatpush1.bf16.msra.mxu0 %v6266_v35  ;;  %v6357_v35 = vld [vmem:[%s8790_s1 + $0x4a0] ss:$8 sps:$4 sm:$0xff]  }
  0xb8   :  { %1749 = vmatprep.subr.bf16.mxu0 %v6271_v36  ;;  %v6362_v36 = vld [vmem:[%s8790_s1 + $0x4b4] ss:$8 sps:$4 sm:$0xff]  }
  0xbb   :  { %1750 = vmatpush1.bf16.msra.mxu0 %v6269_v37  ;;  %v6360_v37 = vld [vmem:[%s8790_s1 + $0x4b0] ss:$8 sps:$4 sm:$0xff]  }
  0xbc   :  { %1751 = vmatprep.subr.bf16.mxu0 %v6274_v38  ;;  %v6365_v38 = vld [vmem:[%s8790_s1 + $0x4c4] ss:$8 sps:$4 sm:$0xff]  }
  0xbf   :  { %1752 = vmatpush1.bf16.msra.mxu0 %v6272_v39  ;;  %v6363_v39 = vld [vmem:[%s8790_s1 + $0x4c0] ss:$8 sps:$4 sm:$0xff]  }
  0xc0   :  { %1762 = vmatprep.subr.bf16.mxu0 %v6279_v40  ;;  %v6368_v40 = vld [vmem:[%s8790_s1 + $0x4d4] ss:$8 sps:$4 sm:$0xff]  }
  0xc2   :  { %1754 = vmatmul.mubr.bf16.vlgmr.msra.gmra.mrb[0].mxu0 %v5291_v42  ;;  %v6371_v42 = vld [vmem:[%s8790_s1 + $0x4e4] ss:$8 sps:$4 sm:$0xff]  }
  0xc3   :  { %1763 = vmatpush1.bf16.msra.mxu0 %v6277_v43  ;;  %1794 = vmatprep.mubr.bf16.mxu0 %v5294_v44  ;;  %v6369_v43 = vld [vmem:[%s8790_s1 + $0x4e0] ss:$8 sps:$4 sm:$0xff]   ;;  %v6374_v44 = vld [vmem:[%s8790_s1 + $0x4f4] ss:$8 sps:$4 sm:$0xff]  }
  0xc4   :  { %1764 = vmatprep.subr.bf16.mxu0 %v6282_v45  ;;  %v6372_v45 = vld [vmem:[%s8790_s1 + $0x4f0] ss:$8 sps:$4 sm:$0xff]  }
  0xc7   :  { %1765 = vmatpush1.bf16.msra.mxu0 %v6280_v46  ;;  %v6379_v46 = vld [vmem:[%s8790_s1 + $0x504] ss:$8 sps:$4 sm:$0xff]  }
  0xc8   :  { %1766 = vmatprep.subr.bf16.mxu0 %v6285_v47  ;;  %v7217_v47 = vld [vmem:[%s8791_s0 + $0x28] sm:$0xff] }
  0xcb   :  { %1767 = vmatpush1.bf16.msra.mxu0 %v6283_v48  ;;  %v5295_v48 = vcombine.low %v7112_v12, %v7112_v12  ;;  %v6416_v12 = vld [vmem:[%s8790_s1 + $0x5d0] ss:$8 sps:$4 sm:$0xff]  }
  0xcc   :  { %1768 = vmatprep.subr.bf16.mxu0 %v6288_v49  ;;  %v6377_v49 = vld [vmem:[%s8790_s1 + $0x500] ss:$8 sps:$4 sm:$0xff]  }
  0xcf   :  { %1769 = vmatpush1.bf16.msra.mxu0 %v6286_v50  ;;  %v5298_v50 = vcombine.high %v7217_v47, %v7217_v47 }
  0xd0   :  { %1770 = vmatprep.subr.bf16.mxu0 %v6291_v51  ;;  %v6382_v51 = vld [vmem:[%s8790_s1 + $0x514] ss:$8 sps:$4 sm:$0xff]  }
  0xd3   :  { %1771 = vmatpush1.bf16.msra.mxu0 %v6289_v52  ;;  %v6380_v52 = vld [vmem:[%s8790_s1 + $0x510] ss:$8 sps:$4 sm:$0xff]  }
  0xd4   :  { %1772 = vmatprep.subr.bf16.mxu0 %v6294_v53  ;;  %v6385_v53 = vld [vmem:[%s8790_s1 + $0x524] ss:$8 sps:$4 sm:$0xff]  }
  0xd7   :  { %1773 = vmatpush1.bf16.msra.mxu0 %v6292_v54  ;;  %v6383_v54 = vld [vmem:[%s8790_s1 + $0x520] ss:$8 sps:$4 sm:$0xff]  }
  0xd8   :  { %1774 = vmatprep.subr.bf16.mxu0 %v6297_v55  ;;  %v6388_v55 = vld [vmem:[%s8790_s1 + $0x534] ss:$8 sps:$4 sm:$0xff]  }
  0xdb   :  { %1775 = vmatpush1.bf16.msra.mxu0 %v6295_v56  ;;  %v6386_v56 = vld [vmem:[%s8790_s1 + $0x530] ss:$8 sps:$4 sm:$0xff]  }
  0xdc   :  { %1776 = vmatprep.subr.bf16.mxu0 %v6300_v57  ;;  %v6391_v57 = vld [vmem:[%s8790_s1 + $0x544] ss:$8 sps:$4 sm:$0xff]  }
  0xdf   :  { %1777 = vmatpush1.bf16.msra.mxu0 %v6298_v58  ;;  %v6389_v58 = vld [vmem:[%s8790_s1 + $0x540] ss:$8 sps:$4 sm:$0xff]  }
  0xe0   :  { %1778 = vmatprep.subr.bf16.mxu0 %v6303_v59  ;;  %v6394_v59 = vld [vmem:[%s8790_s1 + $0x554] ss:$8 sps:$4 sm:$0xff]  }
  0xe3   :  { %1779 = vmatpush1.bf16.msra.mxu0 %v6301_v60  ;;  %v6392_v60 = vld [vmem:[%s8790_s1 + $0x550] ss:$8 sps:$4 sm:$0xff]  }
  0xe4   :  { %1780 = vmatprep.subr.bf16.mxu0 %v6306_v61  ;;  %v6397_v61 = vld [vmem:[%s8790_s1 + $0x564] ss:$8 sps:$4 sm:$0xff]  }
  0xe7   :  { %1781 = vmatpush1.bf16.msra.mxu0 %v6304_v62  ;;  %v6395_v62 = vld [vmem:[%s8790_s1 + $0x560] ss:$8 sps:$4 sm:$0xff]  }
  0xe8   :  { %1782 = vmatprep.subr.bf16.mxu0 %v6309_v63  ;;  %v6400_v63 = vld [vmem:[%s8790_s1 + $0x574] ss:$8 sps:$4 sm:$0xff]  }
  0xeb   :  { %1783 = vmatpush1.bf16.msra.mxu0 %v6307_v0  ;;  %v6398_v0 = vld [vmem:[%s8790_s1 + $0x570] ss:$8 sps:$4 sm:$0xff]  }
  0xec   :  { %1784 = vmatprep.subr.bf16.mxu0 %v6312_v1  ;;  %v6403_v1 = vld [vmem:[%s8790_s1 + $0x584] ss:$8 sps:$4 sm:$0xff]  }
  0xef   :  { %1785 = vmatpush1.bf16.msra.mxu0 %v6310_v2  ;;  %v6401_v2 = vld [vmem:[%s8790_s1 + $0x580] ss:$8 sps:$4 sm:$0xff]  }
  0xf0   :  { %1786 = vmatprep.subr.bf16.mxu0 %v6315_v3  ;;  %v6406_v3 = vld [vmem:[%s8790_s1 + $0x594] ss:$8 sps:$4 sm:$0xff]  }
  0xf3   :  { %1787 = vmatpush1.bf16.msra.mxu0 %v6313_v4  ;;  %v6404_v4 = vld [vmem:[%s8790_s1 + $0x590] ss:$8 sps:$4 sm:$0xff]  }
  0xf4   :  { %1788 = vmatprep.subr.bf16.mxu0 %v6318_v5  ;;  %v6409_v5 = vld [vmem:[%s8790_s1 + $0x5a4] ss:$8 sps:$4 sm:$0xff]  }
  0xf7   :  { %1789 = vmatpush1.bf16.msra.mxu0 %v6316_v6  ;;  %v6407_v6 = vld [vmem:[%s8790_s1 + $0x5a0] ss:$8 sps:$4 sm:$0xff]  }
  0xf8   :  { %1790 = vmatprep.subr.bf16.mxu0 %v6321_v7  ;;  %v6412_v7 = vld [vmem:[%s8790_s1 + $0x5b4] ss:$8 sps:$4 sm:$0xff]  }
  0xfb   :  { %1791 = vmatpush1.bf16.msra.mxu0 %v6319_v8  ;;  %v6410_v8 = vld [vmem:[%s8790_s1 + $0x5b0] ss:$8 sps:$4 sm:$0xff]  }
  0xfc   :  { %1792 = vmatprep.subr.bf16.mxu0 %v6324_v9  ;;  %v6415_v9 = vld [vmem:[%s8790_s1 + $0x5c4] ss:$8 sps:$4 sm:$0xff]  }
  0xff   :  { %1793 = vmatpush1.bf16.msra.mxu0 %v6322_v10  ;;  %v6413_v10 = vld [vmem:[%s8790_s1 + $0x5c0] ss:$8 sps:$4 sm:$0xff]  }
 0x100   :  { %1803 = vmatprep.subr.bf16.mxu0 %v6329_v11  ;;  %v6418_v11 = vld [vmem:[%s8790_s1 + $0x5d4] ss:$8 sps:$4 sm:$0xff]  }
 0x102   :  { %1795 = vmatmul.mubr.bf16.vlgmr.msra.gmra.mrb[0].mxu0 %v5293_v13  ;;  %v6421_v13 = vld [vmem:[%s8790_s1 + $0x5e4] ss:$8 sps:$4 sm:$0xff]  }
 0x103   :  { %1804 = vmatpush1.bf16.msra.mxu0 %v6327_v14  ;;  %1835 = vmatprep.mubr.bf16.mxu0 %v5296_v15  ;;  %v6419_v14 = vld [vmem:[%s8790_s1 + $0x5e0] ss:$8 sps:$4 sm:$0xff]   ;;  %v6424_v15 = vld [vmem:[%s8790_s1 + $0x5f4] ss:$8 sps:$4 sm:$0xff]  }
 0x104   :  { %1805 = vmatprep.subr.bf16.mxu0 %v6332_v16  ;;  %v6422_v16 = vld [vmem:[%s8790_s1 + $0x5f0] ss:$8 sps:$4 sm:$0xff]  }
 0x107   :  { %1806 = vmatpush1.bf16.msra.mxu0 %v6330_v17  ;;  %v6429_v17 = vld [vmem:[%s8790_s1 + $0x604] ss:$8 sps:$4 sm:$0xff]  }
 0x108   :  { %1807 = vmatprep.subr.bf16.mxu0 %v6335_v18  ;;  %v7322_v18 = vld [vmem:[%s8791_s0 + $0x30] sm:$0xff] }
 0x10b   :  { %1808 = vmatpush1.bf16.msra.mxu0 %v6333_v19  ;;  %v5297_v19 = vcombine.low %v7217_v47, %v7217_v47 }
 0x10c   :  { %1809 = vmatprep.subr.bf16.mxu0 %v6338_v20  ;;  %v6427_v20 = vld [vmem:[%s8790_s1 + $0x600] ss:$8 sps:$4 sm:$0xff]  }
 0x10f   :  { %1810 = vmatpush1.bf16.msra.mxu0 %v6336_v21  ;;  %v5300_v21 = vcombine.high %v7322_v18, %v7322_v18 }
 0x110   :  { %1811 = vmatprep.subr.bf16.mxu0 %v6341_v22  ;;  %v6432_v22 = vld [vmem:[%s8790_s1 + $0x614] ss:$8 sps:$4 sm:$0xff]  }
 0x113   :  { %1812 = vmatpush1.bf16.msra.mxu0 %v6339_v23  ;;  %v6430_v23 = vld [vmem:[%s8790_s1 + $0x610] ss:$8 sps:$4 sm:$0xff]  }
 0x114   :  { %1813 = vmatprep.subr.bf16.mxu0 %v6344_v24  ;;  %v1971_v24 = vld [vmem:[%s8792_s3] sm:$0xff] }
 0x117   :  { %1814 = vmatpush1.bf16.msra.mxu0 %v6342_v25  ;;  %v1979_v25 = vld [vmem:[%s8792_s3 + $0x40] sm:$0xff] }
 0x118   :  { %1815 = vmatprep.subr.bf16.mxu0 %v6347_v26  ;;  %v1987_v26 = vld [vmem:[%s8792_s3 + $0x80] sm:$0xff] }
 0x11b   :  { %1816 = vmatpush1.bf16.msra.mxu0 %v6345_v27  ;;  %v6435_v27 = vld [vmem:[%s8790_s1 + $0x624] ss:$8 sps:$4 sm:$0xff]  }
 0x11c   :  { %1817 = vmatprep.subr.bf16.mxu0 %v6350_v28  ;;  %v5560_v28 = vcombine.high %v1971_v24, %v1979_v25 }
 0x11e   :  { %3591 = vmatprep.subr.bf16.mxu1 %v5560_v28 }
 0x11f   :  { %1818 = vmatpush1.bf16.msra.mxu0 %v6348_v29  ;;  %v5559_v29 = vcombine.low %v1971_v24, %v1979_v25  ;;  %v2155_v24 = vld [vmem:[%s8792_s3 + $0x5c0] sm:$0xff]  ;;  %v6460_v25 = vld [vmem:[%s8790_s1 + $0x6b0] ss:$8 sps:$4 sm:$0xff]  }
 0x120   :  { %1819 = vmatprep.subr.bf16.mxu0 %v6353_v30  ;;  %v1995_v30 = vld [vmem:[%s8792_s3 + $0xc0] sm:$0xff] }
 0x121   :  { %3592 = vmatpush1.bf16.msra.mxu1 %v5559_v29  ;;  %v2163_v29 = vld [vmem:[%s8792_s3 + $0x600] sm:$0xff] }
 0x123   :  { %1820 = vmatpush1.bf16.msra.mxu0 %v6351_v31  ;;  %v5576_v31 = vcombine.high %v1987_v26, %v1995_v30 }
 0x124   :  { %1821 = vmatprep.subr.bf16.mxu0 %v6356_v32  ;;  %v2003_v32 = vld [vmem:[%s8792_s3 + $0x100] sm:$0xff] }
 0x125   :  { %3593 = vmatprep.subr.bf16.mxu1 %v5576_v31  ;;  %v6463_v31 = vld [vmem:[%s8790_s1 + $0x6c0] ss:$8 sps:$4 sm:$0xff]  }
 0x127   :  { %1822 = vmatpush1.bf16.msra.mxu0 %v6354_v33  ;;  %v2011_v33 = vld [vmem:[%s8792_s3 + $0x140] sm:$0xff] }
 0x128   :  { %1823 = vmatprep.subr.bf16.mxu0 %v6359_v34  ;;  %v6433_v34 = vld [vmem:[%s8790_s1 + $0x620] ss:$8 sps:$4 sm:$0xff]  }
 0x12b   :  { %1824 = vmatpush1.bf16.msra.mxu0 %v6357_v35  ;;  %v5575_v35 = vcombine.low %v1987_v26, %v1995_v30  ;;  %v2171_v30 = vld [vmem:[%s8792_s3 + $0x640] sm:$0xff] }
 0x12c   :  { %1825 = vmatprep.subr.bf16.mxu0 %v6362_v36  ;;  %v6438_v36 = vld [vmem:[%s8790_s1 + $0x634] ss:$8 sps:$4 sm:$0xff]  }
 0x12d   :  { %3594 = vmatpush1.bf16.msra.mxu1 %v5575_v35  ;;  %v2179_v35 = vld [vmem:[%s8792_s3 + $0x680] sm:$0xff] }
 0x12f   :  { %1826 = vmatpush1.bf16.msra.mxu0 %v6360_v37  ;;  %v5592_v37 = vcombine.high %v2003_v32, %v2011_v33 }
 0x130   :  { %1827 = vmatprep.subr.bf16.mxu0 %v6365_v38  ;;  %v2019_v38 = vld [vmem:[%s8792_s3 + $0x180] sm:$0xff] }
 0x131   :  { %3595 = vmatprep.subr.bf16.mxu1 %v5592_v37  ;;  %v6466_v37 = vld [vmem:[%s8790_s1 + $0x6d0] ss:$8 sps:$4 sm:$0xff]  }
 0x133   :  { %1828 = vmatpush1.bf16.msra.mxu0 %v6363_v39  ;;  %v2027_v39 = vld [vmem:[%s8792_s3 + $0x1c0] sm:$0xff] }
 0x134   :  { %1829 = vmatprep.subr.bf16.mxu0 %v6368_v40  ;;  %v6436_v40 = vld [vmem:[%s8790_s1 + $0x630] ss:$8 sps:$4 sm:$0xff]   ;;  %v5607_v47 = vcombine.low %v2019_v38, %v2027_v39 }
 0x137   :  { %1830 = vmatpush1.bf16.msra.mxu0 %v6366_v41  ;;  %v5591_v41 = vcombine.low %v2003_v32, %v2011_v33  ;;  %v6468_v33 = vld [vmem:[%s8790_s1 + $0x6d4] ss:$8 sps:$4 sm:$0xff]  }
 0x138   :  { %1831 = vmatprep.subr.bf16.mxu0 %v6371_v42  ;;  %v6441_v42 = vld [vmem:[%s8790_s1 + $0x644] ss:$8 sps:$4 sm:$0xff]  }
 0x139   :  { %3596 = vmatpush1.bf16.msra.mxu1 %v5591_v41  ;;  %v6469_v41 = vld [vmem:[%s8790_s1 + $0x6e0] ss:$8 sps:$4 sm:$0xff]  }
 0x13b   :  { %1832 = vmatpush1.bf16.msra.mxu0 %v6369_v43  ;;  %v5608_v43 = vcombine.high %v2019_v38, %v2027_v39  ;;  %v5751_v38 = vcombine.low %v2163_v29, %v2171_v30  ;;  %v6471_v39 = vld [vmem:[%s8790_s1 + $0x6e4] ss:$8 sps:$4 sm:$0xff]  }
 0x13c   :  { %1833 = vmatprep.subr.bf16.mxu0 %v6374_v44  ;;  %v2035_v44 = vld [vmem:[%s8792_s3 + $0x200] sm:$0xff] }
 0x13d   :  { %3597 = vmatprep.subr.bf16.mxu1 %v5608_v43  ;;  %v6474_v43 = vld [vmem:[%s8790_s1 + $0x6f4] ss:$8 sps:$4 sm:$0xff]  }
 0x13e   :  { %3598 = vmatpush1.bf16.msra.mxu1 %v5607_v47  ;;  %v5299_v47 = vcombine.low %v7322_v18, %v7322_v18  ;;  %v6485_v18 = vld [vmem:[%s8790_s1 + $0x724] ss:$8 sps:$4 sm:$0xff]  }
 0x13f   :  { %1834 = vmatpush1.bf16.msra.mxu0 %v6372_v45  ;;  %v2043_v45 = vld [vmem:[%s8792_s3 + $0x240] sm:$0xff] }
 0x140   :  { %1844 = vmatprep.subr.bf16.mxu0 %v6379_v46  ;;  %v6439_v46 = vld [vmem:[%s8790_s1 + $0x640] ss:$8 sps:$4 sm:$0xff]  }
 0x142   :  { %1836 = vmatmul.mubr.bf16.vlgmr.msra.gmra.mrb[0].mxu0 %v5295_v48  ;;  %v6444_v48 = vld [vmem:[%s8790_s1 + $0x654] ss:$8 sps:$4 sm:$0xff]  }
 0x143   :  { %1845 = vmatpush1.bf16.msra.mxu0 %v6377_v49  ;;  %1876 = vmatprep.mubr.bf16.mxu0 %v5298_v50  ;;  %v5624_v49 = vcombine.high %v2035_v44, %v2043_v45  ;;  %v2051_v50 = vld [vmem:[%s8792_s3 + $0x280] sm:$0xff] }
 0x144   :  { %1846 = vmatprep.subr.bf16.mxu0 %v6382_v51  ;;  %v2059_v51 = vld [vmem:[%s8792_s3 + $0x2c0] sm:$0xff] }
 0x145   :  { %3599 = vmatprep.subr.bf16.mxu1 %v5624_v49 }
 0x147   :  { %1847 = vmatpush1.bf16.msra.mxu0 %v6380_v52  ;;  %v6442_v52 = vld [vmem:[%s8790_s1 + $0x650] ss:$8 sps:$4 sm:$0xff]  }
 0x148   :  { %1848 = vmatprep.subr.bf16.mxu0 %v6385_v53  ;;  %v5623_v53 = vcombine.low %v2035_v44, %v2043_v45  ;;  %v6472_v44 = vld [vmem:[%s8790_s1 + $0x6f0] ss:$8 sps:$4 sm:$0xff]   ;;  %v6479_v45 = vld [vmem:[%s8790_s1 + $0x704] ss:$8 sps:$4 sm:$0xff]  }
 0x14a   :  { %3600 = vmatpush1.bf16.msra.mxu1 %v5623_v53  ;;  %v6488_v53 = vld [vmem:[%s8790_s1 + $0x734] ss:$8 sps:$4 sm:$0xff]  }
 0x14b   :  { %1849 = vmatpush1.bf16.msra.mxu0 %v6383_v54  ;;  %v6447_v54 = vld [vmem:[%s8790_s1 + $0x664] ss:$8 sps:$4 sm:$0xff]  }
 0x14c   :  { %1850 = vmatprep.subr.bf16.mxu0 %v6388_v55  ;;  %v5640_v55 = vcombine.high %v2051_v50, %v2059_v51 }
 0x14e   :  { %3601 = vmatprep.subr.bf16.mxu1 %v5640_v55  ;;  %v6491_v55 = vld [vmem:[%s8790_s1 + $0x744] ss:$8 sps:$4 sm:$0xff]  }
 0x14f   :  { %1851 = vmatpush1.bf16.msra.mxu0 %v6386_v56  ;;  %v2067_v56 = vld [vmem:[%s8792_s3 + $0x300] sm:$0xff] }
 0x150   :  { %1852 = vmatprep.subr.bf16.mxu0 %v6391_v57  ;;  %v2075_v57 = vld [vmem:[%s8792_s3 + $0x340] sm:$0xff] }
 0x153   :  { %1853 = vmatpush1.bf16.msra.mxu0 %v6389_v58  ;;  %v6445_v58 = vld [vmem:[%s8790_s1 + $0x660] ss:$8 sps:$4 sm:$0xff]  }
 0x154   :  { %1854 = vmatprep.subr.bf16.mxu0 %v6394_v59  ;;  %v5639_v59 = vcombine.low %v2051_v50, %v2059_v51  ;;  %v6482_v50 = vld [vmem:[%s8790_s1 + $0x714] ss:$8 sps:$4 sm:$0xff]   ;;  %v6480_v51 = vld [vmem:[%s8790_s1 + $0x710] ss:$8 sps:$4 sm:$0xff]  }
 0x156   :  { %3602 = vmatpush1.bf16.msra.mxu1 %v5639_v59  ;;  %v6497_v59 = vld [vmem:[%s8790_s1 + $0x764] ss:$8 sps:$4 sm:$0xff]  }
 0x157   :  { %1855 = vmatpush1.bf16.msra.mxu0 %v6392_v60  ;;  %v6450_v60 = vld [vmem:[%s8790_s1 + $0x674] ss:$8 sps:$4 sm:$0xff]  }
 0x158   :  { %1856 = vmatprep.subr.bf16.mxu0 %v6397_v61  ;;  %v5656_v61 = vcombine.high %v2067_v56, %v2075_v57 }
 0x15a   :  { %3603 = vmatprep.subr.bf16.mxu1 %v5656_v61  ;;  %v6500_v61 = vld [vmem:[%s8790_s1 + $0x774] ss:$8 sps:$4 sm:$0xff]  }
 0x15b   :  { %1857 = vmatpush1.bf16.msra.mxu0 %v6395_v62  ;;  %v2083_v62 = vld [vmem:[%s8792_s3 + $0x380] sm:$0xff] }
 0x15c   :  { %1858 = vmatprep.subr.bf16.mxu0 %v6400_v63  ;;  %v2091_v63 = vld [vmem:[%s8792_s3 + $0x3c0] sm:$0xff] }
 0x15f   :  { %1859 = vmatpush1.bf16.msra.mxu0 %v6398_v0  ;;  %v6448_v0 = vld [vmem:[%s8790_s1 + $0x670] ss:$8 sps:$4 sm:$0xff]  }
 0x160   :  { %1860 = vmatprep.subr.bf16.mxu0 %v6403_v1  ;;  %v5655_v1 = vcombine.low %v2067_v56, %v2075_v57  ;;  %v6489_v56 = vld [vmem:[%s8790_s1 + $0x740] ss:$8 sps:$4 sm:$0xff]   ;;  %v6494_v57 = vld [vmem:[%s8790_s1 + $0x754] ss:$8 sps:$4 sm:$0xff]  }
 0x162   :  { %3604 = vmatpush1.bf16.msra.mxu1 %v5655_v1  ;;  %v6506_v1 = vld [vmem:[%s8790_s1 + $0x794] ss:$8 sps:$4 sm:$0xff]  }
 0x163   :  { %1861 = vmatpush1.bf16.msra.mxu0 %v6401_v2  ;;  %v6453_v2 = vld [vmem:[%s8790_s1 + $0x684] ss:$8 sps:$4 sm:$0xff]  }
 0x164   :  { %1862 = vmatprep.subr.bf16.mxu0 %v6406_v3  ;;  %v5672_v3 = vcombine.high %v2083_v62, %v2091_v63 }
 0x166   :  { %3605 = vmatprep.subr.bf16.mxu1 %v5672_v3  ;;  %v6509_v3 = vld [vmem:[%s8790_s1 + $0x7a4] ss:$8 sps:$4 sm:$0xff]  }
 0x167   :  { %1863 = vmatpush1.bf16.msra.mxu0 %v6404_v4  ;;  %v2099_v4 = vld [vmem:[%s8792_s3 + $0x400] sm:$0xff] }
 0x168   :  { %1864 = vmatprep.subr.bf16.mxu0 %v6409_v5  ;;  %v2107_v5 = vld [vmem:[%s8792_s3 + $0x440] sm:$0xff] }
 0x16b   :  { %1865 = vmatpush1.bf16.msra.mxu0 %v6407_v6  ;;  %v6451_v6 = vld [vmem:[%s8790_s1 + $0x680] ss:$8 sps:$4 sm:$0xff]  }
 0x16c   :  { %1866 = vmatprep.subr.bf16.mxu0 %v6412_v7  ;;  %v5671_v7 = vcombine.low %v2083_v62, %v2091_v63  ;;  %v6498_v62 = vld [vmem:[%s8790_s1 + $0x770] ss:$8 sps:$4 sm:$0xff]   ;;  %v6503_v63 = vld [vmem:[%s8790_s1 + $0x784] ss:$8 sps:$4 sm:$0xff]  }
 0x16e   :  { %3606 = vmatpush1.bf16.msra.mxu1 %v5671_v7  ;;  %v6515_v7 = vld [vmem:[%s8790_s1 + $0x7c4] ss:$8 sps:$4 sm:$0xff]  }
 0x16f   :  { %1867 = vmatpush1.bf16.msra.mxu0 %v6410_v8  ;;  %v6456_v8 = vld [vmem:[%s8790_s1 + $0x694] ss:$8 sps:$4 sm:$0xff]  }
 0x170   :  { %1868 = vmatprep.subr.bf16.mxu0 %v6415_v9  ;;  %v5688_v9 = vcombine.high %v2099_v4, %v2107_v5 }
 0x172   :  { %3607 = vmatprep.subr.bf16.mxu1 %v5688_v9  ;;  %v6518_v9 = vld [vmem:[%s8790_s1 + $0x7d4] ss:$8 sps:$4 sm:$0xff]  }
 0x173   :  { %1869 = vmatpush1.bf16.msra.mxu0 %v6413_v10  ;;  %v2115_v10 = vld [vmem:[%s8792_s3 + $0x480] sm:$0xff] }
 0x174   :  { %1870 = vmatprep.subr.bf16.mxu0 %v6418_v11  ;;  %v2123_v11 = vld [vmem:[%s8792_s3 + $0x4c0] sm:$0xff] }
 0x177   :  { %1871 = vmatpush1.bf16.msra.mxu0 %v6416_v12  ;;  %v6454_v12 = vld [vmem:[%s8790_s1 + $0x690] ss:$8 sps:$4 sm:$0xff]  }
 0x178   :  { %1872 = vmatprep.subr.bf16.mxu0 %v6421_v13  ;;  %v5687_v13 = vcombine.low %v2099_v4, %v2107_v5  ;;  %v6507_v4 = vld [vmem:[%s8790_s1 + $0x7a0] ss:$8 sps:$4 sm:$0xff]   ;;  %v6512_v5 = vld [vmem:[%s8790_s1 + $0x7b4] ss:$8 sps:$4 sm:$0xff]  }
 0x17a   :  { %3608 = vmatpush1.bf16.msra.mxu1 %v5687_v13  ;;  %v6524_v13 = vld [vmem:[%s8790_s1 + $0x7f4] ss:$8 sps:$4 sm:$0xff]  }
 0x17b   :  { %1873 = vmatpush1.bf16.msra.mxu0 %v6419_v14  ;;  %v6459_v14 = vld [vmem:[%s8790_s1 + $0x6a4] ss:$8 sps:$4 sm:$0xff]  }
 0x17c   :  { %1874 = vmatprep.subr.bf16.mxu0 %v6424_v15  ;;  %v5704_v15 = vcombine.high %v2115_v10, %v2123_v11 }
 0x17e   :  { %3609 = vmatprep.subr.bf16.mxu1 %v5704_v15 }
 0x17f   :  { %1875 = vmatpush1.bf16.msra.mxu0 %v6422_v16  ;;  %v2131_v16 = vld [vmem:[%s8792_s3 + $0x500] sm:$0xff] }
 0x180   :  { %1885 = vmatprep.subr.bf16.mxu0 %v6429_v17  ;;  %v2139_v17 = vld [vmem:[%s8792_s3 + $0x540] sm:$0xff] }
 0x181   :  { %v5719_v26 = vcombine.low %v2131_v16, %v2139_v17 }
 0x182   :  { %1877 = vmatmul.mubr.bf16.vlgmr.msra.gmra.mrb[0].mxu0 %v5297_v19  ;;  %v6457_v19 = vld [vmem:[%s8790_s1 + $0x6a0] ss:$8 sps:$4 sm:$0xff]  }
 0x183   :  { %1886 = vmatpush1.bf16.msra.mxu0 %v6427_v20  ;;  %1917 = vmatprep.mubr.bf16.mxu0 %v5300_v21  ;;  %v5703_v20 = vcombine.low %v2115_v10, %v2123_v11  ;;  %v6462_v21 = vld [vmem:[%s8790_s1 + $0x6b4] ss:$8 sps:$4 sm:$0xff]   ;;  %v6516_v10 = vld [vmem:[%s8790_s1 + $0x7d0] ss:$8 sps:$4 sm:$0xff]   ;;  %v6521_v11 = vld [vmem:[%s8790_s1 + $0x7e4] ss:$8 sps:$4 sm:$0xff]  }
 0x184   :  { %1887 = vmatprep.subr.bf16.mxu0 %v6432_v22  ;;  %v5720_v22 = vcombine.high %v2131_v16, %v2139_v17  ;;  %v2195_v16 = vld [vmem:[%s8792_s3 + $0x700] sm:$0xff] }
 0x185   :  { %3610 = vmatpush1.bf16.msra.mxu1 %v5703_v20  ;;  %v2203_v17 = vld [vmem:[%s8792_s3 + $0x740] sm:$0xff] }
 0x186   :  { %3611 = vmatprep.subr.bf16.mxu1 %v5720_v22  ;;  %v5783_v20 = vcombine.low %v2195_v16, %v2203_v17  ;;  %v2219_v22 = vld [vmem:[%s8792_s3 + $0x7c0] sm:$0xff] }
 0x187   :  { %1888 = vmatpush1.bf16.msra.mxu0 %v6430_v23  ;;  %v2147_v23 = vld [vmem:[%s8792_s3 + $0x580] sm:$0xff] }
 0x188   :  { %1889 = vmatprep.subr.bf16.mxu0 %v6435_v27  ;;  %v6465_v27 = vld [vmem:[%s8790_s1 + $0x6c4] ss:$8 sps:$4 sm:$0xff]   ;;  %v5736_v28 = vcombine.high %v2147_v23, %v2155_v24  ;;  %v5735_v32 = vcombine.low %v2147_v23, %v2155_v24 }
 0x189   :  { %3612 = vmatpush1.bf16.msra.mxu1 %v5719_v26  ;;  %v1980_v26 = vld [vmem:[%s8792_s3 + $0x48] sm:$0xff] }
 0x18a   :  { %3613 = vmatprep.subr.bf16.mxu1 %v5736_v28 }
 0x18b   :  { %1890 = vmatpush1.bf16.msra.mxu0 %v6433_v34  ;;  %v5752_v34 = vcombine.high %v2163_v29, %v2171_v30  ;;  %v293_v29 = vlaneseq }
 0x18c   :  { %1891 = vmatprep.subr.bf16.mxu0 %v6438_v36  ;;  %v2187_v36 = vld [vmem:[%s8792_s3 + $0x6c0] sm:$0xff] }
 0x18d   :  { %3614 = vmatpush1.bf16.msra.mxu1 %v5735_v32  ;;  %v7630_v30 = vshrl.u32 %v293_v29, 7  ;;  %v291_v32 = vld [vmem:[%s8793_s2] sm:$0x3]  ;;  %v2180_v29 = vld [vmem:[%s8792_s3 + $0x688] sm:$0xff] }
 0x18e   :  { %3615 = vmatprep.subr.bf16.mxu1 %v5752_v34 }
 0x18f   :  { %1892 = vmatpush1.bf16.msra.mxu0 %v6436_v40  ;;  %v5768_v40 = vcombine.high %v2179_v35, %v2187_v36 }
 0x190   :  { %1893 = vmatprep.subr.bf16.mxu0 %v6441_v42  ;;  %v5767_v42 = vcombine.low %v2179_v35, %v2187_v36 }
 0x191   :  { %3616 = vmatpush1.bf16.msra.mxu1 %v5751_v38 }
 0x192   :  { %3617 = vmatprep.subr.bf16.mxu1 %v5768_v40 }
 0x193   :  { %1894 = vmatpush1.bf16.msra.mxu0 %v6439_v46  ;;  %v7511_v46 = vld [vmem:[%s8791_s0 + $0x38] sm:$0xff] }
 0x194   :  { %1895 = vmatprep.subr.bf16.mxu0 %v6444_v48  ;;  %v6477_v48 = vld [vmem:[%s8790_s1 + $0x700] ss:$8 sps:$4 sm:$0xff]   ;;  %v5302_v49 = vcombine.high %v7511_v46, %v7511_v46  ;;  %v5301_v15 = vcombine.low %v7511_v46, %v7511_v46 }
 0x195   :  { %3618 = vmatpush1.bf16.msra.mxu1 %v5767_v42 }
 0x197   :  { %1896 = vmatpush1.bf16.msra.mxu0 %v6442_v52  ;;  %v6483_v52 = vld [vmem:[%s8790_s1 + $0x720] ss:$8 sps:$4 sm:$0xff]  }
 0x198   :  { %1897 = vmatprep.subr.bf16.mxu0 %v6447_v54  ;;  %v6486_v54 = vld [vmem:[%s8790_s1 + $0x730] ss:$8 sps:$4 sm:$0xff]  }
 0x19b   :  { %1898 = vmatpush1.bf16.msra.mxu0 %v6445_v58  ;;  %v6492_v58 = vld [vmem:[%s8790_s1 + $0x750] ss:$8 sps:$4 sm:$0xff]  }
 0x19c   :  { %1899 = vmatprep.subr.bf16.mxu0 %v6450_v60  ;;  %v6495_v60 = vld [vmem:[%s8790_s1 + $0x760] ss:$8 sps:$4 sm:$0xff]  }
 0x19f   :  { %1900 = vmatpush1.bf16.msra.mxu0 %v6448_v0  ;;  %v6501_v0 = vld [vmem:[%s8790_s1 + $0x780] ss:$8 sps:$4 sm:$0xff]  }
 0x1a0   :  { %1901 = vmatprep.subr.bf16.mxu0 %v6453_v2  ;;  %v6504_v2 = vld [vmem:[%s8790_s1 + $0x790] ss:$8 sps:$4 sm:$0xff]  }
 0x1a3   :  { %1902 = vmatpush1.bf16.msra.mxu0 %v6451_v6  ;;  %v6510_v6 = vld [vmem:[%s8790_s1 + $0x7b0] ss:$8 sps:$4 sm:$0xff]  }
 0x1a4   :  { %1903 = vmatprep.subr.bf16.mxu0 %v6456_v8  ;;  %v6513_v8 = vld [vmem:[%s8790_s1 + $0x7c0] ss:$8 sps:$4 sm:$0xff]  }
 0x1a7   :  { %1904 = vmatpush1.bf16.msra.mxu0 %v6454_v12  ;;  %v6519_v12 = vld [vmem:[%s8790_s1 + $0x7e0] ss:$8 sps:$4 sm:$0xff]  }
 0x1a8   :  { %1905 = vmatprep.subr.bf16.mxu0 %v6459_v14  ;;  %v6522_v14 = vld [vmem:[%s8790_s1 + $0x7f0] ss:$8 sps:$4 sm:$0xff]  }
 0x1ab   :  { %1906 = vmatpush1.bf16.msra.mxu0 %v6457_v19  ;;  %v5784_v19 = vcombine.high %v2195_v16, %v2203_v17  ;;  %v2132_v16 = vld [vmem:[%s8792_s3 + $0x508] sm:$0xff] }
 0x1ac   :  { %1907 = vmatprep.subr.bf16.mxu0 %v6462_v21  ;;  %v2211_v21 = vld [vmem:[%s8792_s3 + $0x780] sm:$0xff]  ;;  %v2140_v17 = vld [vmem:[%s8792_s3 + $0x548] sm:$0xff] }
 0x1ad   :  { %3619 = vmatprep.subr.bf16.mxu1 %v5784_v19  ;;  %v5800_v23 = vcombine.high %v2211_v21, %v2219_v22  ;;  %v5799_v24 = vcombine.low %v2211_v21, %v2219_v22  ;;  %v2148_v21 = vld [vmem:[%s8792_s3 + $0x588] sm:$0xff] }
 0x1ae   :  { %3620 = vmatpush1.bf16.msra.mxu1 %v5783_v20  ;;  %v5722_v20 = vcombine.high %v2132_v16, %v2140_v17  ;;  %v2156_v22 = vld [vmem:[%s8792_s3 + $0x5c8] sm:$0xff] }
 0x1af   :  { %1908 = vmatpush1.bf16.msra.mxu0 %v6460_v25  ;;  %3621 = vmatprep.subr.bf16.mxu1 %v5800_v23  ;;  %v1972_v25 = vld [vmem:[%s8792_s3 + $0x8] sm:$0xff]  ;;  %v5721_v23 = vcombine.low %v2132_v16, %v2140_v17 }
 0x1b0   :  { %1909 = vmatprep.subr.bf16.mxu0 %v6465_v27  ;;  %v5562_v27 = vcombine.high %v1972_v25, %v1980_v26  ;;  %v5561_v28 = vcombine.low %v1972_v25, %v1980_v26  ;;  %v2164_v25 = vld [vmem:[%s8792_s3 + $0x608] sm:$0xff] }
 0x1b1   :  { %v2172_v26 = vld [vmem:[%s8792_s3 + $0x648] sm:$0xff] }
 0x1b2   :  { %3622 = vmatpush1.bf16.msra.mxu1 %v5799_v24  ;;  %v5738_v24 = vcombine.high %v2148_v21, %v2156_v22  ;;  %v6537_v17 = vld [vmem:[%s8794_s5 + $0x68] sm:$0xff]  }
 0x1b3   :  { %1910 = vmatpush1.bf16.msra.mxu0 %v6463_v31  ;;  %3632 = vmatprep.subr.bf16.mxu1 %v5562_v27  ;;  %v7633_v31 = vsub.s32 0, %v7630_v30  ;;  %v5737_v27 = vcombine.low %v2148_v21, %v2156_v22  ;;  %v2085_v21 = vld [vmem:[%s8792_s3 + $0x390] sm:$0xff] }
 0x1b4   :  { %1911 = vmatprep.subr.bf16.mxu0 %v6468_v33  ;;  %v7639_v33 = vsub.s32 1, %v7630_v30 }
 0x1b5   :  { %v296_v34 = vrot.slane %v291_v32, %v7633_v31 }
 0x1b6   :  { %v300_v35 = vrot.slane %v291_v32, %v7639_v33  ;;  %v2188_v32 = vld [vmem:[%s8792_s3 + $0x6c8] sm:$0xff] }
 0x1b7   :  { %1912 = vmatpush1.bf16.msra.mxu0 %v6466_v37 }
 0x1b8   :  { %1913 = vmatprep.subr.bf16.mxu0 %v6471_v39 }
 0x1bb   :  { %1914 = vmatpush1.bf16.msra.mxu0 %v6469_v41 }
 0x1bc   :  { %1915 = vmatprep.subr.bf16.mxu0 %v6474_v43 }
 0x1bf   :  { %1916 = vmatpush1.bf16.msra.mxu0 %v6472_v44  ;;  %v1988_v44 = vld [vmem:[%s8792_s3 + $0x88] sm:$0xff] }
 0x1c0   :  { %1926 = vmatprep.subr.bf16.mxu0 %v6479_v45  ;;  %v1996_v45 = vld [vmem:[%s8792_s3 + $0xc8] sm:$0xff] }
 0x1c2   :  { %1918 = vmatmul.mubr.bf16.vlgmr.msra.gmra.mrb[0].mxu0 %v5299_v47 }
 0x1c3   :  { %1927 = vmatpush1.bf16.msra.mxu0 %v6477_v48  ;;  %1958 = vmatprep.mubr.bf16.mxu0 %v5302_v49  ;;  %v5578_v48 = vcombine.high %v1988_v44, %v1996_v45  ;;  %v2004_v49 = vld [vmem:[%s8792_s3 + $0x108] sm:$0xff] }
 0x1c4   :  { %1928 = vmatprep.subr.bf16.mxu0 %v6482_v50  ;;  %v2012_v50 = vld [vmem:[%s8792_s3 + $0x148] sm:$0xff] }
 0x1c7   :  { %1929 = vmatpush1.bf16.msra.mxu0 %v6480_v51  ;;  %v5577_v51 = vcombine.low %v1988_v44, %v1996_v45  ;;  %v1973_v44 = vld [vmem:[%s8792_s3 + $0x10] sm:$0xff] }
 0x1c8   :  { %1930 = vmatprep.subr.bf16.mxu0 %v6485_v18  ;;  %v5594_v18 = vcombine.high %v2004_v49, %v2012_v50  ;;  %v1981_v45 = vld [vmem:[%s8792_s3 + $0x50] sm:$0xff] }
 0x1cb   :  { %1931 = vmatpush1.bf16.msra.mxu0 %v6483_v52  ;;  %v2020_v52 = vld [vmem:[%s8792_s3 + $0x188] sm:$0xff] }
 0x1cc   :  { %1932 = vmatprep.subr.bf16.mxu0 %v6488_v53  ;;  %v2028_v53 = vld [vmem:[%s8792_s3 + $0x1c8] sm:$0xff] }
 0x1cf   :  { %1933 = vmatpush1.bf16.msra.mxu0 %v6486_v54  ;;  %v5593_v54 = vcombine.low %v2004_v49, %v2012_v50  ;;  %v5564_v49 = vcombine.high %v1973_v44, %v1981_v45  ;;  %v1989_v50 = vld [vmem:[%s8792_s3 + $0x90] sm:$0xff] }
 0x1d0   :  { %1934 = vmatprep.subr.bf16.mxu0 %v6491_v55  ;;  %v5610_v55 = vcombine.high %v2020_v52, %v2028_v53 }
 0x1d3   :  { %1935 = vmatpush1.bf16.msra.mxu0 %v6489_v56  ;;  %v2036_v56 = vld [vmem:[%s8792_s3 + $0x208] sm:$0xff] }
 0x1d4   :  { %1936 = vmatprep.subr.bf16.mxu0 %v6494_v57  ;;  %v2044_v57 = vld [vmem:[%s8792_s3 + $0x248] sm:$0xff] }
 0x1d7   :  { %1937 = vmatpush1.bf16.msra.mxu0 %v6492_v58  ;;  %v5609_v58 = vcombine.low %v2020_v52, %v2028_v53  ;;  %v6528_v52 = vld [vmem:[%s8794_s5] sm:$0xff]   ;;  %v5563_v53 = vcombine.low %v1973_v44, %v1981_v45  ;;  %v2149_v44 = vld [vmem:[%s8792_s3 + $0x590] sm:$0xff] }
 0x1d8   :  { %1938 = vmatprep.subr.bf16.mxu0 %v6497_v59  ;;  %v5626_v59 = vcombine.high %v2036_v56, %v2044_v57  ;;  %v2157_v45 = vld [vmem:[%s8792_s3 + $0x5d0] sm:$0xff] }
 0x1db   :  { %1939 = vmatpush1.bf16.msra.mxu0 %v6495_v60  ;;  %v2052_v60 = vld [vmem:[%s8792_s3 + $0x288] sm:$0xff] }
 0x1dc   :  { %1940 = vmatprep.subr.bf16.mxu0 %v6500_v61  ;;  %v2060_v61 = vld [vmem:[%s8792_s3 + $0x2c8] sm:$0xff] }
 0x1df   :  { %1941 = vmatpush1.bf16.msra.mxu0 %v6498_v62  ;;  %v5625_v62 = vcombine.low %v2036_v56, %v2044_v57  ;;  %v6529_v57 = vld [vmem:[%s8794_s5 + $0x48] sm:$0xff]  }
 0x1e0   :  { %1942 = vmatprep.subr.bf16.mxu0 %v6503_v63  ;;  %v5642_v63 = vcombine.high %v2052_v60, %v2060_v61 }
 0x1e3   :  { %1943 = vmatpush1.bf16.msra.mxu0 %v6501_v0  ;;  %v2068_v0 = vld [vmem:[%s8792_s3 + $0x308] sm:$0xff] }
 0x1e4   :  { %1944 = vmatprep.subr.bf16.mxu0 %v6506_v1  ;;  %v2076_v1 = vld [vmem:[%s8792_s3 + $0x348] sm:$0xff] }
 0x1e7   :  { %1945 = vmatpush1.bf16.msra.mxu0 %v6504_v2  ;;  %v5641_v2 = vcombine.low %v2052_v60, %v2060_v61  ;;  %v2021_v60 = vld [vmem:[%s8792_s3 + $0x190] sm:$0xff] }
 0x1e8   :  { %1946 = vmatprep.subr.bf16.mxu0 %v6509_v3  ;;  %v5658_v3 = vcombine.high %v2068_v0, %v2076_v1  ;;  %v2029_v61 = vld [vmem:[%s8792_s3 + $0x1d0] sm:$0xff] }
 0x1eb   :  { %1947 = vmatpush1.bf16.msra.mxu0 %v6507_v4  ;;  %v2084_v4 = vld [vmem:[%s8792_s3 + $0x388] sm:$0xff] }
 0x1ec   :  { %1948 = vmatprep.subr.bf16.mxu0 %v6512_v5  ;;  %v2092_v5 = vld [vmem:[%s8792_s3 + $0x3c8] sm:$0xff] }
 0x1ef   :  { %1949 = vmatpush1.bf16.msra.mxu0 %v6510_v6  ;;  %v5657_v6 = vcombine.low %v2068_v0, %v2076_v1  ;;  %v6532_v0 = vld [vmem:[%s8794_s5 + $0x10] sm:$0xff]  }
 0x1f0   :  { %1950 = vmatprep.subr.bf16.mxu0 %v6515_v7  ;;  %v5674_v7 = vcombine.high %v2084_v4, %v2092_v5 }
 0x1f3   :  { %1951 = vmatpush1.bf16.msra.mxu0 %v6513_v8  ;;  %v2100_v8 = vld [vmem:[%s8792_s3 + $0x408] sm:$0xff] }
 0x1f4   :  { %1952 = vmatprep.subr.bf16.mxu0 %v6518_v9  ;;  %v2108_v9 = vld [vmem:[%s8792_s3 + $0x448] sm:$0xff] }
 0x1f7   :  { %1953 = vmatpush1.bf16.msra.mxu0 %v6516_v10  ;;  %v5673_v10 = vcombine.low %v2084_v4, %v2092_v5  ;;  %v5612_v4 = vcombine.high %v2021_v60, %v2029_v61  ;;  %v6533_v5 = vld [vmem:[%s8794_s5 + $0x58] sm:$0xff]  }
 0x1f8   :  { %1954 = vmatprep.subr.bf16.mxu0 %v6521_v11  ;;  %v5690_v11 = vcombine.high %v2100_v8, %v2108_v9 }
 0x1fb   :  { %1955 = vmatpush1.bf16.msra.mxu0 %v6519_v12  ;;  %v2116_v12 = vld [vmem:[%s8792_s3 + $0x488] sm:$0xff] }
 0x1fc   :  { %1956 = vmatprep.subr.bf16.mxu0 %v6524_v13  ;;  %v2124_v13 = vld [vmem:[%s8792_s3 + $0x4c8] sm:$0xff] }
 0x1fd   :  { %v5705_v19 = vcombine.low %v2116_v12, %v2124_v13 }
 0x1ff   :  { %1957 = vmatpush1.bf16.msra.mxu0 %v6522_v14  ;;  %v5689_v14 = vcombine.low %v2100_v8, %v2108_v9  ;;  %v2053_v8 = vld [vmem:[%s8792_s3 + $0x290] sm:$0xff] }
 0x200   :  { %v2061_v9 = vld [vmem:[%s8792_s3 + $0x2d0] sm:$0xff] }
 0x201   :  { %v5644_v16 = vcombine.high %v2053_v8, %v2061_v9 }
 0x202   :  { %1959 = vmatmul.mubr.bf16.vlgmr.msra.gmra.mrb[0].mxu0 %v5301_v15  ;;  %v5706_v15 = vcombine.high %v2116_v12, %v2124_v13  ;;  %v6536_v12 = vld [vmem:[%s8794_s5 + $0x20] sm:$0xff]  }
 0x2d5   :  { %v1960_v36 = vpop.f32.mrb[0].mxu0 }
 0x2d6   :  { %v6096_v37 = vadd.f32 %v1960_v36, %v296_v34  ;;  %v1962_v38 = vpop.f32.mrb[1].mxu0  ;;  %v5753_v34 = vcombine.low %v2164_v25, %v2172_v26  ;;  %v2196_v36 = vld [vmem:[%s8792_s3 + $0x708] sm:$0xff] }
 0x2d7   :  { %v6097_v39 = vadd.f32 %v1962_v38, %v300_v35  ;;  %v1964_v40 = vpop.f32.mrb[2].mxu0  ;;  %v5770_v35 = vcombine.high %v2180_v29, %v2188_v32  ;;  %v5769_v38 = vcombine.low %v2180_v29, %v2188_v32  ;;  %v6541_v32 = vld [vmem:[%s8794_s5 + $0x78] sm:$0xff]  }
 0x2d8   :  { %v1967_v41 = vmax.f32 %v6096_v37, 0.0  ;;  %v1965_v42 = vpop.f32.mrb[3].mxu0  ;;  %v2204_v37 = vld [vmem:[%s8792_s3 + $0x748] sm:$0xff] }
 0x2d9   :  { %v1968_v43 = vmax.f32 %v6097_v39, 0.0  ;;  %v5786_v39 = vcombine.high %v2196_v36, %v2204_v37  ;;  %v2212_v40 = vld [vmem:[%s8792_s3 + $0x788] sm:$0xff]  ;;  %v5785_v42 = vcombine.low %v2196_v36, %v2204_v37  ;;  %v2117_v36 = vld [vmem:[%s8792_s3 + $0x490] sm:$0xff] }
 0x2da   :  { %v7651_v47 = vpack.c.bf16 %v1967_v41, %v1967_v41  ;;  %v2220_v41 = vld [vmem:[%s8792_s3 + $0x7c8] sm:$0xff]  ;;  %v2125_v37 = vld [vmem:[%s8792_s3 + $0x4d0] sm:$0xff] }
 0x2db   :  { %v7649_v46 = vpack.c.bf16 %v1968_v43, %v1968_v43  ;;  %v5802_v43 = vcombine.high %v2212_v40, %v2220_v41 }
 0x2dd   :  { %3623 = vmatprep.mubr.bf16.mxu1 %v7649_v46 }
 0x2de   :  { %3624 = vmatmul.mubr.bf16.vlgmr.msra.gmra.mrb[0].mxu1 %v7651_v47 }
 0x2df   :  { %3633 = vmatpush1.bf16.msra.mxu1 %v5561_v28  ;;  %3664 = vmatprep.mubr.bf16.mxu1 %v7649_v46  ;;  %v5754_v28 = vcombine.high %v2164_v25, %v2172_v26  ;;  %v6540_v25 = vld [vmem:[%s8794_s5 + $0x30] sm:$0xff]  }
 0x2e0   :  { %3634 = vmatprep.subr.bf16.mxu1 %v5578_v48  ;;  %v5801_v48 = vcombine.low %v2212_v40, %v2220_v41  ;;  %v2133_v40 = vld [vmem:[%s8792_s3 + $0x510] sm:$0xff] }
 0x2e1   :  { %v2141_v41 = vld [vmem:[%s8792_s3 + $0x550] sm:$0xff] }
 0x2e3   :  { %3635 = vmatpush1.bf16.msra.mxu1 %v5577_v51  ;;  %v1997_v51 = vld [vmem:[%s8792_s3 + $0xd0] sm:$0xff] }
 0x2e4   :  { %3636 = vmatprep.subr.bf16.mxu1 %v5594_v18  ;;  %v6527_v18 = vld [vmem:[%s8794_s5 + $0x40] sm:$0xff]   ;;  %v5580_v56 = vcombine.high %v1989_v50, %v1997_v51 }
 0x2e5   :  { %5942 = vmatprep.subr.bf16.mxu0 %v6527_v18  ;;  %v5740_v18 = vcombine.high %v2149_v44, %v2157_v45 }
 0x2e6   :  { %5943 = vmatpush3.bf16.msra.mxu0 %v6528_v52  ;;  %v5739_v52 = vcombine.low %v2149_v44, %v2157_v45  ;;  %v2134_v45 = vld [vmem:[%s8792_s3 + $0x518] sm:$0xff] }
 0x2e7   :  { %3637 = vmatpush1.bf16.msra.mxu1 %v5593_v54  ;;  %v2005_v54 = vld [vmem:[%s8792_s3 + $0x110] sm:$0xff]  ;;  %5944 = vmatprep.subr.bf16.mxu0 %v6529_v57 }
 0x2e8   :  { %3638 = vmatprep.subr.bf16.mxu1 %v5610_v55  ;;  %v2013_v55 = vld [vmem:[%s8792_s3 + $0x150] sm:$0xff] }
 0x2e9   :  { %v5595_v1 = vcombine.low %v2005_v54, %v2013_v55  ;;  %v2197_v57 = vld [vmem:[%s8792_s3 + $0x710] sm:$0xff] }
 0x2eb   :  { %3639 = vmatpush1.bf16.msra.mxu1 %v5609_v58  ;;  %v6530_v58 = vld [vmem:[%s8794_s5 + $0x8] sm:$0xff]  }
 0x2ec   :  { %3640 = vmatprep.subr.bf16.mxu1 %v5626_v59  ;;  %v5579_v59 = vcombine.low %v1989_v50, %v1997_v51  ;;  %5945 = vmatpush3.bf16.msra.mxu0 %v6530_v58  ;;  %v2165_v50 = vld [vmem:[%s8792_s3 + $0x610] sm:$0xff] }
 0x2ed   :  { %v2173_v51 = vld [vmem:[%s8792_s3 + $0x650] sm:$0xff] }
 0x2ee   :  { %v2205_v58 = vld [vmem:[%s8792_s3 + $0x750] sm:$0xff] }
 0x2ef   :  { %3641 = vmatpush1.bf16.msra.mxu1 %v5625_v62  ;;  %v5596_v62 = vcombine.high %v2005_v54, %v2013_v55  ;;  %v2189_v54 = vld [vmem:[%s8792_s3 + $0x6d0] sm:$0xff]  ;;  %v5756_v55 = vcombine.high %v2165_v50, %v2173_v51 }
 0x2f0   :  { %3642 = vmatprep.subr.bf16.mxu1 %v5642_v63  ;;  %v6531_v63 = vld [vmem:[%s8794_s5 + $0x50] sm:$0xff]  }
 0x2f1   :  { %5946 = vmatprep.subr.bf16.mxu0 %v6531_v63  ;;  %v5788_v63 = vcombine.high %v2197_v57, %v2205_v58 }
 0x2f2   :  { %5947 = vmatpush3.bf16.msra.mxu0 %v6532_v0  ;;  %v5787_v0 = vcombine.low %v2197_v57, %v2205_v58 }
 0x2f3   :  { %3643 = vmatpush1.bf16.msra.mxu1 %v5641_v2  ;;  %v2037_v2 = vld [vmem:[%s8792_s3 + $0x210] sm:$0xff]  ;;  %5948 = vmatprep.subr.bf16.mxu0 %v6533_v5  ;;  %v1990_v5 = vld [vmem:[%s8792_s3 + $0x98] sm:$0xff] }
 0x2f4   :  { %3644 = vmatprep.subr.bf16.mxu1 %v5658_v3  ;;  %v2045_v3 = vld [vmem:[%s8792_s3 + $0x250] sm:$0xff] }
 0x2f5   :  { %v5627_v13 = vcombine.low %v2037_v2, %v2045_v3 }
 0x2f7   :  { %3645 = vmatpush1.bf16.msra.mxu1 %v5657_v6  ;;  %v6534_v6 = vld [vmem:[%s8794_s5 + $0x18] sm:$0xff]  }
 0x2f8   :  { %3646 = vmatprep.subr.bf16.mxu1 %v5674_v7  ;;  %v5611_v7 = vcombine.low %v2021_v60, %v2029_v61  ;;  %5949 = vmatpush3.bf16.msra.mxu0 %v6534_v6  ;;  %v2213_v61 = vld [vmem:[%s8792_s3 + $0x790] sm:$0xff]  ;;  %v1998_v6 = vld [vmem:[%s8792_s3 + $0xd8] sm:$0xff] }
 0x2fb   :  { %3647 = vmatpush1.bf16.msra.mxu1 %v5673_v10  ;;  %v5628_v10 = vcombine.high %v2037_v2, %v2045_v3  ;;  %v1982_v2 = vld [vmem:[%s8792_s3 + $0x58] sm:$0xff] }
 0x2fc   :  { %3648 = vmatprep.subr.bf16.mxu1 %v5690_v11  ;;  %v6535_v11 = vld [vmem:[%s8794_s5 + $0x60] sm:$0xff]  }
 0x2fd   :  { %5950 = vmatprep.subr.bf16.mxu0 %v6535_v11  ;;  %v5582_v11 = vcombine.high %v1990_v5, %v1998_v6 }
 0x2fe   :  { %5951 = vmatpush3.bf16.msra.mxu0 %v6536_v12  ;;  %v5581_v12 = vcombine.low %v1990_v5, %v1998_v6 }
 0x2ff   :  { %3649 = vmatpush1.bf16.msra.mxu1 %v5689_v14  ;;  %v2069_v14 = vld [vmem:[%s8792_s3 + $0x310] sm:$0xff]  ;;  %5952 = vmatprep.subr.bf16.mxu0 %v6537_v17  ;;  %v2038_v17 = vld [vmem:[%s8792_s3 + $0x218] sm:$0xff] }
 0x300   :  { %3650 = vmatprep.subr.bf16.mxu1 %v5706_v15  ;;  %v2077_v15 = vld [vmem:[%s8792_s3 + $0x350] sm:$0xff] }
 0x301   :  { %v5660_v22 = vcombine.high %v2069_v14, %v2077_v15  ;;  %v5659_v26 = vcombine.low %v2069_v14, %v2077_v15  ;;  %v2030_v14 = vld [vmem:[%s8792_s3 + $0x1d8] sm:$0xff] }
 0x303   :  { %3651 = vmatpush1.bf16.msra.mxu1 %v5705_v19  ;;  %v6538_v19 = vld [vmem:[%s8794_s5 + $0x28] sm:$0xff]  }
 0x304   :  { %3652 = vmatprep.subr.bf16.mxu1 %v5722_v20  ;;  %v5643_v20 = vcombine.low %v2053_v8, %v2061_v9  ;;  %5953 = vmatpush3.bf16.msra.mxu0 %v6538_v19  ;;  %v2006_v9 = vld [vmem:[%s8792_s3 + $0x118] sm:$0xff] }
 0x305   :  { %v2046_v19 = vld [vmem:[%s8792_s3 + $0x258] sm:$0xff] }
 0x307   :  { %3653 = vmatpush1.bf16.msra.mxu1 %v5721_v23  ;;  %v2093_v23 = vld [vmem:[%s8792_s3 + $0x3d0] sm:$0xff] }
 0x308   :  { %3654 = vmatprep.subr.bf16.mxu1 %v5738_v24  ;;  %v6539_v24 = vld [vmem:[%s8794_s5 + $0x70] sm:$0xff]   ;;  %v5676_v29 = vcombine.high %v2085_v21, %v2093_v23 }
 0x309   :  { %5954 = vmatprep.subr.bf16.mxu0 %v6539_v24  ;;  %v5630_v24 = vcombine.high %v2038_v17, %v2046_v19 }
 0x30a   :  { %5955 = vmatpush3.bf16.msra.mxu0 %v6540_v25  ;;  %v5629_v25 = vcombine.low %v2038_v17, %v2046_v19  ;;  %v2015_v17 = vld [vmem:[%s8792_s3 + $0x160] sm:$0xff] }
 0x30b   :  { %3655 = vmatpush1.bf16.msra.mxu1 %v5737_v27  ;;  %v2101_v27 = vld [vmem:[%s8792_s3 + $0x410] sm:$0xff]  ;;  %5956 = vmatprep.subr.bf16.mxu0 %v6541_v32  ;;  %v2086_v32 = vld [vmem:[%s8792_s3 + $0x398] sm:$0xff] }
 0x30c   :  { %3656 = vmatprep.subr.bf16.mxu1 %v5754_v28  ;;  %v2109_v28 = vld [vmem:[%s8792_s3 + $0x450] sm:$0xff] }
 0x30f   :  { %3657 = vmatpush1.bf16.msra.mxu1 %v5753_v34  ;;  %v6542_v34 = vld [vmem:[%s8794_s5 + $0x38] sm:$0xff]  }
 0x310   :  { %3658 = vmatprep.subr.bf16.mxu1 %v5770_v35  ;;  %v5675_v35 = vcombine.low %v2085_v21, %v2093_v23  ;;  %5957 = vmatpush3.bf16.msra.mxu0 %v6542_v34  ;;  %v2062_v23 = vld [vmem:[%s8792_s3 + $0x2d8] sm:$0xff] }
 0x311   :  { %v2094_v34 = vld [vmem:[%s8792_s3 + $0x3d8] sm:$0xff] }
 0x313   :  { %3659 = vmatpush1.bf16.msra.mxu1 %v5769_v38  ;;  %v5692_v38 = vcombine.high %v2101_v27, %v2109_v28 }
 0x314   :  { %3660 = vmatprep.subr.bf16.mxu1 %v5786_v39  ;;  %v5691_v39 = vcombine.low %v2101_v27, %v2109_v28  ;;  %v2078_v27 = vld [vmem:[%s8792_s3 + $0x358] sm:$0xff] }
 0x317   :  { %3661 = vmatpush1.bf16.msra.mxu1 %v5785_v42  ;;  %v5708_v42 = vcombine.high %v2117_v36, %v2125_v37 }
 0x318   :  { %3662 = vmatprep.subr.bf16.mxu1 %v5802_v43  ;;  %v5707_v43 = vcombine.low %v2117_v36, %v2125_v37  ;;  %v2102_v37 = vld [vmem:[%s8792_s3 + $0x418] sm:$0xff] }
 0x31b   :  { %3663 = vmatpush1.bf16.msra.mxu1 %v5801_v48  ;;  %v5724_v48 = vcombine.high %v2133_v40, %v2141_v41 }
 0x31c   :  { %3673 = vmatprep.subr.bf16.mxu1 %v5564_v49  ;;  %v5723_v49 = vcombine.low %v2133_v40, %v2141_v41  ;;  %v5677_v40 = vcombine.low %v2086_v32, %v2094_v34  ;;  %v2118_v41 = vld [vmem:[%s8792_s3 + $0x498] sm:$0xff] }
 0x31e   :  { %3665 = vmatmul.mubr.bf16.vlgmr.msra.gmra.mrb[4].mxu1 %v7651_v47 }
 0x31f   :  { %3674 = vmatpush1.bf16.msra.mxu1 %v5563_v53  ;;  %3705 = vmatprep.mubr.bf16.mxu1 %v7649_v46  ;;  %v2181_v53 = vld [vmem:[%s8792_s3 + $0x690] sm:$0xff] }
 0x320   :  { %3675 = vmatprep.subr.bf16.mxu1 %v5580_v56  ;;  %v5755_v56 = vcombine.low %v2165_v50, %v2173_v51  ;;  %v5771_v60 = vcombine.low %v2181_v53, %v2189_v54  ;;  %v2150_v51 = vld [vmem:[%s8792_s3 + $0x598] sm:$0xff] }
 0x323   :  { %3676 = vmatpush1.bf16.msra.mxu1 %v5579_v59  ;;  %v5772_v59 = vcombine.high %v2181_v53, %v2189_v54 }
 0x324   :  { %3677 = vmatprep.subr.bf16.mxu1 %v5596_v62  ;;  %v2221_v62 = vld [vmem:[%s8792_s3 + $0x7d0] sm:$0xff] }
 0x325   :  { %v5804_v3 = vcombine.high %v2213_v61, %v2221_v62 }
 0x327   :  { %3678 = vmatpush1.bf16.msra.mxu1 %v5595_v1  ;;  %v1974_v1 = vld [vmem:[%s8792_s3 + $0x18] sm:$0xff] }
 0x328   :  { %3679 = vmatprep.subr.bf16.mxu1 %v5612_v4  ;;  %v5803_v4 = vcombine.low %v2213_v61, %v2221_v62  ;;  %v5565_v8 = vcombine.low %v1974_v1, %v1982_v2 }
 0x32b   :  { %3680 = vmatpush1.bf16.msra.mxu1 %v5611_v7  ;;  %v5566_v7 = vcombine.high %v1974_v1, %v1982_v2 }
 0x32c   :  { %3681 = vmatprep.subr.bf16.mxu1 %v5628_v10  ;;  %v2014_v10 = vld [vmem:[%s8792_s3 + $0x158] sm:$0xff] }
 0x32d   :  { %v5598_v15 = vcombine.high %v2006_v9, %v2014_v10 }
 0x32f   :  { %3682 = vmatpush1.bf16.msra.mxu1 %v5627_v13  ;;  %v2022_v13 = vld [vmem:[%s8792_s3 + $0x198] sm:$0xff] }
 0x330   :  { %3683 = vmatprep.subr.bf16.mxu1 %v5644_v16  ;;  %v5597_v16 = vcombine.low %v2006_v9, %v2014_v10  ;;  %v5613_v21 = vcombine.low %v2022_v13, %v2030_v14 }
 0x333   :  { %3684 = vmatpush1.bf16.msra.mxu1 %v5643_v20  ;;  %v5614_v20 = vcombine.high %v2022_v13, %v2030_v14  ;;  %v1999_v13 = vld [vmem:[%s8792_s3 + $0xe0] sm:$0xff] }
 0x334   :  { %3685 = vmatprep.subr.bf16.mxu1 %v5660_v22  ;;  %v2054_v22 = vld [vmem:[%s8792_s3 + $0x298] sm:$0xff] }
 0x335   :  { %v5646_v28 = vcombine.high %v2054_v22, %v2062_v23 }
 0x337   :  { %3686 = vmatpush1.bf16.msra.mxu1 %v5659_v26  ;;  %v2070_v26 = vld [vmem:[%s8792_s3 + $0x318] sm:$0xff] }
 0x338   :  { %3687 = vmatprep.subr.bf16.mxu1 %v5676_v29  ;;  %v5645_v29 = vcombine.low %v2054_v22, %v2062_v23  ;;  %v5661_v36 = vcombine.low %v2070_v26, %v2078_v27  ;;  %v2031_v22 = vld [vmem:[%s8792_s3 + $0x1e0] sm:$0xff] }
 0x33b   :  { %3688 = vmatpush1.bf16.msra.mxu1 %v5675_v35  ;;  %v5662_v35 = vcombine.high %v2070_v26, %v2078_v27  ;;  %v2047_v26 = vld [vmem:[%s8792_s3 + $0x260] sm:$0xff] }
 0x33c   :  { %3689 = vmatprep.subr.bf16.mxu1 %v5692_v38  ;;  %v2110_v38 = vld [vmem:[%s8792_s3 + $0x458] sm:$0xff] }
 0x33d   :  { %v5693_v44 = vcombine.low %v2102_v37, %v2110_v38 }
 0x33f   :  { %3690 = vmatpush1.bf16.msra.mxu1 %v5691_v39  ;;  %v5678_v39 = vcombine.high %v2086_v32, %v2094_v34  ;;  %v2063_v32 = vld [vmem:[%s8792_s3 + $0x2e0] sm:$0xff] }
 0x340   :  { %3691 = vmatprep.subr.bf16.mxu1 %v5708_v42  ;;  %v2126_v42 = vld [vmem:[%s8792_s3 + $0x4d8] sm:$0xff] }
 0x341   :  { %v5709_v50 = vcombine.low %v2118_v41, %v2126_v42 }
 0x343   :  { %3692 = vmatpush1.bf16.msra.mxu1 %v5707_v43  ;;  %v5694_v43 = vcombine.high %v2102_v37, %v2110_v38  ;;  %v2071_v37 = vld [vmem:[%s8792_s3 + $0x320] sm:$0xff] }
 0x344   :  { %3693 = vmatprep.subr.bf16.mxu1 %v5724_v48  ;;  %v2142_v48 = vld [vmem:[%s8792_s3 + $0x558] sm:$0xff]  ;;  %v2079_v38 = vld [vmem:[%s8792_s3 + $0x360] sm:$0xff] }
 0x345   :  { %v5725_v53 = vcombine.low %v2134_v45, %v2142_v48 }
 0x347   :  { %3694 = vmatpush1.bf16.msra.mxu1 %v5723_v49  ;;  %v5710_v49 = vcombine.high %v2118_v41, %v2126_v42  ;;  %v5664_v42 = vcombine.high %v2071_v37, %v2079_v38 }
 0x348   :  { %3695 = vmatprep.subr.bf16.mxu1 %v5740_v18  ;;  %v2158_v18 = vld [vmem:[%s8792_s3 + $0x5d8] sm:$0xff] }
 0x349   :  { %v5742_v54 = vcombine.high %v2150_v51, %v2158_v18  ;;  %v5741_v57 = vcombine.low %v2150_v51, %v2158_v18  ;;  %v5663_v18 = vcombine.low %v2071_v37, %v2079_v38  ;;  %v6556_v38 = vld [vmem:[%s8794_s5 + $0x130] sm:$0xff]  }
 0x34b   :  { %3696 = vmatpush1.bf16.msra.mxu1 %v5739_v52  ;;  %v5726_v52 = vcombine.high %v2134_v45, %v2142_v48  ;;  %v2095_v45 = vld [vmem:[%s8792_s3 + $0x3e0] sm:$0xff] }
 0x34c   :  { %3697 = vmatprep.subr.bf16.mxu1 %v5756_v55  ;;  %v2166_v55 = vld [vmem:[%s8792_s3 + $0x618] sm:$0xff] }
 0x34f   :  { %3698 = vmatpush1.bf16.msra.mxu1 %v5755_v56  ;;  %v2174_v56 = vld [vmem:[%s8792_s3 + $0x658] sm:$0xff] }
 0x350   :  { %3699 = vmatprep.subr.bf16.mxu1 %v5772_v59  ;;  %v5758_v58 = vcombine.high %v2166_v55, %v2174_v56  ;;  %v2182_v59 = vld [vmem:[%s8792_s3 + $0x698] sm:$0xff]  ;;  %v5757_v61 = vcombine.low %v2166_v55, %v2174_v56  ;;  %v2103_v56 = vld [vmem:[%s8792_s3 + $0x420] sm:$0xff] }
 0x353   :  { %3700 = vmatpush1.bf16.msra.mxu1 %v5771_v60  ;;  %v2190_v60 = vld [vmem:[%s8792_s3 + $0x6d8] sm:$0xff] }
 0x354   :  { %3701 = vmatprep.subr.bf16.mxu1 %v5788_v63  ;;  %v5774_v62 = vcombine.high %v2182_v59, %v2190_v60  ;;  %v2198_v63 = vld [vmem:[%s8792_s3 + $0x718] sm:$0xff]  ;;  %v5773_v1 = vcombine.low %v2182_v59, %v2190_v60  ;;  %v6544_v60 = vld [vmem:[%s8794_s5 + $0x100] sm:$0xff]  }
 0x357   :  { %3702 = vmatpush1.bf16.msra.mxu1 %v5787_v0  ;;  %v2206_v0 = vld [vmem:[%s8792_s3 + $0x758] sm:$0xff] }
 0x358   :  { %3703 = vmatprep.subr.bf16.mxu1 %v5804_v3  ;;  %v5790_v2 = vcombine.high %v2198_v63, %v2206_v0  ;;  %v2214_v3 = vld [vmem:[%s8792_s3 + $0x798] sm:$0xff]  ;;  %v5789_v5 = vcombine.low %v2198_v63, %v2206_v0  ;;  %v6545_v63 = vld [vmem:[%s8794_s5 + $0x148] sm:$0xff]   ;;  %v2119_v0 = vld [vmem:[%s8792_s3 + $0x4a0] sm:$0xff] }
 0x35b   :  { %3704 = vmatpush1.bf16.msra.mxu1 %v5803_v4  ;;  %v2222_v4 = vld [vmem:[%s8792_s3 + $0x7d8] sm:$0xff] }
 0x35c   :  { %3714 = vmatprep.subr.bf16.mxu1 %v5566_v7  ;;  %v5806_v6 = vcombine.high %v2214_v3, %v2222_v4  ;;  %v1975_v7 = vld [vmem:[%s8792_s3 + $0x20] sm:$0xff]  ;;  %v5805_v9 = vcombine.low %v2214_v3, %v2222_v4  ;;  %v6546_v3 = vld [vmem:[%s8794_s5 + $0x108] sm:$0xff]  }
 0x35e   :  { %3706 = vmatmul.mubr.bf16.vlgmr.msra.gmra.mrb[8].mxu1 %v7651_v47 }
 0x35f   :  { %3715 = vmatpush1.bf16.msra.mxu1 %v5565_v8  ;;  %3746 = vmatprep.mubr.bf16.mxu1 %v7649_v46  ;;  %v1983_v8 = vld [vmem:[%s8792_s3 + $0x60] sm:$0xff] }
 0x360   :  { %3716 = vmatprep.subr.bf16.mxu1 %v5582_v11  ;;  %v5568_v10 = vcombine.high %v1975_v7, %v1983_v8  ;;  %v6543_v11 = vld [vmem:[%s8794_s5 + $0x140] sm:$0xff]   ;;  %v5567_v14 = vcombine.low %v1975_v7, %v1983_v8 }
 0x361   :  { %5986 = vmatprep.subr.bf16.mxu0 %v6543_v11  ;;  %v2143_v7 = vld [vmem:[%s8792_s3 + $0x560] sm:$0xff]  ;;  %v6549_v11 = vld [vmem:[%s8794_s5 + $0x158] sm:$0xff]  }
 0x363   :  { %3717 = vmatpush1.bf16.msra.mxu1 %v5581_v12  ;;  %v1991_v12 = vld [vmem:[%s8792_s3 + $0xa0] sm:$0xff] }
 0x364   :  { %3718 = vmatprep.subr.bf16.mxu1 %v5598_v15  ;;  %v5584_v15 = vcombine.high %v1991_v12, %v1999_v13  ;;  %v5583_v19 = vcombine.low %v1991_v12, %v1999_v13  ;;  %v2151_v12 = vld [vmem:[%s8792_s3 + $0x5a0] sm:$0xff] }
 0x365   :  { %v2159_v13 = vld [vmem:[%s8792_s3 + $0x5e0] sm:$0xff] }
 0x367   :  { %3719 = vmatpush1.bf16.msra.mxu1 %v5597_v16  ;;  %v2007_v16 = vld [vmem:[%s8792_s3 + $0x120] sm:$0xff] }
 0x368   :  { %3720 = vmatprep.subr.bf16.mxu1 %v5614_v20  ;;  %v5600_v20 = vcombine.high %v2007_v16, %v2015_v17  ;;  %v5599_v23 = vcombine.low %v2007_v16, %v2015_v17  ;;  %v5744_v16 = vcombine.high %v2151_v12, %v2159_v13  ;;  %v6551_v17 = vld [vmem:[%s8794_s5 + $0x160] sm:$0xff]  }
 0x36b   :  { %3721 = vmatpush1.bf16.msra.mxu1 %v5613_v21  ;;  %v2023_v21 = vld [vmem:[%s8792_s3 + $0x1a0] sm:$0xff] }
 0x36c   :  { %3722 = vmatprep.subr.bf16.mxu1 %v5630_v24  ;;  %v5616_v24 = vcombine.high %v2023_v21, %v2031_v22  ;;  %v5615_v27 = vcombine.low %v2023_v21, %v2031_v22  ;;  %v5743_v21 = vcombine.low %v2151_v12, %v2159_v13  ;;  %v6552_v22 = vld [vmem:[%s8794_s5 + $0x120] sm:$0xff]   ;;  %v2088_v12 = vld [vmem:[%s8792_s3 + $0x3a8] sm:$0xff] }
 0x36d   :  { %v2096_v13 = vld [vmem:[%s8792_s3 + $0x3e8] sm:$0xff] }
 0x36f   :  { %3723 = vmatpush1.bf16.msra.mxu1 %v5629_v25  ;;  %v2039_v25 = vld [vmem:[%s8792_s3 + $0x220] sm:$0xff] }
 0x370   :  { %3724 = vmatprep.subr.bf16.mxu1 %v5646_v28  ;;  %v5632_v28 = vcombine.high %v2039_v25, %v2047_v26  ;;  %v5631_v34 = vcombine.low %v2039_v25, %v2047_v26  ;;  %v2183_v25 = vld [vmem:[%s8792_s3 + $0x6a0] sm:$0xff] }
 0x371   :  { %v2191_v26 = vld [vmem:[%s8792_s3 + $0x6e0] sm:$0xff] }
 0x372   :  { %v5775_v37 = vcombine.low %v2183_v25, %v2191_v26 }
 0x373   :  { %3725 = vmatpush1.bf16.msra.mxu1 %v5645_v29  ;;  %v2055_v29 = vld [vmem:[%s8792_s3 + $0x2a0] sm:$0xff] }
 0x374   :  { %3726 = vmatprep.subr.bf16.mxu1 %v5662_v35  ;;  %v8028_v35 = vld [vmem:[%s8795_s4] sm:$0xff] }
 0x375   :  { %v2238_v41 = vrot.slane %v8028_v35, %v7639_v33 }
 0x377   :  { %3727 = vmatpush1.bf16.msra.mxu1 %v5661_v36  ;;  %v5648_v36 = vcombine.high %v2055_v29, %v2063_v32 }
 0x378   :  { %3728 = vmatprep.subr.bf16.mxu1 %v5678_v39  ;;  %v2234_v39 = vrot.slane %v8028_v35, %v7633_v31 }
 0x37b   :  { %3729 = vmatpush1.bf16.msra.mxu1 %v5677_v40  ;;  %v5647_v40 = vcombine.low %v2055_v29, %v2063_v32  ;;  %v5776_v29 = vcombine.high %v2183_v25, %v2191_v26  ;;  %v6555_v32 = vld [vmem:[%s8794_s5 + $0x170] sm:$0xff]   ;;  %v2128_v25 = vld [vmem:[%s8792_s3 + $0x4e8] sm:$0xff] }
 0x37c   :  { %3730 = vmatprep.subr.bf16.mxu1 %v5694_v43 }
 0x37f   :  { %3731 = vmatpush1.bf16.msra.mxu1 %v5693_v44  ;;  %v2087_v44 = vld [vmem:[%s8792_s3 + $0x3a0] sm:$0xff] }
 0x380   :  { %3732 = vmatprep.subr.bf16.mxu1 %v5710_v49  ;;  %v5679_v59 = vcombine.low %v2087_v44, %v2095_v45 }
 0x383   :  { %3733 = vmatpush1.bf16.msra.mxu1 %v5709_v50 }
 0x384   :  { %3734 = vmatprep.subr.bf16.mxu1 %v5726_v52 }
 0x387   :  { %3735 = vmatpush1.bf16.msra.mxu1 %v5725_v53 }
 0x388   :  { %3736 = vmatprep.subr.bf16.mxu1 %v5742_v54  ;;  %v5680_v54 = vcombine.high %v2087_v44, %v2095_v45  ;;  %v6558_v44 = vld [vmem:[%s8794_s5 + $0x138] sm:$0xff]  }
 0x38b   :  { %3737 = vmatpush1.bf16.msra.mxu1 %v5741_v57  ;;  %v2111_v57 = vld [vmem:[%s8792_s3 + $0x460] sm:$0xff] }
 0x38c   :  { %3738 = vmatprep.subr.bf16.mxu1 %v5758_v58 }
 0x38f   :  { %3739 = vmatpush1.bf16.msra.mxu1 %v5757_v61 }
 0x390   :  { %3740 = vmatprep.subr.bf16.mxu1 %v5774_v62  ;;  %v5696_v62 = vcombine.high %v2103_v56, %v2111_v57 }
 0x393   :  { %3741 = vmatpush1.bf16.msra.mxu1 %v5773_v1  ;;  %v2127_v1 = vld [vmem:[%s8792_s3 + $0x4e0] sm:$0xff] }
 0x394   :  { %3742 = vmatprep.subr.bf16.mxu1 %v5790_v2  ;;  %v5695_v2 = vcombine.low %v2103_v56, %v2111_v57  ;;  %v5712_v4 = vcombine.high %v2119_v0, %v2127_v1  ;;  %v5711_v8 = vcombine.low %v2119_v0, %v2127_v1  ;;  %v2016_v56 = vld [vmem:[%s8792_s3 + $0x168] sm:$0xff] }
 0x395   :  { %v2048_v0 = vld [vmem:[%s8792_s3 + $0x268] sm:$0xff] }
 0x397   :  { %3743 = vmatpush1.bf16.msra.mxu1 %v5789_v5  ;;  %v6547_v5 = vld [vmem:[%s8794_s5 + $0x150] sm:$0xff]  }
 0x398   :  { %3744 = vmatprep.subr.bf16.mxu1 %v5806_v6  ;;  %v2135_v6 = vld [vmem:[%s8792_s3 + $0x520] sm:$0xff] }
 0x39b   :  { %3745 = vmatpush1.bf16.msra.mxu1 %v5805_v9  ;;  %v6548_v9 = vld [vmem:[%s8794_s5 + $0x110] sm:$0xff]  }
 0x39c   :  { %3755 = vmatprep.subr.bf16.mxu1 %v5568_v10  ;;  %v5728_v10 = vcombine.high %v2135_v6, %v2143_v7 }
 0x39e   :  { %3747 = vmatmul.mubr.bf16.vlgmr.msra.gmra.mrb[12].mxu1 %v7651_v47 }
 0x39f   :  { %3756 = vmatpush1.bf16.msra.mxu1 %v5567_v14  ;;  %3787 = vmatprep.mubr.bf16.mxu1 %v7649_v46  ;;  %v5727_v14 = vcombine.low %v2135_v6, %v2143_v7  ;;  %v2072_v7 = vld [vmem:[%s8792_s3 + $0x328] sm:$0xff] }
 0x3a0   :  { %3757 = vmatprep.subr.bf16.mxu1 %v5584_v15  ;;  %v6550_v15 = vld [vmem:[%s8794_s5 + $0x118] sm:$0xff]  }
 0x3a3   :  { %3758 = vmatpush1.bf16.msra.mxu1 %v5583_v19  ;;  %v2167_v19 = vld [vmem:[%s8792_s3 + $0x620] sm:$0xff] }
 0x3a4   :  { %3759 = vmatprep.subr.bf16.mxu1 %v5600_v20  ;;  %v2175_v20 = vld [vmem:[%s8792_s3 + $0x660] sm:$0xff] }
 0x3a7   :  { %3760 = vmatpush1.bf16.msra.mxu1 %v5599_v23  ;;  %v5760_v23 = vcombine.high %v2167_v19, %v2175_v20 }
 0x3a8   :  { %3761 = vmatprep.subr.bf16.mxu1 %v5616_v24  ;;  %v6553_v24 = vld [vmem:[%s8794_s5 + $0x168] sm:$0xff]  }
 0x3ab   :  { %3762 = vmatpush1.bf16.msra.mxu1 %v5615_v27  ;;  %v5759_v27 = vcombine.low %v2167_v19, %v2175_v20  ;;  %v5682_v19 = vcombine.high %v2088_v12, %v2096_v13  ;;  %v2104_v20 = vld [vmem:[%s8792_s3 + $0x428] sm:$0xff] }
 0x3ac   :  { %3763 = vmatprep.subr.bf16.mxu1 %v5632_v28  ;;  %v6554_v28 = vld [vmem:[%s8794_s5 + $0x128] sm:$0xff]  }
 0x3af   :  { %3764 = vmatpush1.bf16.msra.mxu1 %v5631_v34  ;;  %v2199_v34 = vld [vmem:[%s8792_s3 + $0x720] sm:$0xff] }
 0x3b0   :  { %3765 = vmatprep.subr.bf16.mxu1 %v5648_v36  ;;  %v2207_v36 = vld [vmem:[%s8792_s3 + $0x760] sm:$0xff] }
 0x3b1   :  { %v3625_v43 = vpop.f32.mrb[0].mxu1 }
 0x3b2   :  { %v3626_v48 = vadd.f32 %v3625_v43, %v2234_v39  ;;  %v3627_v49 = vpop.f32.mrb[1].mxu1  ;;  %v5792_v39 = vcombine.high %v2199_v34, %v2207_v36  ;;  %v5791_v43 = vcombine.low %v2199_v34, %v2207_v36  ;;  %v2152_v36 = vld [vmem:[%s8792_s3 + $0x5a8] sm:$0xff] }
 0x3b3   :  { %v3628_v50 = vadd.f32 %v3627_v49, %v2238_v41  ;;  %3766 = vmatpush1.bf16.msra.mxu1 %v5647_v40  ;;  %v3629_v51 = vpop.f32.mrb[2].mxu1  ;;  %v6557_v40 = vld [vmem:[%s8794_s5 + $0x178] sm:$0xff]   ;;  %v2215_v41 = vld [vmem:[%s8792_s3 + $0x7a0] sm:$0xff]  ;;  %v1984_v49 = vld [vmem:[%s8792_s3 + $0x68] sm:$0xff] }
 0x3b4   :  { %v3919_v52 = vmax.f32 %v3626_v48, 0.0  ;;  %v3630_v53 = vpop.f32.mrb[3].mxu1  ;;  %3767 = vmatprep.subr.bf16.mxu1 %v5664_v42  ;;  %v2223_v42 = vld [vmem:[%s8792_s3 + $0x7e0] sm:$0xff]  ;;  %v1976_v48 = vld [vmem:[%s8792_s3 + $0x28] sm:$0xff] }
 0x3b5   :  { %v3920_v55 = vmax.f32 %v3628_v50, 0.0  ;;  %v5808_v45 = vcombine.high %v2215_v41, %v2223_v42  ;;  %v5807_v50 = vcombine.low %v2215_v41, %v2223_v42  ;;  %v5570_v51 = vcombine.high %v1976_v48, %v1984_v49  ;;  %v2176_v41 = vld [vmem:[%s8792_s3 + $0x668] sm:$0xff] }
 0x3b6   :  { %v3935_v61 = vpack.c.bf16 %v3919_v52, %v3919_v52  ;;  %v2000_v52 = vld [vmem:[%s8792_s3 + $0xe8] sm:$0xff]  ;;  %v5569_v53 = vcombine.low %v1976_v48, %v1984_v49 }
 0x3b7   :  { %v3936_v58 = vpack.c.bf16 %v3920_v55, %v3920_v55  ;;  %3768 = vmatpush1.bf16.msra.mxu1 %v5663_v18  ;;  %v1992_v18 = vld [vmem:[%s8792_s3 + $0xa8] sm:$0xff] }
 0x3b8   :  { %3769 = vmatprep.subr.bf16.mxu1 %v5680_v54  ;;  %v5586_v54 = vcombine.high %v1992_v18, %v2000_v52  ;;  %v2008_v55 = vld [vmem:[%s8792_s3 + $0x128] sm:$0xff]  ;;  %v5585_v57 = vcombine.low %v1992_v18, %v2000_v52 }
 0x3b9   :  { %4994 = vmatprep.mubr.bf16.mxu0 %v3936_v58  ;;  %v5602_v58 = vcombine.high %v2008_v55, %v2016_v56 }
 0x3ba   :  { %4995 = vmatmul.mubr.bf16.vlgmr.msra.gmra.mrb[4].mxu0 %v3935_v61  ;;  %v5601_v61 = vcombine.low %v2008_v55, %v2016_v56 }
 0x3bb   :  { %3770 = vmatpush1.bf16.msra.mxu1 %v5679_v59  ;;  %5987 = vmatpush3.bf16.msra.mxu0 %v6544_v60  ;;  %v2024_v59 = vld [vmem:[%s8792_s3 + $0x1a8] sm:$0xff] }
 0x3bc   :  { %3771 = vmatprep.subr.bf16.mxu1 %v5696_v62  ;;  %5988 = vmatprep.subr.bf16.mxu0 %v6545_v63  ;;  %v2032_v60 = vld [vmem:[%s8792_s3 + $0x1e8] sm:$0xff] }
 0x3bd   :  { %v5618_v62 = vcombine.high %v2024_v59, %v2032_v60  ;;  %v2040_v63 = vld [vmem:[%s8792_s3 + $0x228] sm:$0xff]  ;;  %v5617_v1 = vcombine.low %v2024_v59, %v2032_v60 }
 0x3bf   :  { %3772 = vmatpush1.bf16.msra.mxu1 %v5695_v2  ;;  %5989 = vmatpush3.bf16.msra.mxu0 %v6546_v3  ;;  %v5634_v2 = vcombine.high %v2040_v63, %v2048_v0  ;;  %v2056_v3 = vld [vmem:[%s8792_s3 + $0x2a8] sm:$0xff] }
 0x3c0   :  { %3773 = vmatprep.subr.bf16.mxu1 %v5712_v4  ;;  %5990 = vmatprep.subr.bf16.mxu0 %v6547_v5  ;;  %v2064_v4 = vld [vmem:[%s8792_s3 + $0x2e8] sm:$0xff]  ;;  %v5633_v5 = vcombine.low %v2040_v63, %v2048_v0  ;;  %v2001_v63 = vld [vmem:[%s8792_s3 + $0xf0] sm:$0xff] }
 0x3c1   :  { %v5650_v6 = vcombine.high %v2056_v3, %v2064_v4 }
 0x3c3   :  { %3774 = vmatpush1.bf16.msra.mxu1 %v5711_v8  ;;  %5991 = vmatpush3.bf16.msra.mxu0 %v6548_v9  ;;  %v2080_v8 = vld [vmem:[%s8792_s3 + $0x368] sm:$0xff]  ;;  %v5649_v9 = vcombine.low %v2056_v3, %v2064_v4  ;;  %v2017_v3 = vld [vmem:[%s8792_s3 + $0x170] sm:$0xff] }
 0x3c4   :  { %3775 = vmatprep.subr.bf16.mxu1 %v5728_v10  ;;  %5992 = vmatprep.subr.bf16.mxu0 %v6549_v11  ;;  %v5666_v10 = vcombine.high %v2072_v7, %v2080_v8 }
 0x3c7   :  { %3776 = vmatpush1.bf16.msra.mxu1 %v5727_v14  ;;  %5993 = vmatpush3.bf16.msra.mxu0 %v6550_v15 }
 0x3c8   :  { %3777 = vmatprep.subr.bf16.mxu1 %v5744_v16  ;;  %5994 = vmatprep.subr.bf16.mxu0 %v6551_v17  ;;  %v5665_v16 = vcombine.low %v2072_v7, %v2080_v8  ;;  %v2033_v7 = vld [vmem:[%s8792_s3 + $0x1f0] sm:$0xff] }
 0x3cb   :  { %3778 = vmatpush1.bf16.msra.mxu1 %v5743_v21  ;;  %5995 = vmatpush3.bf16.msra.mxu0 %v6552_v22  ;;  %v2112_v21 = vld [vmem:[%s8792_s3 + $0x468] sm:$0xff]  ;;  %v5681_v22 = vcombine.low %v2088_v12, %v2096_v13  ;;  %v2049_v12 = vld [vmem:[%s8792_s3 + $0x270] sm:$0xff] }
 0x3cc   :  { %3779 = vmatprep.subr.bf16.mxu1 %v5760_v23  ;;  %5996 = vmatprep.subr.bf16.mxu0 %v6553_v24  ;;  %v5698_v23 = vcombine.high %v2104_v20, %v2112_v21  ;;  %v2120_v24 = vld [vmem:[%s8792_s3 + $0x4a8] sm:$0xff]  ;;  %v5697_v26 = vcombine.low %v2104_v20, %v2112_v21  ;;  %v2253_v21 = vsub.s32 5, %v7630_v30 }
 0x3cf   :  { %3780 = vmatpush1.bf16.msra.mxu1 %v5759_v27  ;;  %5997 = vmatpush3.bf16.msra.mxu0 %v6554_v28  ;;  %v5714_v27 = vcombine.high %v2120_v24, %v2128_v25  ;;  %v2136_v28 = vld [vmem:[%s8792_s3 + $0x528] sm:$0xff] }
 0x3d0   :  { %3781 = vmatprep.subr.bf16.mxu1 %v5776_v29  ;;  %5998 = vmatprep.subr.bf16.mxu0 %v6555_v32  ;;  %v2144_v29 = vld [vmem:[%s8792_s3 + $0x568] sm:$0xff]  ;;  %v5713_v32 = vcombine.low %v2120_v24, %v2128_v25  ;;  %v2081_v24 = vld [vmem:[%s8792_s3 + $0x370] sm:$0xff] }
 0x3d1   :  { %v5730_v34 = vcombine.high %v2136_v28, %v2144_v29 }
 0x3d3   :  { %3782 = vmatpush1.bf16.msra.mxu1 %v5775_v37  ;;  %5999 = vmatpush3.bf16.msra.mxu0 %v6556_v38  ;;  %v2160_v37 = vld [vmem:[%s8792_s3 + $0x5e8] sm:$0xff]  ;;  %v5729_v38 = vcombine.low %v2136_v28, %v2144_v29 }
 0x3d4   :  { %3783 = vmatprep.subr.bf16.mxu1 %v5792_v39  ;;  %6000 = vmatprep.subr.bf16.mxu0 %v6557_v40  ;;  %v5746_v39 = vcombine.high %v2152_v36, %v2160_v37  ;;  %v2168_v40 = vld [vmem:[%s8792_s3 + $0x628] sm:$0xff]  ;;  %v5745_v42 = vcombine.low %v2152_v36, %v2160_v37 }
 0x3d5   :  { %v5761_v48 = vcombine.low %v2168_v40, %v2176_v41 }
 0x3d7   :  { %3784 = vmatpush1.bf16.msra.mxu1 %v5791_v43  ;;  %6001 = vmatpush3.bf16.msra.mxu0 %v6558_v44  ;;  %v5762_v43 = vcombine.high %v2168_v40, %v2176_v41  ;;  %v2184_v44 = vld [vmem:[%s8792_s3 + $0x6a8] sm:$0xff] }
 0x3d8   :  { %3785 = vmatprep.subr.bf16.mxu1 %v5808_v45  ;;  %v2192_v45 = vld [vmem:[%s8792_s3 + $0x6e8] sm:$0xff] }
 0x3d9   :  { %v5778_v49 = vcombine.high %v2184_v44, %v2192_v45  ;;  %v5777_v18 = vcombine.low %v2184_v44, %v2192_v45  ;;  %v2105_v45 = vld [vmem:[%s8792_s3 + $0x430] sm:$0xff] }
 0x3db   :  { %3786 = vmatpush1.bf16.msra.mxu1 %v5807_v50  ;;  %v2200_v50 = vld [vmem:[%s8792_s3 + $0x728] sm:$0xff] }
 0x3dc   :  { %3796 = vmatprep.subr.bf16.mxu1 %v5570_v51  ;;  %v2208_v51 = vld [vmem:[%s8792_s3 + $0x768] sm:$0xff] }
 0x3dd   :  { %v5794_v52 = vcombine.high %v2200_v50, %v2208_v51  ;;  %v5793_v55 = vcombine.low %v2200_v50, %v2208_v51  ;;  %v6560_v51 = vld [vmem:[%s8794_s5 + $0x200] sm:$0xff]  }
 0x3de   :  { %3788 = vmatmul.mubr.bf16.vlgmr.msra.gmra.mrb[16].mxu1 %v7651_v47 }
 0x3df   :  { %3797 = vmatpush1.bf16.msra.mxu1 %v5569_v53  ;;  %3828 = vmatprep.mubr.bf16.mxu1 %v7649_v46  ;;  %v2216_v53 = vld [vmem:[%s8792_s3 + $0x7a8] sm:$0xff] }
 0x3e0   :  { %3798 = vmatprep.subr.bf16.mxu1 %v5586_v54  ;;  %v2224_v54 = vld [vmem:[%s8792_s3 + $0x7e8] sm:$0xff] }
 0x3e1   :  { %v5810_v56 = vcombine.high %v2216_v53, %v2224_v54  ;;  %v5809_v59 = vcombine.low %v2216_v53, %v2224_v54  ;;  %v6562_v53 = vld [vmem:[%s8794_s5 + $0x248] sm:$0xff]   ;;  %v2121_v54 = vld [vmem:[%s8792_s3 + $0x4b0] sm:$0xff] }
 0x3e3   :  { %3799 = vmatpush1.bf16.msra.mxu1 %v5585_v57  ;;  %v1977_v57 = vld [vmem:[%s8792_s3 + $0x30] sm:$0xff] }
 0x3e4   :  { %3800 = vmatprep.subr.bf16.mxu1 %v5602_v58  ;;  %v1985_v58 = vld [vmem:[%s8792_s3 + $0x70] sm:$0xff] }
 0x3e5   :  { %v5572_v60 = vcombine.high %v1977_v57, %v1985_v58  ;;  %v5571_v0 = vcombine.low %v1977_v57, %v1985_v58  ;;  %v6564_v57 = vld [vmem:[%s8794_s5 + $0x208] sm:$0xff]  }
 0x3e7   :  { %3801 = vmatpush1.bf16.msra.mxu1 %v5601_v61  ;;  %v6559_v61 = vld [vmem:[%s8794_s5 + $0x240] sm:$0xff]  }
 0x3e8   :  { %3802 = vmatprep.subr.bf16.mxu1 %v5618_v62  ;;  %v1993_v62 = vld [vmem:[%s8792_s3 + $0xb0] sm:$0xff]  ;;  %6030 = vmatprep.subr.bf16.mxu0 %v6559_v61 }
 0x3e9   :  { %v5587_v4 = vcombine.low %v1993_v62, %v2001_v63  ;;  %v2145_v61 = vld [vmem:[%s8792_s3 + $0x570] sm:$0xff] }
 0x3eb   :  { %3803 = vmatpush1.bf16.msra.mxu1 %v5617_v1  ;;  %v5588_v1 = vcombine.high %v1993_v62, %v2001_v63  ;;  %v6568_v63 = vld [vmem:[%s8794_s5 + $0x210] sm:$0xff]  }
 0x3ec   :  { %3804 = vmatprep.subr.bf16.mxu1 %v5634_v2  ;;  %v2009_v2 = vld [vmem:[%s8792_s3 + $0x130] sm:$0xff] }
 0x3ed   :  { %v5603_v8 = vcombine.low %v2009_v2, %v2017_v3 }
 0x3ef   :  { %3805 = vmatpush1.bf16.msra.mxu1 %v5633_v5  ;;  %v5604_v5 = vcombine.high %v2009_v2, %v2017_v3  ;;  %v2153_v2 = vld [vmem:[%s8792_s3 + $0x5b0] sm:$0xff] }
 0x3f0   :  { %3806 = vmatprep.subr.bf16.mxu1 %v5650_v6  ;;  %v2025_v6 = vld [vmem:[%s8792_s3 + $0x1b0] sm:$0xff] }
 0x3f1   :  { %v8183_v11 = vpop.f32.mrb[4].mxu1  ;;  %v5619_v13 = vcombine.low %v2025_v6, %v2033_v7  ;;  %v2161_v3 = vld [vmem:[%s8792_s3 + $0x5f0] sm:$0xff] }
 0x3f2   :  { %v8191_v14 = vpop.f32.mrb[5].mxu1 }
 0x3f3   :  { %v3670_v15 = vpop.f32.mrb[6].mxu1  ;;  %3807 = vmatpush1.bf16.msra.mxu1 %v5649_v9  ;;  %v5620_v9 = vcombine.high %v2025_v6, %v2033_v7  ;;  %v5748_v6 = vcombine.high %v2153_v2, %v2161_v3  ;;  %v6574_v7 = vld [vmem:[%s8794_s5 + $0x260] sm:$0xff]  }
 0x3f4   :  { %v3671_v17 = vpop.f32.mrb[7].mxu1  ;;  %3808 = vmatprep.subr.bf16.mxu1 %v5666_v10  ;;  %v2041_v10 = vld [vmem:[%s8792_s3 + $0x230] sm:$0xff] }
 0x3f5   :  { %v5636_v15 = vcombine.high %v2041_v10, %v2049_v12  ;;  %v2065_v17 = vld [vmem:[%s8792_s3 + $0x2f0] sm:$0xff]  ;;  %v5635_v20 = vcombine.low %v2041_v10, %v2049_v12  ;;  %v5747_v10 = vcombine.low %v2153_v2, %v2161_v3  ;;  %v6576_v12 = vld [vmem:[%s8794_s5 + $0x220] sm:$0xff]  }
 0x3f7   :  { %3809 = vmatpush1.bf16.msra.mxu1 %v5665_v16  ;;  %v2057_v16 = vld [vmem:[%s8792_s3 + $0x2b0] sm:$0xff] }
 0x3f8   :  { %3810 = vmatprep.subr.bf16.mxu1 %v5682_v19  ;;  %v2249_v19 = vsub.s32 4, %v7630_v30 }
 0x3fa   :  { %v2250_v25 = vrot.slane %v8028_v35, %v2249_v19 }
 0x3fb   :  { %3811 = vmatpush1.bf16.msra.mxu1 %v5681_v22  ;;  %v5652_v22 = vcombine.high %v2057_v16, %v2065_v17 }
 0x3fc   :  { %3812 = vmatprep.subr.bf16.mxu1 %v5698_v23  ;;  %v2073_v23 = vld [vmem:[%s8792_s3 + $0x330] sm:$0xff] }
 0x3fd   :  { %v5668_v28 = vcombine.high %v2073_v23, %v2081_v24  ;;  %v5667_v40 = vcombine.low %v2073_v23, %v2081_v24  ;;  %v6582_v24 = vld [vmem:[%s8794_s5 + $0x270] sm:$0xff]  }
 0x3ff   :  { %3813 = vmatpush1.bf16.msra.mxu1 %v5697_v26  ;;  %v2254_v26 = vrot.slane %v8028_v35, %v2253_v21 }
 0x400   :  { %3814 = vmatprep.subr.bf16.mxu1 %v5714_v27  ;;  %v5651_v27 = vcombine.low %v2057_v16, %v2065_v17  ;;  %v2185_v16 = vld [vmem:[%s8792_s3 + $0x6b0] sm:$0xff] }
 0x401   :  { %v2193_v17 = vld [vmem:[%s8792_s3 + $0x6f0] sm:$0xff] }
 0x402   :  { %v5780_v23 = vcombine.high %v2185_v16, %v2193_v17 }
 0x403   :  { %3815 = vmatpush1.bf16.msra.mxu1 %v5713_v32  ;;  %v2089_v32 = vld [vmem:[%s8792_s3 + $0x3b0] sm:$0xff] }
 0x404   :  { %3816 = vmatprep.subr.bf16.mxu1 %v5730_v34  ;;  %v2097_v34 = vld [vmem:[%s8792_s3 + $0x3f0] sm:$0xff] }
 0x405   :  { %v5683_v50 = vcombine.low %v2089_v32, %v2097_v34 }
 0x407   :  { %3817 = vmatpush1.bf16.msra.mxu1 %v5729_v38 }
 0x408   :  { %3818 = vmatprep.subr.bf16.mxu1 %v5746_v39 }
 0x40b   :  { %3819 = vmatpush1.bf16.msra.mxu1 %v5745_v42 }
 0x40c   :  { %3820 = vmatprep.subr.bf16.mxu1 %v5762_v43  ;;  %v5684_v43 = vcombine.high %v2089_v32, %v2097_v34  ;;  %v6586_v32 = vld [vmem:[%s8794_s5 + $0x278] sm:$0xff]   ;;  %v2217_v34 = vld [vmem:[%s8792_s3 + $0x7b0] sm:$0xff] }
 0x40f   :  { %3821 = vmatpush1.bf16.msra.mxu1 %v5761_v48  ;;  %v2113_v48 = vld [vmem:[%s8792_s3 + $0x470] sm:$0xff] }
 0x410   :  { %3822 = vmatprep.subr.bf16.mxu1 %v5778_v49 }
 0x413   :  { %3823 = vmatpush1.bf16.msra.mxu1 %v5777_v18 }
 0x414   :  { %3824 = vmatprep.subr.bf16.mxu1 %v5794_v52  ;;  %v5700_v52 = vcombine.high %v2105_v45, %v2113_v48 }
 0x417   :  { %3825 = vmatpush1.bf16.msra.mxu1 %v5793_v55  ;;  %v2129_v55 = vld [vmem:[%s8792_s3 + $0x4f0] sm:$0xff] }
 0x418   :  { %3826 = vmatprep.subr.bf16.mxu1 %v5810_v56  ;;  %v5699_v56 = vcombine.low %v2105_v45, %v2113_v48  ;;  %v5716_v58 = vcombine.high %v2121_v54, %v2129_v55  ;;  %v5715_v62 = vcombine.low %v2121_v54, %v2129_v55  ;;  %v2002_v45 = vld [vmem:[%s8792_s3 + $0xf8] sm:$0xff] }
 0x419   :  { %v2034_v54 = vld [vmem:[%s8792_s3 + $0x1f8] sm:$0xff] }
 0x41b   :  { %3827 = vmatpush1.bf16.msra.mxu1 %v5809_v59  ;;  %v6566_v59 = vld [vmem:[%s8794_s5 + $0x250] sm:$0xff]  }
 0x41c   :  { %3837 = vmatprep.subr.bf16.mxu1 %v5572_v60  ;;  %v2137_v60 = vld [vmem:[%s8792_s3 + $0x530] sm:$0xff] }
 0x41e   :  { %3829 = vmatmul.mubr.bf16.vlgmr.msra.gmra.mrb[20].mxu1 %v7651_v47 }
 0x41f   :  { %3838 = vmatpush1.bf16.msra.mxu1 %v5571_v0  ;;  %3869 = vmatprep.mubr.bf16.mxu1 %v7649_v46  ;;  %v5732_v0 = vcombine.high %v2137_v60, %v2145_v61 }
 0x420   :  { %3839 = vmatprep.subr.bf16.mxu1 %v5588_v1  ;;  %v6570_v1 = vld [vmem:[%s8794_s5 + $0x258] sm:$0xff]  }
 0x423   :  { %3840 = vmatpush1.bf16.msra.mxu1 %v5587_v4  ;;  %v5731_v4 = vcombine.low %v2137_v60, %v2145_v61  ;;  %v2058_v60 = vld [vmem:[%s8792_s3 + $0x2b8] sm:$0xff] }
 0x424   :  { %3841 = vmatprep.subr.bf16.mxu1 %v5604_v5  ;;  %v6572_v5 = vld [vmem:[%s8794_s5 + $0x218] sm:$0xff]  }
 0x425   :  { %v2066_v61 = vld [vmem:[%s8792_s3 + $0x2f8] sm:$0xff] }
 0x426   :  { %v5653_v2 = vcombine.low %v2058_v60, %v2066_v61 }
 0x427   :  { %3842 = vmatpush1.bf16.msra.mxu1 %v5603_v8  ;;  %v2169_v8 = vld [vmem:[%s8792_s3 + $0x630] sm:$0xff] }
 0x428   :  { %3843 = vmatprep.subr.bf16.mxu1 %v5620_v9  ;;  %v2177_v9 = vld [vmem:[%s8792_s3 + $0x670] sm:$0xff] }
 0x42b   :  { %3844 = vmatpush1.bf16.msra.mxu1 %v5619_v13  ;;  %v5764_v13 = vcombine.high %v2169_v8, %v2177_v9 }
 0x42c   :  { %3845 = vmatprep.subr.bf16.mxu1 %v5636_v15  ;;  %v6578_v15 = vld [vmem:[%s8794_s5 + $0x268] sm:$0xff]  }
 0x42f   :  { %3846 = vmatpush1.bf16.msra.mxu1 %v5635_v20  ;;  %v5763_v20 = vcombine.low %v2169_v8, %v2177_v9 }
 0x430   :  { %3847 = vmatprep.subr.bf16.mxu1 %v5652_v22  ;;  %v6580_v22 = vld [vmem:[%s8794_s5 + $0x228] sm:$0xff]  }
 0x431   :  { %v3707_v29 = vpop.f32.mrb[8].mxu1 }
 0x432   :  { %v3708_v36 = vadd.f32 %v3707_v29, %v2250_v25  ;;  %v3709_v37 = vpop.f32.mrb[9].mxu1  ;;  %v2201_v25 = vld [vmem:[%s8792_s3 + $0x730] sm:$0xff] }
 0x433   :  { %v3710_v38 = vadd.f32 %v3709_v37, %v2254_v26  ;;  %v3711_v39 = vpop.f32.mrb[10].mxu1  ;;  %3848 = vmatpush1.bf16.msra.mxu1 %v5651_v27  ;;  %v2209_v26 = vld [vmem:[%s8792_s3 + $0x770] sm:$0xff]  ;;  %v5779_v27 = vcombine.low %v2185_v16, %v2193_v17 }
 0x434   :  { %v3923_v41 = vmax.f32 %v3708_v36, 0.0  ;;  %v3712_v42 = vpop.f32.mrb[11].mxu1  ;;  %3849 = vmatprep.subr.bf16.mxu1 %v5668_v28  ;;  %v6584_v28 = vld [vmem:[%s8794_s5 + $0x230] sm:$0xff]   ;;  %v5796_v29 = vcombine.high %v2201_v25, %v2209_v26  ;;  %v5795_v37 = vcombine.low %v2201_v25, %v2209_v26  ;;  %v2138_v25 = vld [vmem:[%s8792_s3 + $0x538] sm:$0xff] }
 0x435   :  { %v3924_v44 = vmax.f32 %v3710_v38, 0.0  ;;  %v2225_v36 = vld [vmem:[%s8792_s3 + $0x7f0] sm:$0xff]  ;;  %v6588_v38 = vld [vmem:[%s8794_s5 + $0x238] sm:$0xff]  }
 0x436   :  { %v3939_v18 = vpack.c.bf16 %v3923_v41, %v3923_v41  ;;  %v5812_v39 = vcombine.high %v2217_v34, %v2225_v36  ;;  %v1986_v41 = vld [vmem:[%s8792_s3 + $0x78] sm:$0xff]  ;;  %v5811_v42 = vcombine.low %v2217_v34, %v2225_v36 }
 0x437   :  { %v3940_v49 = vpack.c.bf16 %v3924_v44, %v3924_v44  ;;  %3850 = vmatpush1.bf16.msra.mxu1 %v5667_v40  ;;  %v1978_v40 = vld [vmem:[%s8792_s3 + $0x38] sm:$0xff] }
 0x438   :  { %3851 = vmatprep.subr.bf16.mxu1 %v5684_v43  ;;  %v5574_v43 = vcombine.high %v1978_v40, %v1986_v41  ;;  %v1994_v44 = vld [vmem:[%s8792_s3 + $0xb8] sm:$0xff]  ;;  %v5573_v48 = vcombine.low %v1978_v40, %v1986_v41 }
 0x439   :  { %5074 = vmatprep.mubr.bf16.mxu0 %v3940_v49  ;;  %v5590_v49 = vcombine.high %v1994_v44, %v2002_v45  ;;  %v2146_v26 = vld [vmem:[%s8792_s3 + $0x578] sm:$0xff] }
 0x43a   :  { %5075 = vmatmul.mubr.bf16.vlgmr.msra.gmra.mrb[8].mxu0 %v3939_v18  ;;  %v5589_v18 = vcombine.low %v1994_v44, %v2002_v45  ;;  %v5733_v34 = vcombine.low %v2138_v25, %v2146_v26  ;;  %v2186_v41 = vld [vmem:[%s8792_s3 + $0x6b8] sm:$0xff]  ;;  %v2245_v45 = vsub.s32 3, %v7630_v30 }
 0x43b   :  { %3852 = vmatpush1.bf16.msra.mxu1 %v5683_v50  ;;  %6031 = vmatpush3.bf16.msra.mxu0 %v6560_v51  ;;  %v2010_v50 = vld [vmem:[%s8792_s3 + $0x138] sm:$0xff] }
 0x43c   :  { %3853 = vmatprep.subr.bf16.mxu1 %v5700_v52  ;;  %6032 = vmatprep.subr.bf16.mxu0 %v6562_v53  ;;  %v2018_v51 = vld [vmem:[%s8792_s3 + $0x178] sm:$0xff] }
 0x43d   :  { %v5606_v52 = vcombine.high %v2010_v50, %v2018_v51  ;;  %v2026_v53 = vld [vmem:[%s8792_s3 + $0x1b8] sm:$0xff]  ;;  %v5605_v55 = vcombine.low %v2010_v50, %v2018_v51 }
 0x43e   :  { %v2210_v50 = vld [vmem:[%s8792_s3 + $0x778] sm:$0xff] }
 0x43f   :  { %3854 = vmatpush1.bf16.msra.mxu1 %v5699_v56  ;;  %6033 = vmatpush3.bf16.msra.mxu0 %v6564_v57  ;;  %v5622_v56 = vcombine.high %v2026_v53, %v2034_v54  ;;  %v2042_v57 = vld [vmem:[%s8792_s3 + $0x238] sm:$0xff] }
 0x440   :  { %3855 = vmatprep.subr.bf16.mxu1 %v5716_v58  ;;  %6034 = vmatprep.subr.bf16.mxu0 %v6566_v59  ;;  %v5621_v58 = vcombine.low %v2026_v53, %v2034_v54 }
 0x443   :  { %3856 = vmatpush1.bf16.msra.mxu1 %v5715_v62  ;;  %6035 = vmatpush3.bf16.msra.mxu0 %v6568_v63  ;;  %v5654_v63 = vcombine.high %v2058_v60, %v2066_v61 }
 0x444   :  { %3857 = vmatprep.subr.bf16.mxu1 %v5732_v0  ;;  %6036 = vmatprep.subr.bf16.mxu0 %v6570_v1  ;;  %v2074_v0 = vld [vmem:[%s8792_s3 + $0x338] sm:$0xff] }
 0x445   :  { %v2082_v1 = vld [vmem:[%s8792_s3 + $0x378] sm:$0xff] }
 0x446   :  { %v5670_v3 = vcombine.high %v2074_v0, %v2082_v1  ;;  %v5669_v9 = vcombine.low %v2074_v0, %v2082_v1  ;;  %v6563_v1 = vld [vmem:[%s8794_s5 + $0x80] sm:$0xff]  }
 0x447   :  { %3858 = vmatpush1.bf16.msra.mxu1 %v5731_v4  ;;  %6037 = vmatpush3.bf16.msra.mxu0 %v6572_v5  ;;  %v2090_v5 = vld [vmem:[%s8792_s3 + $0x3b8] sm:$0xff] }
 0x448   :  { %3859 = vmatprep.subr.bf16.mxu1 %v5748_v6  ;;  %6038 = vmatprep.subr.bf16.mxu0 %v6574_v7  ;;  %v2098_v6 = vld [vmem:[%s8792_s3 + $0x3f8] sm:$0xff] }
 0x449   :  { %v5685_v16 = vcombine.low %v2090_v5, %v2098_v6 }
 0x44b   :  { %3860 = vmatpush1.bf16.msra.mxu1 %v5747_v10  ;;  %6039 = vmatpush3.bf16.msra.mxu0 %v6576_v12  ;;  %v5686_v12 = vcombine.high %v2090_v5, %v2098_v6  ;;  %v6569_v5 = vld [vmem:[%s8794_s5 + $0xd0] sm:$0xff]  }
 0x44c   :  { %3861 = vmatprep.subr.bf16.mxu1 %v5764_v13  ;;  %6040 = vmatprep.subr.bf16.mxu0 %v6578_v15  ;;  %v2106_v13 = vld [vmem:[%s8792_s3 + $0x438] sm:$0xff]  ;;  %v6571_v6 = vld [vmem:[%s8794_s5 + $0x90] sm:$0xff]  }
 0x44d   :  { %v2114_v15 = vld [vmem:[%s8792_s3 + $0x478] sm:$0xff] }
 0x44e   :  { %v5702_v17 = vcombine.high %v2106_v13, %v2114_v15 }
 0x44f   :  { %3862 = vmatpush1.bf16.msra.mxu1 %v5763_v20  ;;  %6041 = vmatpush3.bf16.msra.mxu0 %v6580_v22  ;;  %v2122_v20 = vld [vmem:[%s8792_s3 + $0x4b8] sm:$0xff] }
 0x450   :  { %3863 = vmatprep.subr.bf16.mxu1 %v5780_v23  ;;  %6042 = vmatprep.subr.bf16.mxu0 %v6582_v24  ;;  %v2130_v22 = vld [vmem:[%s8792_s3 + $0x4f8] sm:$0xff]  ;;  %v5701_v23 = vcombine.low %v2106_v13, %v2114_v15  ;;  %v2241_v13 = vsub.s32 2, %v7630_v30  ;;  %v6581_v15 = vld [vmem:[%s8794_s5 + $0xe8] sm:$0xff]  }
 0x451   :  { %v5718_v24 = vcombine.high %v2122_v20, %v2130_v22 }
 0x453   :  { %3864 = vmatpush1.bf16.msra.mxu1 %v5779_v27  ;;  %6043 = vmatpush3.bf16.msra.mxu0 %v6584_v28  ;;  %v5717_v27 = vcombine.low %v2122_v20, %v2130_v22  ;;  %v5734_v28 = vcombine.high %v2138_v25, %v2146_v26  ;;  %v6583_v22 = vld [vmem:[%s8794_s5 + $0xa8] sm:$0xff]  }
 0x454   :  { %3865 = vmatprep.subr.bf16.mxu1 %v5796_v29  ;;  %6044 = vmatprep.subr.bf16.mxu0 %v6586_v32  ;;  %v2154_v29 = vld [vmem:[%s8792_s3 + $0x5b8] sm:$0xff] }
 0x455   :  { %v2162_v32 = vld [vmem:[%s8792_s3 + $0x5f8] sm:$0xff] }
 0x456   :  { %v5750_v36 = vcombine.high %v2154_v29, %v2162_v32 }
 0x457   :  { %3866 = vmatpush1.bf16.msra.mxu1 %v5795_v37  ;;  %6045 = vmatpush3.bf16.msra.mxu0 %v6588_v38  ;;  %v2170_v37 = vld [vmem:[%s8792_s3 + $0x638] sm:$0xff] }
 0x458   :  { %3867 = vmatprep.subr.bf16.mxu1 %v5812_v39  ;;  %v2178_v38 = vld [vmem:[%s8792_s3 + $0x678] sm:$0xff]  ;;  %v5749_v39 = vcombine.low %v2154_v29, %v2162_v32  ;;  %v6587_v29 = vld [vmem:[%s8794_s5 + $0xb0] sm:$0xff]  }
 0x459   :  { %v5766_v40 = vcombine.high %v2170_v37, %v2178_v38 }
 0x45b   :  { %3868 = vmatpush1.bf16.msra.mxu1 %v5811_v42  ;;  %v2194_v42 = vld [vmem:[%s8792_s3 + $0x6f8] sm:$0xff] }
 0x45c   :  { %3878 = vmatprep.subr.bf16.mxu1 %v5574_v43  ;;  %v5765_v43 = vcombine.low %v2170_v37, %v2178_v38  ;;  %v5782_v44 = vcombine.high %v2186_v41, %v2194_v42  ;;  %v5781_v53 = vcombine.low %v2186_v41, %v2194_v42  ;;  %v6589_v37 = vld [vmem:[%s8794_s5 + $0xf8] sm:$0xff]  }
 0x45e   :  { %3870 = vmatmul.mubr.bf16.vlgmr.msra.gmra.mrb[24].mxu1 %v7651_v47 }
 0x45f   :  { %3879 = vmatpush1.bf16.msra.mxu1 %v5573_v48  ;;  %3910 = vmatprep.mubr.bf16.mxu1 %v7649_v46  ;;  %v2050_v46 = vld [vmem:[%s8792_s3 + $0x278] sm:$0xff] }
 0x460   :  { %3880 = vmatprep.subr.bf16.mxu1 %v5590_v49  ;;  %v5638_v59 = vcombine.high %v2042_v57, %v2050_v46  ;;  %v5637_v62 = vcombine.low %v2042_v57, %v2050_v46  ;;  %v2202_v49 = vld [vmem:[%s8792_s3 + $0x738] sm:$0xff]  ;;  %v2246_v57 = vrot.slane %v8028_v35, %v2245_v45 }
 0x461   :  { %v2218_v46 = vld [vmem:[%s8792_s3 + $0x7b8] sm:$0xff] }
 0x462   :  { %v3669_v61 = vadd.f32 %v8191_v14, %v2246_v57  ;;  %v6567_v14 = vld [vmem:[%s8794_s5 + $0x88] sm:$0xff]   ;;  %v6629_v57 = vld [vmem:[%s8794_s5 + $0x358] sm:$0xff]  }
 0x463   :  { %3881 = vmatpush1.bf16.msra.mxu1 %v5589_v18 }
 0x464   :  { %3882 = vmatprep.subr.bf16.mxu1 %v5606_v52  ;;  %v3922_v0 = vmax.f32 %v3669_v61, 0.0  ;;  %v6598_v61 = vld [vmem:[%s8794_s5 + $0x198] sm:$0xff]  }
 0x467   :  { %3883 = vmatpush1.bf16.msra.mxu1 %v5605_v55  ;;  %v5798_v55 = vcombine.high %v2202_v49, %v2210_v50 }
 0x468   :  { %3884 = vmatprep.subr.bf16.mxu1 %v5622_v56  ;;  %v6623_v56 = vld [vmem:[%s8794_s5 + $0x340] sm:$0xff]  }
 0x469   :  { %6074 = vmatprep.subr.bf16.mxu0 %v6623_v56  ;;  %v6628_v56 = vld [vmem:[%s8794_s5 + $0x310] sm:$0xff]  }
 0x46b   :  { %3885 = vmatpush1.bf16.msra.mxu1 %v5621_v58  ;;  %v2226_v58 = vld [vmem:[%s8792_s3 + $0x7f8] sm:$0xff] }
 0x46c   :  { %3886 = vmatprep.subr.bf16.mxu1 %v5638_v59  ;;  %v5797_v59 = vcombine.low %v2202_v49, %v2210_v50  ;;  %v5814_v60 = vcombine.high %v2218_v46, %v2226_v58  ;;  %v6593_v50 = vld [vmem:[%s8794_s5 + $0x1c8] sm:$0xff]  }
 0x46f   :  { %3887 = vmatpush1.bf16.msra.mxu1 %v5637_v62  ;;  %v5813_v62 = vcombine.low %v2218_v46, %v2226_v58  ;;  %v6596_v46 = vld [vmem:[%s8794_s5 + $0x190] sm:$0xff]   ;;  %v6597_v58 = vld [vmem:[%s8794_s5 + $0x1d8] sm:$0xff]  }
 0x470   :  { %3888 = vmatprep.subr.bf16.mxu1 %v5654_v63  ;;  %v6561_v63 = vld [vmem:[%s8794_s5 + $0xc0] sm:$0xff]  }
 0x471   :  { %v8439_v4 = vpop.f32.mrb[12].mxu1 }
 0x472   :  { %v8447_v7 = vpop.f32.mrb[13].mxu1 }
 0x473   :  { %v3752_v8 = vpop.f32.mrb[14].mxu1  ;;  %3889 = vmatpush1.bf16.msra.mxu1 %v5653_v2  ;;  %v6565_v2 = vld [vmem:[%s8794_s5 + $0xc8] sm:$0xff]  }
 0x474   :  { %v3753_v10 = vpop.f32.mrb[15].mxu1  ;;  %3890 = vmatprep.subr.bf16.mxu1 %v5670_v3  ;;  %v3938_v3 = vpack.c.bf16 %v3922_v0, %v3922_v0  ;;  %v6575_v8 = vld [vmem:[%s8794_s5 + $0x98] sm:$0xff]   ;;  %v6633_v0 = vld [vmem:[%s8794_s5 + $0x368] sm:$0xff]  }
 0x475   :  { %v6579_v10 = vld [vmem:[%s8794_s5 + $0xa0] sm:$0xff]  }
 0x477   :  { %3891 = vmatpush1.bf16.msra.mxu1 %v5669_v9  ;;  %v6577_v9 = vld [vmem:[%s8794_s5 + $0xe0] sm:$0xff]  }
 0x478   :  { %3892 = vmatprep.subr.bf16.mxu1 %v5686_v12  ;;  %v8541_v12 = vld [vmem:[%s8795_s4 + $0x8] sm:$0xff] }
 0x479   :  { %v2270_v20 = vrot.slane %v8541_v12, %v7639_v33 }
 0x47b   :  { %3893 = vmatpush1.bf16.msra.mxu1 %v5685_v16  ;;  %v2261_v16 = vsub.s32 7, %v7630_v30 }
 0x47c   :  { %3894 = vmatprep.subr.bf16.mxu1 %v5702_v17  ;;  %v2266_v17 = vrot.slane %v8541_v12, %v7633_v31 }
 0x47d   :  { %v2262_v31 = vrot.slane %v8028_v35, %v2261_v16 }
 0x47f   :  { %3895 = vmatpush1.bf16.msra.mxu1 %v5701_v23  ;;  %v2242_v23 = vrot.slane %v8028_v35, %v2241_v13  ;;  %v3751_v35 = vadd.f32 %v8447_v7, %v2262_v31  ;;  %v6625_v7 = vld [vmem:[%s8794_s5 + $0x348] sm:$0xff]  }
 0x480   :  { %3896 = vmatprep.subr.bf16.mxu1 %v5718_v24  ;;  %v6585_v24 = vld [vmem:[%s8794_s5 + $0xf0] sm:$0xff]  }
 0x481   :  { %v3667_v32 = vadd.f32 %v8183_v11, %v2242_v23  ;;  %v6624_v11 = vld [vmem:[%s8794_s5 + $0x300] sm:$0xff]   ;;  %v6638_v23 = vld [vmem:[%s8794_s5 + $0x338] sm:$0xff]  }
 0x483   :  { %3897 = vmatpush1.bf16.msra.mxu1 %v5717_v27  ;;  %v3921_v41 = vmax.f32 %v3667_v32, 0.0  ;;  %v6613_v32 = vld [vmem:[%s8794_s5 + $0x2d8] sm:$0xff]  }
 0x484   :  { %3898 = vmatprep.subr.bf16.mxu1 %v5734_v28 }
 0x485   :  { %v3937_v49 = vpack.c.bf16 %v3921_v41, %v3921_v41 }
 0x487   :  { %3899 = vmatpush1.bf16.msra.mxu1 %v5733_v34 }
 0x488   :  { %3900 = vmatprep.subr.bf16.mxu1 %v5750_v36 }
 0x48b   :  { %3901 = vmatpush1.bf16.msra.mxu1 %v5749_v39 }
 0x48c   :  { %3902 = vmatprep.subr.bf16.mxu1 %v5766_v40  ;;  %v6590_v40 = vld [vmem:[%s8794_s5 + $0xb8] sm:$0xff]  }
 0x48d   :  { %v5958_v48 = vpop.f32.mrb[4].mxu0 }
 0x48e   :  { %v5959_v51 = vpop.f32.mrb[5].mxu0 }
 0x48f   :  { %3903 = vmatpush1.bf16.msra.mxu1 %v5765_v43  ;;  %v8492_v18 = vadd.f32 %v5959_v51, %v5958_v48  ;;  %v5961_v52 = vpop.f32.mrb[6].mxu0  ;;  %v6591_v43 = vld [vmem:[%s8794_s5 + $0x1c0] sm:$0xff]   ;;  %v6626_v51 = vld [vmem:[%s8794_s5 + $0x308] sm:$0xff]  }
 0x490   :  { %v5962_v54 = vpop.f32.mrb[7].mxu0  ;;  %3904 = vmatprep.subr.bf16.mxu1 %v5782_v44  ;;  %v3926_v44 = vmax.f32 %v3751_v35, 0.0  ;;  %v6592_v48 = vld [vmem:[%s8794_s5 + $0x180] sm:$0xff]   ;;  %v6617_v35 = vld [vmem:[%s8794_s5 + $0x2e8] sm:$0xff]  }
 0x491   :  { %v6594_v54 = vld [vmem:[%s8794_s5 + $0x188] sm:$0xff]  }
 0x492   :  { %v3942_v52 = vpack.c.bf16 %v3926_v44, %v3926_v44 }
 0x493   :  { %3905 = vmatpush1.bf16.msra.mxu1 %v5781_v53  ;;  %v6627_v53 = vld [vmem:[%s8794_s5 + $0x350] sm:$0xff]  }
 0x494   :  { %3906 = vmatprep.subr.bf16.mxu1 %v5798_v55  ;;  %v6595_v55 = vld [vmem:[%s8794_s5 + $0x1d0] sm:$0xff]  }
 0x497   :  { %3907 = vmatpush1.bf16.msra.mxu1 %v5797_v59  ;;  %v6630_v59 = vld [vmem:[%s8794_s5 + $0x318] sm:$0xff]  }
 0x498   :  { %3908 = vmatprep.subr.bf16.mxu1 %v5814_v60  ;;  %v6631_v60 = vld [vmem:[%s8794_s5 + $0x360] sm:$0xff]  }
 0x49b   :  { %3909 = vmatpush1.bf16.msra.mxu1 %v5813_v62  ;;  %v6599_v62 = vld [vmem:[%s8794_s5 + $0x1e0] sm:$0xff]  }
 0x49c   :  { %5964 = vmatprep.subr.bf16.mxu1 %v6561_v63  ;;  %v6632_v63 = vld [vmem:[%s8794_s5 + $0x320] sm:$0xff]  }
 0x49e   :  { %3911 = vmatmul.mubr.bf16.vlgmr.msra.gmra.mrb[28].mxu1 %v7651_v47  ;;  %v6573_v47 = vld [vmem:[%s8794_s5 + $0xd8] sm:$0xff]  }
 0x49f   :  { %5965 = vmatpush3.bf16.msra.mxu1 %v6563_v1  ;;  %5034 = vmatprep.mubr.bf16.mxu1 %v3938_v3  ;;  %v6600_v1 = vld [vmem:[%s8794_s5 + $0x1a0] sm:$0xff]   ;;  %v6601_v3 = vld [vmem:[%s8794_s5 + $0x1e8] sm:$0xff]  }
 0x4a0   :  { %5966 = vmatprep.subr.bf16.mxu1 %v6565_v2  ;;  %v2257_v2 = vsub.s32 6, %v7630_v30  ;;  %v5815_v30 = vld [vmem:[%s8796_s6] ss:$0 sm:$0xff] }
 0x4a3   :  { %5967 = vmatpush3.bf16.msra.mxu1 %v6567_v14  ;;  %v6634_v14 = vld [vmem:[%s8794_s5 + $0x328] sm:$0xff]  }
 0x4a4   :  { %5968 = vmatprep.subr.bf16.mxu1 %v6569_v5  ;;  %v6635_v5 = vld [vmem:[%s8794_s5 + $0x370] sm:$0xff]  }
 0x4a7   :  { %5969 = vmatpush3.bf16.msra.mxu1 %v6571_v6  ;;  %v6602_v6 = vld [vmem:[%s8794_s5 + $0x1a8] sm:$0xff]  }
 0x4a8   :  { %5970 = vmatprep.subr.bf16.mxu1 %v6573_v47  ;;  %v6652_v47 = vld [vmem:[%s8795_s4] sm:$0xff] }
 0x4ab   :  { %5971 = vmatpush3.bf16.msra.mxu1 %v6575_v8  ;;  %v2258_v8 = vrot.slane %v6652_v47, %v2257_v2  ;;  %v6650_v47 = vld [vmem:[%s8794_s5 + $0x3d8] sm:$0xff]  }
 0x4ac   :  { %5972 = vmatprep.subr.bf16.mxu1 %v6577_v9  ;;  %v6603_v9 = vld [vmem:[%s8794_s5 + $0x1f0] sm:$0xff]  }
 0x4af   :  { %5973 = vmatpush3.bf16.msra.mxu1 %v6579_v10  ;;  %v6636_v10 = vld [vmem:[%s8794_s5 + $0x330] sm:$0xff]  }
 0x4b0   :  { %5974 = vmatprep.subr.bf16.mxu1 %v6581_v15  ;;  %v6637_v15 = vld [vmem:[%s8794_s5 + $0x378] sm:$0xff]  }
 0x4b1   :  { %v3789_v25 = vpop.f32.mrb[16].mxu1 }
 0x4b2   :  { %v3790_v26 = vadd.f32 %v3789_v25, %v2266_v17  ;;  %v3791_v33 = vpop.f32.mrb[17].mxu1  ;;  %v6604_v17 = vld [vmem:[%s8794_s5 + $0x1b0] sm:$0xff]   ;;  %v6608_v25 = vld [vmem:[%s8794_s5 + $0x280] sm:$0xff]  }
 0x4b3   :  { %v3792_v27 = vadd.f32 %v3791_v33, %v2270_v20  ;;  %v3793_v28 = vpop.f32.mrb[18].mxu1  ;;  %5975 = vmatpush3.bf16.msra.mxu1 %v6583_v22  ;;  %v3749_v20 = vadd.f32 %v8439_v4, %v2258_v8  ;;  %v6605_v22 = vld [vmem:[%s8794_s5 + $0x1f8] sm:$0xff]   ;;  %v6607_v4 = vld [vmem:[%s8794_s5 + $0x2c0] sm:$0xff]   ;;  %v6609_v33 = vld [vmem:[%s8794_s5 + $0x2c8] sm:$0xff]  }
 0x4b4   :  { %v3927_v34 = vmax.f32 %v3790_v26, 0.0  ;;  %v3794_v36 = vpop.f32.mrb[19].mxu1  ;;  %5976 = vmatprep.subr.bf16.mxu1 %v6585_v24  ;;  %v6606_v24 = vld [vmem:[%s8794_s5 + $0x1b8] sm:$0xff]   ;;  %v6611_v28 = vld [vmem:[%s8794_s5 + $0x2d0] sm:$0xff]   ;;  %v6651_v8 = vld [vmem:[%s8794_s5 + $0x3e0] sm:$0xff]  }
 0x4b5   :  { %v3928_v38 = vmax.f32 %v3792_v27, 0.0  ;;  %v3925_v31 = vmax.f32 %v3749_v20, 0.0  ;;  %v6610_v27 = vld [vmem:[%s8794_s5 + $0x288] sm:$0xff]   ;;  %v6615_v36 = vld [vmem:[%s8794_s5 + $0x2e0] sm:$0xff]  }
 0x4b6   :  { %v3943_v42 = vpack.c.bf16 %v3927_v34, %v3927_v34  ;;  %v6614_v34 = vld [vmem:[%s8794_s5 + $0x298] sm:$0xff]  }
 0x4b7   :  { %v3944_v39 = vpack.c.bf16 %v3928_v38, %v3928_v38  ;;  %5977 = vmatpush3.bf16.msra.mxu1 %v6587_v29  ;;  %v3941_v26 = vpack.c.bf16 %v3925_v31, %v3925_v31  ;;  %v6612_v29 = vld [vmem:[%s8794_s5 + $0x290] sm:$0xff]   ;;  %v2274_v38 = vrot.slane %v8541_v12, %v2241_v13 }
 0x4b8   :  { %5978 = vmatprep.subr.bf16.mxu1 %v6589_v37  ;;  %v6616_v37 = vld [vmem:[%s8794_s5 + $0x2a0] sm:$0xff]   ;;  %v6620_v13 = vld [vmem:[%s8794_s5 + $0x2b0] sm:$0xff]  }
 0x4b9   :  { %5154 = vmatprep.mubr.bf16.mxu0 %v3944_v39  ;;  %v2278_v39 = vrot.slane %v8541_v12, %v2245_v45 }
 0x4ba   :  { %5155 = vmatmul.mubr.bf16.vlgmr.msra.gmra.mrb[12].mxu0 %v3943_v42 }
 0x4bb   :  { %5979 = vmatpush3.bf16.msra.mxu1 %v6590_v40  ;;  %6075 = vmatpush3.bf16.msra.mxu0 %v6624_v11  ;;  %v6618_v40 = vld [vmem:[%s8794_s5 + $0x2a8] sm:$0xff]   ;;  %v6619_v11 = vld [vmem:[%s8794_s5 + $0x2f0] sm:$0xff]  }
 0x4bc   :  { %6008 = vmatprep.subr.bf16.mxu1 %v6591_v43  ;;  %6076 = vmatprep.subr.bf16.mxu0 %v6625_v7 }
 0x4be   :  { %5035 = vmatmul.mubr.bf16.vlgmr.msra.gmra.mrb[32].mxu1 %v3937_v49 }
 0x4bf   :  { %6009 = vmatpush3.bf16.msra.mxu1 %v6592_v48  ;;  %5114 = vmatprep.mubr.bf16.mxu1 %v3942_v52  ;;  %v6621_v48 = vld [vmem:[%s8794_s5 + $0x2f8] sm:$0xff]  }
 0x4c0   :  { %6010 = vmatprep.subr.bf16.mxu1 %v6593_v50  ;;  %6077 = vmatpush3.bf16.msra.mxu0 %v6626_v51  ;;  %v6622_v51 = vld [vmem:[%s8794_s5 + $0x2b8] sm:$0xff]  }
 0x4c1   :  { %6078 = vmatprep.subr.bf16.mxu0 %v6627_v53  ;;  %v6639_v53 = vld [vmem:[%s8794_s5 + $0x380] sm:$0xff]  }
 0x4c3   :  { %6011 = vmatpush3.bf16.msra.mxu1 %v6594_v54 }
 0x4c4   :  { %6012 = vmatprep.subr.bf16.mxu1 %v6595_v55  ;;  %6079 = vmatpush3.bf16.msra.mxu0 %v6628_v56  ;;  %v6653_v55 = vmov 0   ;;  %v6640_v56 = vld [vmem:[%s8794_s5 + $0x388] sm:$0xff]  }
 0x4c5   :  { %6080 = vmatprep.subr.bf16.mxu0 %v6629_v57  ;;  %v6641_v57 = vld [vmem:[%s8794_s5 + $0x390] sm:$0xff]  }
 0x4c7   :  { %6013 = vmatpush3.bf16.msra.mxu1 %v6596_v46  ;;  %v6642_v46 = vld [vmem:[%s8794_s5 + $0x398] sm:$0xff]  }
 0x4c8   :  { %6014 = vmatprep.subr.bf16.mxu1 %v6597_v58  ;;  %6081 = vmatpush3.bf16.msra.mxu0 %v6630_v59  ;;  %v6643_v58 = vld [vmem:[%s8794_s5 + $0x3a0] sm:$0xff]  }
 0x4c9   :  { %6082 = vmatprep.subr.bf16.mxu0 %v6631_v60 }
 0x4cb   :  { %6015 = vmatpush3.bf16.msra.mxu1 %v6598_v61 }
 0x4cc   :  { %6016 = vmatprep.subr.bf16.mxu1 %v6599_v62  ;;  %6083 = vmatpush3.bf16.msra.mxu0 %v6632_v63  ;;  %v6644_v63 = vld [vmem:[%s8794_s5 + $0x3a8] sm:$0xff]  }
 0x4cd   :  { %6084 = vmatprep.subr.bf16.mxu0 %v6633_v0 }
 0x4cf   :  { %6017 = vmatpush3.bf16.msra.mxu1 %v6600_v1  ;;  %v6645_v1 = vld [vmem:[%s8794_s5 + $0x3b0] sm:$0xff]  }
 0x4d0   :  { %6018 = vmatprep.subr.bf16.mxu1 %v6601_v3  ;;  %6085 = vmatpush3.bf16.msra.mxu0 %v6634_v14  ;;  %v6646_v3 = vld [vmem:[%s8794_s5 + $0x3b8] sm:$0xff]   ;;  %v6647_v14 = vld [vmem:[%s8794_s5 + $0x3c0] sm:$0xff]  }
 0x4d1   :  { %6086 = vmatprep.subr.bf16.mxu0 %v6635_v5  ;;  %v6648_v5 = vld [vmem:[%s8794_s5 + $0x3c8] sm:$0xff]  }
 0x4d3   :  { %6019 = vmatpush3.bf16.msra.mxu1 %v6602_v6  ;;  %v6649_v6 = vld [vmem:[%s8794_s5 + $0x3d0] sm:$0xff]  }
 0x4d4   :  { %6020 = vmatprep.subr.bf16.mxu1 %v6603_v9  ;;  %6087 = vmatpush3.bf16.msra.mxu0 %v6636_v10  ;;  %v2282_v9 = vrot.slane %v8541_v12, %v2249_v19  ;;  %v2286_v10 = vrot.slane %v8541_v12, %v2253_v21  ;;  %v2290_v19 = vrot.slane %v8541_v12, %v2257_v2 }
 0x4d5   :  { %6088 = vmatprep.subr.bf16.mxu0 %v6637_v15  ;;  %v2294_v21 = vrot.slane %v8541_v12, %v2261_v16 }
 0x4d7   :  { %6021 = vmatpush3.bf16.msra.mxu1 %v6604_v17 }
 0x4d8   :  { %6022 = vmatprep.subr.bf16.mxu1 %v6605_v22  ;;  %6089 = vmatpush3.bf16.msra.mxu0 %v6638_v23 }
 0x4db   :  { %6023 = vmatpush3.bf16.msra.mxu1 %v6606_v24 }
 0x4dc   :  { %6052 = vmatprep.subr.bf16.mxu1 %v6607_v4 }
 0x4de   :  { %5115 = vmatmul.mubr.bf16.vlgmr.msra.gmra.mrb[36].mxu1 %v3941_v26 }
 0x4df   :  { %6053 = vmatpush3.bf16.msra.mxu1 %v6608_v25 }
 0x4e0   :  { %6054 = vmatprep.subr.bf16.mxu1 %v6609_v33 }
 0x4e3   :  { %6055 = vmatpush3.bf16.msra.mxu1 %v6610_v27 }
 0x4e4   :  { %6056 = vmatprep.subr.bf16.mxu1 %v6611_v28 }
 0x4e7   :  { %6057 = vmatpush3.bf16.msra.mxu1 %v6612_v29 }
 0x4e8   :  { %6058 = vmatprep.subr.bf16.mxu1 %v6613_v32 }
 0x4eb   :  { %6059 = vmatpush3.bf16.msra.mxu1 %v6614_v34 }
 0x4ec   :  { %6060 = vmatprep.subr.bf16.mxu1 %v6615_v36 }
 0x4ef   :  { %6061 = vmatpush3.bf16.msra.mxu1 %v6616_v37 }
 0x4f0   :  { %6062 = vmatprep.subr.bf16.mxu1 %v6617_v35 }
 0x4f1   :  { %v3830_v41 = vpop.f32.mrb[20].mxu1 }
 0x4f2   :  { %v3831_v42 = vadd.f32 %v3830_v41, %v2274_v38  ;;  %v3832_v43 = vpop.f32.mrb[21].mxu1 }
 0x4f3   :  { %v3833_v7 = vadd.f32 %v3832_v43, %v2278_v39  ;;  %v3834_v44 = vpop.f32.mrb[22].mxu1  ;;  %6063 = vmatpush3.bf16.msra.mxu1 %v6618_v40 }
 0x4f4   :  { %v3835_v45 = vpop.f32.mrb[23].mxu1  ;;  %6064 = vmatprep.subr.bf16.mxu1 %v6619_v11  ;;  %v3929_v52 = vmax.f32 %v3831_v42, 0.0  ;;  %v4997_v42 = vadd.f32 %v8492_v18, %v5815_v30 }
 0x4f5   :  { %v3930_v49 = vmax.f32 %v3833_v7, 0.0 }
 0x4f6   :  { %v3945_v54 = vpack.c.bf16 %v3929_v52, %v3929_v52 }
 0x4f7   :  { %v3946_v50 = vpack.c.bf16 %v3930_v49, %v3930_v49  ;;  %6065 = vmatpush3.bf16.msra.mxu1 %v6620_v13 }
 0x4f8   :  { %6066 = vmatprep.subr.bf16.mxu1 %v6621_v48 }
 0x4f9   :  { %5194 = vmatprep.mubr.bf16.mxu1 %v3946_v50 }
 0x4fb   :  { %6067 = vmatpush3.bf16.msra.mxu1 %v6622_v51 }
 0x4fc   :  { %5242 = vmatprep.subr.bf16.mxu1 %v6653_v55 }
 0x4fe   :  { %5195 = vmatmul.mubr.bf16.vlgmr.msra.gmra.mrb[40].mxu1 %v3945_v54 }
 0x4ff   :  { %5243 = vmatpush1.bf16.msra.mxu1 %v6639_v53 }
 0x500   :  { %5244 = vmatprep.subr.bf16.mxu1 %v6653_v55 }
 0x503   :  { %5245 = vmatpush1.bf16.msra.mxu1 %v6640_v56 }
 0x504   :  { %5246 = vmatprep.subr.bf16.mxu1 %v6653_v55 }
 0x507   :  { %5247 = vmatpush1.bf16.msra.mxu1 %v6641_v57 }
 0x508   :  { %5248 = vmatprep.subr.bf16.mxu1 %v6653_v55 }
 0x50b   :  { %5249 = vmatpush1.bf16.msra.mxu1 %v6642_v46 }
 0x50c   :  { %5250 = vmatprep.subr.bf16.mxu1 %v6653_v55 }
 0x50d   :  { %v6002_v59 = vpop.f32.mrb[8].mxu0 }
 0x50e   :  { %v6003_v60 = vpop.f32.mrb[9].mxu0 }
 0x50f   :  { %v8744_v61 = vadd.f32 %v6003_v60, %v6002_v59  ;;  %v6005_v62 = vpop.f32.mrb[10].mxu0  ;;  %5251 = vmatpush1.bf16.msra.mxu1 %v6643_v58 }
 0x510   :  { %v6006_v0 = vpop.f32.mrb[11].mxu0  ;;  %5252 = vmatprep.subr.bf16.mxu1 %v6653_v55 }
 0x513   :  { %5253 = vmatpush1.bf16.msra.mxu1 %v6644_v63 }
 0x514   :  { %5254 = vmatprep.subr.bf16.mxu1 %v6653_v55 }
 0x517   :  { %5255 = vmatpush1.bf16.msra.mxu1 %v6645_v1 }
 0x518   :  { %5256 = vmatprep.subr.bf16.mxu1 %v6653_v55 }
 0x51b   :  { %5257 = vmatpush1.bf16.msra.mxu1 %v6646_v3 }
 0x51c   :  { %5258 = vmatprep.subr.bf16.mxu1 %v6653_v55 }
 0x51f   :  { %5259 = vmatpush1.bf16.msra.mxu1 %v6647_v14 }
 0x520   :  { %5260 = vmatprep.subr.bf16.mxu1 %v6653_v55 }
 0x523   :  { %5261 = vmatpush1.bf16.msra.mxu1 %v6648_v5 }
 0x524   :  { %5262 = vmatprep.subr.bf16.mxu1 %v6653_v55 }
 0x527   :  { %5263 = vmatpush1.bf16.msra.mxu1 %v6649_v6 }
 0x528   :  { %5264 = vmatprep.subr.bf16.mxu1 %v6653_v55 }
 0x52b   :  { %5265 = vmatpush1.bf16.msra.mxu1 %v6650_v47 }
 0x52c   :  { %5266 = vmatprep.subr.bf16.mxu1 %v6653_v55 }
 0x52f   :  { %5267 = vmatpush1.bf16.msra.mxu1 %v6651_v8 }
 0x531   :  { %v3871_v15 = vpop.f32.mrb[24].mxu1 }
 0x532   :  { %v3872_v17 = vadd.f32 %v3871_v15, %v2282_v9  ;;  %v3873_v20 = vpop.f32.mrb[25].mxu1 }
 0x533   :  { %v3874_v22 = vadd.f32 %v3873_v20, %v2286_v10  ;;  %v3875_v23 = vpop.f32.mrb[26].mxu1 }
 0x534   :  { %v3931_v24 = vmax.f32 %v3872_v17, 0.0  ;;  %v3876_v31 = vpop.f32.mrb[27].mxu1 }
 0x535   :  { %v3932_v4 = vmax.f32 %v3874_v22, 0.0 }
 0x536   :  { %v3947_v26 = vpack.c.bf16 %v3931_v24, %v3931_v24 }
 0x537   :  { %v3948_v25 = vpack.c.bf16 %v3932_v4, %v3932_v4 }
 0x539   :  { %5234 = vmatprep.mubr.bf16.mxu0 %v3948_v25 }
 0x53a   :  { %5235 = vmatmul.mubr.bf16.vlgmr.msra.gmra.mrb[16].mxu0 %v3947_v26 }
 0x571   :  { %v3912_v33 = vpop.f32.mrb[28].mxu1 }
 0x572   :  { %v3913_v27 = vadd.f32 %v3912_v33, %v2290_v19  ;;  %v3914_v28 = vpop.f32.mrb[29].mxu1 }
 0x573   :  { %v3915_v29 = vadd.f32 %v3914_v28, %v2294_v21  ;;  %v3916_v32 = vpop.f32.mrb[30].mxu1 }
 0x574   :  { %v3933_v34 = vmax.f32 %v3913_v27, 0.0  ;;  %v3917_v36 = vpop.f32.mrb[31].mxu1 }
 0x575   :  { %v3934_v37 = vmax.f32 %v3915_v29, 0.0 }
 0x576   :  { %v3949_v38 = vpack.c.bf16 %v3933_v34, %v3933_v34 }
 0x577   :  { %v3950_v35 = vpack.c.bf16 %v3934_v37, %v3934_v37 }
 0x579   :  { %5941 = vmatprep.mubr.msk.bf16.mxu1 %vm4958_vm0, %v3950_v35 }
 0x57a   :  { %5275 = vmatmul.mubr.bf16.vlgmr.msra.gmra.mrb[44].mxu1 %v3949_v38 }
 0x58d   :  { %v6046_v39 = vpop.f32.mrb[12].mxu0 }
 0x58e   :  { %v6047_v40 = vpop.f32.mrb[13].mxu0 }
 0x58f   :  { %v6048_v2 = vadd.f32 %v6047_v40, %v6046_v39  ;;  %v6049_v11 = vpop.f32.mrb[14].mxu0 }
 0x590   :  { %v6050_v12 = vpop.f32.mrb[15].mxu0 }
 0x591   :  { %v5980_v16 = vpop.f32.mrb[32].mxu1 }
 0x592   :  { %v5981_v41 = vpop.f32.mrb[33].mxu1 }
 0x593   :  { %v5982_v43 = vadd.f32 %v5981_v41, %v5980_v16  ;;  %v5983_v7 = vpop.f32.mrb[34].mxu1 }
 0x594   :  { %v5984_v44 = vpop.f32.mrb[35].mxu1 }
 0x595   :  { %v5037_v13 = vadd.f32 %v5982_v43, %v4997_v42 }
 0x597   :  { %v5077_v45 = vadd.f32 %v8744_v61, %v5037_v13 }
 0x5b1   :  { %v6024_v48 = vpop.f32.mrb[36].mxu1 }
 0x5b2   :  { %v6025_v49 = vpop.f32.mrb[37].mxu1 }
 0x5b3   :  { %v6026_v50 = vadd.f32 %v6025_v49, %v6024_v48  ;;  %v6027_v51 = vpop.f32.mrb[38].mxu1 }
 0x5b4   :  { %v6028_v52 = vpop.f32.mrb[39].mxu1 }
 0x5b5   :  { %v5117_v53 = vadd.f32 %v6026_v50, %v5077_v45 }
 0x5b7   :  { %v5157_v54 = vadd.f32 %v6048_v2, %v5117_v53 }
 0x5d1   :  { %v6068_v55 = vpop.f32.mrb[40].mxu1 }
 0x5d2   :  { %v6069_v56 = vpop.f32.mrb[41].mxu1 }
 0x5d3   :  { %v6070_v57 = vadd.f32 %v6069_v56, %v6068_v55  ;;  %v6071_v46 = vpop.f32.mrb[42].mxu1 }
 0x5d4   :  { %v6072_v58 = vpop.f32.mrb[43].mxu1 }
 0x5d5   :  { %v5197_v59 = vadd.f32 %v6070_v57, %v5157_v54 }
 0x60d   :  { %v6090_v18 = vpop.f32.mrb[16].mxu0 }
 0x60e   :  { %v6091_v60 = vpop.f32.mrb[17].mxu0 }
 0x60f   :  { %v6092_v62 = vadd.f32 %v6091_v60, %v6090_v18  ;;  %v6093_v63 = vpop.f32.mrb[18].mxu0 }
 0x610   :  { %v6094_v0 = vpop.f32.mrb[19].mxu0 }
 0x611   :  { %v5237_v1 = vadd.f32 %v6092_v62, %v5197_v59 }
 0x64d   :  { %v5276_v61 = vpop.f32.mrb[44].mxu1 }
 0x64e   :  { %v5277_v3 = vadd.f32 %v5276_v61, %v5237_v1  ;;  %v5278_v14 = vpop.f32.mrb[45].mxu1 }
 0x64f   :  { %v5279_v5 = vpop.f32.mrb[46].mxu1 }
 0x650   :  { %5282 = vst [vmem:[%s8797_s7] sm:$0xff] %v5277_v3  ;;  %v5280_v6 = vpop.f32.mrb[47].mxu1 }

</bundles_post_ra>
